<compile_context>
chip_gen: v7x
topology: tpu7x:2x2x1
jax: 0.10.0
libtpu: 0.0.40
codegen_flags: <defaults>
</compile_context>

<pallas_src>
import functools
import math

import numpy as np
import jax
import jax.numpy as jnp
from jax import lax
from jax.experimental import pallas as pl
from jax.experimental.pallas import tpu as pltpu

# Module dims (the spec's defaults).
EMBED_DIM = 512
NUM_HEADS = 4
KDIM = 128
VDIM = 128
HEAD_DIM = EMBED_DIM // NUM_HEADS      # 128 -> one full lane tile per head

NEG_INF = -1e30                        # finite "-inf" for the key-padding mask


# -----------------------------------------------------------------------------
# Pallas kernel: fused multi-head cross-attention for one batch element.
# -----------------------------------------------------------------------------
def mha_kernel(q_ref, k_ref, v_ref, bias_ref,
               wq_ref, bq_ref, wk_ref, bk_ref, wv_ref, bv_ref,
               wo_ref, bo_ref, o_ref, *, num_heads):
    """Refs:
      q_ref    : (1, L, E)      query for this batch element
      k_ref    : (1, S, KDIM)   key
      v_ref    : (1, S, VDIM)   value
      bias_ref : (1, 1, S)      additive key-padding bias (0.0 keep / NEG_INF mask)
      w*/b*    : projection weights, stored (in_dim, out_dim)
      o_ref    : (1, L, E)      attention output
    """
    q = q_ref[0]                                   # (L, E)
    k = k_ref[0]                                   # (S, KDIM)
    v = v_ref[0]                                   # (S, VDIM)
    e = q.shape[-1]
    d = e // num_heads
    scale = 1.0 / math.sqrt(d)

    # Input projections: three lane-dense MXU matmuls (output width = E = 512).
    # PyTorch applies the 1/sqrt(head_dim) scaling to the (biased) projected q.
    qp = (jnp.dot(q, wq_ref[...], preferred_element_type=jnp.float32)
          + bq_ref[...]) * scale                   # (L, E)
    kp = jnp.dot(k, wk_ref[...], preferred_element_type=jnp.float32) + bk_ref[...]  # (S, E)
    vp = jnp.dot(v, wv_ref[...], preferred_element_type=jnp.float32) + bv_ref[...]  # (S, E)

    bias = bias_ref[0]                             # (1, S), broadcasts over queries

    # Per-head attention, statically unrolled (num_heads = 4). With head_dim = 128
    # every slice below is a whole lane tile, so the slices and the matmuls stay
    # lane-dense; the only cross-lane work is the softmax reduce along the key axis.
    heads = []
    for h in range(num_heads):
        lo, hi = h * d, (h + 1) * d
        qh = qp[:, lo:hi]                          # (L, d)
        kh = kp[:, lo:hi]                          # (S, d)
        vh = vp[:, lo:hi]                          # (S, d)
        # scores = qh @ kh^T, contracting d on both sides (no explicit transpose).
        s = lax.dot_general(qh, kh, (((1,), (1,)), ((), ())),
                            preferred_element_type=jnp.float32)     # (L, S)
        s = s + bias
        m = jnp.max(s, axis=-1, keepdims=True)
        p = jnp.exp(s - m)
        a = p / jnp.sum(p, axis=-1, keepdims=True)
        heads.append(jnp.dot(a, vh, preferred_element_type=jnp.float32))  # (L, d)

    ctx = jnp.concatenate(heads, axis=-1)          # (L, E) lane concat of head outputs
    o_ref[0] = jnp.dot(ctx, wo_ref[...],
                       preferred_element_type=jnp.float32) + bo_ref[...]


# -----------------------------------------------------------------------------
# Wrapper: matches nn.MultiheadAttention's (L, N, E) / (S, N, kdim) / (S, N, vdim)
# calling convention; returns only attn_output (the [0] in the torch forward).
# -----------------------------------------------------------------------------
def cross_attention_forward(params, query, key, value, key_padding_mask=None):
    L, N, E = query.shape
    S = key.shape[0]

    # Batch-major layouts for a clean per-batch grid.
    qb = jnp.transpose(query, (1, 0, 2)).astype(jnp.float32)        # (N, L, E)
    kb = jnp.transpose(key, (1, 0, 2)).astype(jnp.float32)          # (N, S, KDIM)
    vb = jnp.transpose(value, (1, 0, 2)).astype(jnp.float32)        # (N, S, VDIM)

    if key_padding_mask is None:
        bias = jnp.zeros((N, 1, S), jnp.float32)
    else:
        bias = jnp.where(key_padding_mask, NEG_INF, 0.0).astype(jnp.float32)[:, None, :]

    kern = functools.partial(mha_kernel, num_heads=NUM_HEADS)
    out = pl.pallas_call(
        kern,
        out_shape=jax.ShapeDtypeStruct((N, L, E), jnp.float32),
        grid=(N,),
        in_specs=[
            pl.BlockSpec((1, L, E), lambda n: (n, 0, 0)),
            pl.BlockSpec((1, S, KDIM), lambda n: (n, 0, 0)),
            pl.BlockSpec((1, S, VDIM), lambda n: (n, 0, 0)),
            pl.BlockSpec((1, 1, S), lambda n: (n, 0, 0)),
            # Weights: constant block index across the grid -> stay resident in VMEM.
            pl.BlockSpec((E, E), lambda n: (0, 0)),
            pl.BlockSpec((1, E), lambda n: (0, 0)),
            pl.BlockSpec((KDIM, E), lambda n: (0, 0)),
            pl.BlockSpec((1, E), lambda n: (0, 0)),
            pl.BlockSpec((VDIM, E), lambda n: (0, 0)),
            pl.BlockSpec((1, E), lambda n: (0, 0)),
            pl.BlockSpec((E, E), lambda n: (0, 0)),
            pl.BlockSpec((1, E), lambda n: (0, 0)),
        ],
        out_specs=pl.BlockSpec((1, L, E), lambda n: (n, 0, 0)),
        compiler_params=pltpu.CompilerParams(
            dimension_semantics=("parallel",)),   # v7x: shard batch over both TCs
    )(qb, kb, vb, bias,
      params["wq"], params["bq"], params["wk"], params["bk"],
      params["wv"], params["bv"], params["wo"], params["bo"])

    return jnp.transpose(out, (1, 0, 2))           # back to (L, N, E)


# -----------------------------------------------------------------------------
# Pure-JAX reference (same math as torch.nn.functional.multi_head_attention_forward
# with separate q/k/v projection weights, dropout=0, need_weights output discarded).
# -----------------------------------------------------------------------------
def reference_forward(params, query, key, value, key_padding_mask=None):
    L, N, E = query.shape
    S = key.shape[0]
    d = E // NUM_HEADS

    qp = (query @ params["wq"] + params["bq"]) * (1.0 / math.sqrt(d))   # (L, N, E)
    kp = key @ params["wk"] + params["bk"]                              # (S, N, E)
    vp = value @ params["wv"] + params["bv"]                            # (S, N, E)

    qh = qp.reshape(L, N, NUM_HEADS, d).transpose(1, 2, 0, 3)           # (N, H, L, d)
    kh = kp.reshape(S, N, NUM_HEADS, d).transpose(1, 2, 0, 3)           # (N, H, S, d)
    vh = vp.reshape(S, N, NUM_HEADS, d).transpose(1, 2, 0, 3)           # (N, H, S, d)

    s = jnp.einsum('nhld,nhsd->nhls', qh, kh)
    if key_padding_mask is not None:
        s = s + jnp.where(key_padding_mask, NEG_INF, 0.0)[:, None, None, :]
    a = jax.nn.softmax(s, axis=-1)
    ctx = jnp.einsum('nhls,nhsd->nhld', a, vh)                          # (N, H, L, d)
    ctx = ctx.transpose(2, 0, 1, 3).reshape(L, N, E)
    return ctx @ params["wo"] + params["bo"]


# -----------------------------------------------------------------------------
# Deterministic synthetic parameters (no checkpoint). Stored (in_dim, out_dim).
# -----------------------------------------------------------------------------
def init_params(key, scale=0.05):
    ks = jax.random.split(key, 8)

    def w(k, din, dout):
        return jax.random.normal(k, (din, dout), jnp.float32) * scale

    def b(k, dout):
        return jax.random.normal(k, (1, dout), jnp.float32) * scale

    return {
        "wq": w(ks[0], EMBED_DIM, EMBED_DIM), "bq": b(ks[1], EMBED_DIM),
        "wk": w(ks[2], KDIM, EMBED_DIM),      "bk": b(ks[3], EMBED_DIM),
        "wv": w(ks[4], VDIM, EMBED_DIM),      "bv": b(ks[5], EMBED_DIM),
        "wo": w(ks[6], EMBED_DIM, EMBED_DIM), "bo": b(ks[7], EMBED_DIM),
    }


# -----------------------------------------------------------------------------
if __name__ == "__main__":
    L, S, N = 16, 32, 2          # small query len / key len / batch

    params = init_params(jax.random.PRNGKey(42))

    key0 = jax.random.PRNGKey(0)
    kq, kk, kv, km = jax.random.split(key0, 4)
    query = jax.random.normal(kq, (L, N, EMBED_DIM), jnp.float32)
    key_in = jax.random.normal(kk, (S, N, KDIM), jnp.float32)
    value = jax.random.normal(kv, (S, N, VDIM), jnp.float32)
    key_padding_mask = jax.random.uniform(km, (N, S)) > 0.75   # True = ignore this key
    key_padding_mask = key_padding_mask.at[:, 0].set(False)    # keep >=1 valid key per row

    out = cross_attention_forward(params, query, key_in, value, key_padding_mask)
    jax.block_until_ready(out)

    ref = reference_forward(params, query, key_in, value, key_padding_mask)
    assert out.shape == (L, N, EMBED_DIM)
    np.testing.assert_allclose(np.asarray(out), np.asarray(ref), rtol=2e-3, atol=2e-3)

    print("KERNEL_OK")
</pallas_src>

<mosaic_0001>
module attributes {stable_mosaic.version = 11 : i64} {
  func.func @mha_kernel(%arg0: i32, %arg1: memref<1x16x512xf32, #tpu.memory_space<vmem>>, %arg2: memref<1x32x128xf32, #tpu.memory_space<vmem>>, %arg3: memref<1x32x128xf32, #tpu.memory_space<vmem>>, %arg4: memref<1x1x32xf32, #tpu.memory_space<vmem>>, %arg5: memref<512x512xf32, #tpu.memory_space<vmem>>, %arg6: memref<1x512xf32, #tpu.memory_space<vmem>>, %arg7: memref<128x512xf32, #tpu.memory_space<vmem>>, %arg8: memref<1x512xf32, #tpu.memory_space<vmem>>, %arg9: memref<128x512xf32, #tpu.memory_space<vmem>>, %arg10: memref<1x512xf32, #tpu.memory_space<vmem>>, %arg11: memref<512x512xf32, #tpu.memory_space<vmem>>, %arg12: memref<1x512xf32, #tpu.memory_space<vmem>>, %arg13: memref<1x16x512xf32, #tpu.memory_space<vmem>>) attributes {dimension_semantics = [#tpu.dimension_semantics<parallel>], iteration_bounds = array<i64: 2>, scalar_prefetch = 0 : i64, scratch_operands = 0 : i64, tpu.core_type = #tpu.core_type<tc>, window_params = [{transform_indices = @transform_0, window_bounds = array<i64: 1, 16, 512>}, {transform_indices = @transform_1, window_bounds = array<i64: 1, 32, 128>}, {transform_indices = @transform_2, window_bounds = array<i64: 1, 32, 128>}, {transform_indices = @transform_3, window_bounds = array<i64: 1, 1, 32>}, {pipeline_mode = #tpu.pipeline_mode<synchronous>, transform_indices = @transform_4, window_bounds = array<i64: 512, 512>}, {pipeline_mode = #tpu.pipeline_mode<synchronous>, transform_indices = @transform_5, window_bounds = array<i64: 1, 512>}, {pipeline_mode = #tpu.pipeline_mode<synchronous>, transform_indices = @transform_6, window_bounds = array<i64: 128, 512>}, {pipeline_mode = #tpu.pipeline_mode<synchronous>, transform_indices = @transform_7, window_bounds = array<i64: 1, 512>}, {pipeline_mode = #tpu.pipeline_mode<synchronous>, transform_indices = @transform_8, window_bounds = array<i64: 128, 512>}, {pipeline_mode = #tpu.pipeline_mode<synchronous>, transform_indices = @transform_9, window_bounds = array<i64: 1, 512>}, {pipeline_mode = #tpu.pipeline_mode<synchronous>, transform_indices = @transform_10, window_bounds = array<i64: 512, 512>}, {pipeline_mode = #tpu.pipeline_mode<synchronous>, transform_indices = @transform_11, window_bounds = array<i64: 1, 512>}, {transform_indices = @transform_12, window_bounds = array<i64: 1, 16, 512>}]} {
    %c0 = arith.constant 0 : index
    %c0_0 = arith.constant 0 : index
    %c0_1 = arith.constant 0 : index
    %0 = vector.load %arg1[%c0, %c0_0, %c0_1] : memref<1x16x512xf32, #tpu.memory_space<vmem>>, vector<1x16x512xf32>
    %1 = vector.shape_cast %0 : vector<1x16x512xf32> to vector<16x512xf32>
    %c0_2 = arith.constant 0 : index
    %c0_3 = arith.constant 0 : index
    %c0_4 = arith.constant 0 : index
    %2 = vector.load %arg2[%c0_2, %c0_3, %c0_4] : memref<1x32x128xf32, #tpu.memory_space<vmem>>, vector<1x32x128xf32>
    %3 = vector.shape_cast %2 : vector<1x32x128xf32> to vector<32x128xf32>
    %c0_5 = arith.constant 0 : index
    %c0_6 = arith.constant 0 : index
    %c0_7 = arith.constant 0 : index
    %4 = vector.load %arg3[%c0_5, %c0_6, %c0_7] : memref<1x32x128xf32, #tpu.memory_space<vmem>>, vector<1x32x128xf32>
    %5 = vector.shape_cast %4 : vector<1x32x128xf32> to vector<32x128xf32>
    %c0_8 = arith.constant 0 : index
    %c0_9 = arith.constant 0 : index
    %6 = vector.load %arg5[%c0_8, %c0_9] : memref<512x512xf32, #tpu.memory_space<vmem>>, vector<512x512xf32>
    %cst = arith.constant dense<0.000000e+00> : vector<16x512xf32>
    %7 = tpu.matmul %1, %6, %cst {dimension_numbers = #tpu.dot_dimension_numbers<[1], [0], [0], [1], [0, 0, 1, 1], [], []>} : vector<16x512xf32>, vector<512x512xf32>, vector<16x512xf32> -> vector<16x512xf32>
    %c0_10 = arith.constant 0 : index
    %c0_11 = arith.constant 0 : index
    %8 = vector.load %arg6[%c0_10, %c0_11] : memref<1x512xf32, #tpu.memory_space<vmem>>, vector<1x512xf32>
    %9 = vector.broadcast %8 : vector<1x512xf32> to vector<16x512xf32>
    %10 = arith.addf %7, %9 : vector<16x512xf32>
    %cst_12 = arith.constant 0.0883883461 : f32
    %11 = vector.broadcast %cst_12 : f32 to vector<16x512xf32>
    %12 = arith.mulf %10, %11 : vector<16x512xf32>
    %c0_13 = arith.constant 0 : index
    %c0_14 = arith.constant 0 : index
    %13 = vector.load %arg7[%c0_13, %c0_14] : memref<128x512xf32, #tpu.memory_space<vmem>>, vector<128x512xf32>
    %cst_15 = arith.constant dense<0.000000e+00> : vector<32x512xf32>
    %14 = tpu.matmul %3, %13, %cst_15 {dimension_numbers = #tpu.dot_dimension_numbers<[1], [0], [0], [1], [0, 0, 1, 1], [], []>} : vector<32x128xf32>, vector<128x512xf32>, vector<32x512xf32> -> vector<32x512xf32>
    %c0_16 = arith.constant 0 : index
    %c0_17 = arith.constant 0 : index
    %15 = vector.load %arg8[%c0_16, %c0_17] : memref<1x512xf32, #tpu.memory_space<vmem>>, vector<1x512xf32>
    %16 = vector.broadcast %15 : vector<1x512xf32> to vector<32x512xf32>
    %17 = arith.addf %14, %16 : vector<32x512xf32>
    %c0_18 = arith.constant 0 : index
    %c0_19 = arith.constant 0 : index
    %18 = vector.load %arg9[%c0_18, %c0_19] : memref<128x512xf32, #tpu.memory_space<vmem>>, vector<128x512xf32>
    %cst_20 = arith.constant dense<0.000000e+00> : vector<32x512xf32>
    %19 = tpu.matmul %5, %18, %cst_20 {dimension_numbers = #tpu.dot_dimension_numbers<[1], [0], [0], [1], [0, 0, 1, 1], [], []>} : vector<32x128xf32>, vector<128x512xf32>, vector<32x512xf32> -> vector<32x512xf32>
    %c0_21 = arith.constant 0 : index
    %c0_22 = arith.constant 0 : index
    %20 = vector.load %arg10[%c0_21, %c0_22] : memref<1x512xf32, #tpu.memory_space<vmem>>, vector<1x512xf32>
    %21 = vector.broadcast %20 : vector<1x512xf32> to vector<32x512xf32>
    %22 = arith.addf %19, %21 : vector<32x512xf32>
    %c0_23 = arith.constant 0 : index
    %c0_24 = arith.constant 0 : index
    %c0_25 = arith.constant 0 : index
    %23 = vector.load %arg4[%c0_23, %c0_24, %c0_25] : memref<1x1x32xf32, #tpu.memory_space<vmem>>, vector<1x1x32xf32>
    %24 = vector.shape_cast %23 : vector<1x1x32xf32> to vector<1x32xf32>
    %25 = vector.extract_strided_slice %12 {offsets = [0, 0], sizes = [16, 128], strides = [1, 1]} : vector<16x512xf32> to vector<16x128xf32>
    %26 = vector.extract_strided_slice %17 {offsets = [0, 0], sizes = [32, 128], strides = [1, 1]} : vector<32x512xf32> to vector<32x128xf32>
    %27 = vector.extract_strided_slice %22 {offsets = [0, 0], sizes = [32, 128], strides = [1, 1]} : vector<32x512xf32> to vector<32x128xf32>
    %cst_26 = arith.constant dense<0.000000e+00> : vector<16x32xf32>
    %28 = tpu.matmul %25, %26, %cst_26 {dimension_numbers = #tpu.dot_dimension_numbers<[1], [1], [0], [0], [0, 0, 1, 0], [], []>} : vector<16x128xf32>, vector<32x128xf32>, vector<16x32xf32> -> vector<16x32xf32>
    %29 = vector.broadcast %24 : vector<1x32xf32> to vector<16x32xf32>
    %30 = arith.addf %28, %29 : vector<16x32xf32>
    %cst_27 = arith.constant dense<0xFF800000> : vector<16xf32>
    %31 = vector.multi_reduction <maximumf>, %30, %cst_27 [1] : vector<16x32xf32> to vector<16xf32>
    %32 = vector.shape_cast %31 : vector<16xf32> to vector<16x1xf32>
    %33 = vector.broadcast %32 : vector<16x1xf32> to vector<16x32xf32>
    %34 = arith.subf %30, %33 : vector<16x32xf32>
    %35 = math.exp %34 : vector<16x32xf32>
    %cst_28 = arith.constant dense<0.000000e+00> : vector<16xf32>
    %36 = vector.multi_reduction <add>, %35, %cst_28 [1] : vector<16x32xf32> to vector<16xf32>
    %37 = vector.shape_cast %36 : vector<16xf32> to vector<16x1xf32>
    %38 = vector.broadcast %37 : vector<16x1xf32> to vector<16x32xf32>
    %39 = arith.divf %35, %38 : vector<16x32xf32>
    %cst_29 = arith.constant dense<0.000000e+00> : vector<16x128xf32>
    %40 = tpu.matmul %39, %27, %cst_29 {dimension_numbers = #tpu.dot_dimension_numbers<[1], [0], [0], [1], [0, 0, 1, 1], [], []>} : vector<16x32xf32>, vector<32x128xf32>, vector<16x128xf32> -> vector<16x128xf32>
    %41 = vector.extract_strided_slice %12 {offsets = [0, 128], sizes = [16, 128], strides = [1, 1]} : vector<16x512xf32> to vector<16x128xf32>
    %42 = vector.extract_strided_slice %17 {offsets = [0, 128], sizes = [32, 128], strides = [1, 1]} : vector<32x512xf32> to vector<32x128xf32>
    %43 = vector.extract_strided_slice %22 {offsets = [0, 128], sizes = [32, 128], strides = [1, 1]} : vector<32x512xf32> to vector<32x128xf32>
    %cst_30 = arith.constant dense<0.000000e+00> : vector<16x32xf32>
    %44 = tpu.matmul %41, %42, %cst_30 {dimension_numbers = #tpu.dot_dimension_numbers<[1], [1], [0], [0], [0, 0, 1, 0], [], []>} : vector<16x128xf32>, vector<32x128xf32>, vector<16x32xf32> -> vector<16x32xf32>
    %45 = vector.broadcast %24 : vector<1x32xf32> to vector<16x32xf32>
    %46 = arith.addf %44, %45 : vector<16x32xf32>
    %cst_31 = arith.constant dense<0xFF800000> : vector<16xf32>
    %47 = vector.multi_reduction <maximumf>, %46, %cst_31 [1] : vector<16x32xf32> to vector<16xf32>
    %48 = vector.shape_cast %47 : vector<16xf32> to vector<16x1xf32>
    %49 = vector.broadcast %48 : vector<16x1xf32> to vector<16x32xf32>
    %50 = arith.subf %46, %49 : vector<16x32xf32>
    %51 = math.exp %50 : vector<16x32xf32>
    %cst_32 = arith.constant dense<0.000000e+00> : vector<16xf32>
    %52 = vector.multi_reduction <add>, %51, %cst_32 [1] : vector<16x32xf32> to vector<16xf32>
    %53 = vector.shape_cast %52 : vector<16xf32> to vector<16x1xf32>
    %54 = vector.broadcast %53 : vector<16x1xf32> to vector<16x32xf32>
    %55 = arith.divf %51, %54 : vector<16x32xf32>
    %cst_33 = arith.constant dense<0.000000e+00> : vector<16x128xf32>
    %56 = tpu.matmul %55, %43, %cst_33 {dimension_numbers = #tpu.dot_dimension_numbers<[1], [0], [0], [1], [0, 0, 1, 1], [], []>} : vector<16x32xf32>, vector<32x128xf32>, vector<16x128xf32> -> vector<16x128xf32>
    %57 = vector.extract_strided_slice %12 {offsets = [0, 256], sizes = [16, 128], strides = [1, 1]} : vector<16x512xf32> to vector<16x128xf32>
    %58 = vector.extract_strided_slice %17 {offsets = [0, 256], sizes = [32, 128], strides = [1, 1]} : vector<32x512xf32> to vector<32x128xf32>
    %59 = vector.extract_strided_slice %22 {offsets = [0, 256], sizes = [32, 128], strides = [1, 1]} : vector<32x512xf32> to vector<32x128xf32>
    %cst_34 = arith.constant dense<0.000000e+00> : vector<16x32xf32>
    %60 = tpu.matmul %57, %58, %cst_34 {dimension_numbers = #tpu.dot_dimension_numbers<[1], [1], [0], [0], [0, 0, 1, 0], [], []>} : vector<16x128xf32>, vector<32x128xf32>, vector<16x32xf32> -> vector<16x32xf32>
    %61 = vector.broadcast %24 : vector<1x32xf32> to vector<16x32xf32>
    %62 = arith.addf %60, %61 : vector<16x32xf32>
    %cst_35 = arith.constant dense<0xFF800000> : vector<16xf32>
    %63 = vector.multi_reduction <maximumf>, %62, %cst_35 [1] : vector<16x32xf32> to vector<16xf32>
    %64 = vector.shape_cast %63 : vector<16xf32> to vector<16x1xf32>
    %65 = vector.broadcast %64 : vector<16x1xf32> to vector<16x32xf32>
    %66 = arith.subf %62, %65 : vector<16x32xf32>
    %67 = math.exp %66 : vector<16x32xf32>
    %cst_36 = arith.constant dense<0.000000e+00> : vector<16xf32>
    %68 = vector.multi_reduction <add>, %67, %cst_36 [1] : vector<16x32xf32> to vector<16xf32>
    %69 = vector.shape_cast %68 : vector<16xf32> to vector<16x1xf32>
    %70 = vector.broadcast %69 : vector<16x1xf32> to vector<16x32xf32>
    %71 = arith.divf %67, %70 : vector<16x32xf32>
    %cst_37 = arith.constant dense<0.000000e+00> : vector<16x128xf32>
    %72 = tpu.matmul %71, %59, %cst_37 {dimension_numbers = #tpu.dot_dimension_numbers<[1], [0], [0], [1], [0, 0, 1, 1], [], []>} : vector<16x32xf32>, vector<32x128xf32>, vector<16x128xf32> -> vector<16x128xf32>
    %73 = vector.extract_strided_slice %12 {offsets = [0, 384], sizes = [16, 128], strides = [1, 1]} : vector<16x512xf32> to vector<16x128xf32>
    %74 = vector.extract_strided_slice %17 {offsets = [0, 384], sizes = [32, 128], strides = [1, 1]} : vector<32x512xf32> to vector<32x128xf32>
    %75 = vector.extract_strided_slice %22 {offsets = [0, 384], sizes = [32, 128], strides = [1, 1]} : vector<32x512xf32> to vector<32x128xf32>
    %cst_38 = arith.constant dense<0.000000e+00> : vector<16x32xf32>
    %76 = tpu.matmul %73, %74, %cst_38 {dimension_numbers = #tpu.dot_dimension_numbers<[1], [1], [0], [0], [0, 0, 1, 0], [], []>} : vector<16x128xf32>, vector<32x128xf32>, vector<16x32xf32> -> vector<16x32xf32>
    %77 = vector.broadcast %24 : vector<1x32xf32> to vector<16x32xf32>
    %78 = arith.addf %76, %77 : vector<16x32xf32>
    %cst_39 = arith.constant dense<0xFF800000> : vector<16xf32>
    %79 = vector.multi_reduction <maximumf>, %78, %cst_39 [1] : vector<16x32xf32> to vector<16xf32>
    %80 = vector.shape_cast %79 : vector<16xf32> to vector<16x1xf32>
    %81 = vector.broadcast %80 : vector<16x1xf32> to vector<16x32xf32>
    %82 = arith.subf %78, %81 : vector<16x32xf32>
    %83 = math.exp %82 : vector<16x32xf32>
    %cst_40 = arith.constant dense<0.000000e+00> : vector<16xf32>
    %84 = vector.multi_reduction <add>, %83, %cst_40 [1] : vector<16x32xf32> to vector<16xf32>
    %85 = vector.shape_cast %84 : vector<16xf32> to vector<16x1xf32>
    %86 = vector.broadcast %85 : vector<16x1xf32> to vector<16x32xf32>
    %87 = arith.divf %83, %86 : vector<16x32xf32>
    %cst_41 = arith.constant dense<0.000000e+00> : vector<16x128xf32>
    %88 = tpu.matmul %87, %75, %cst_41 {dimension_numbers = #tpu.dot_dimension_numbers<[1], [0], [0], [1], [0, 0, 1, 1], [], []>} : vector<16x32xf32>, vector<32x128xf32>, vector<16x128xf32> -> vector<16x128xf32>
    %89 = tpu.concatenate %40, %56, %72, %88 in 1 : vector<16x128xf32>, vector<16x128xf32>, vector<16x128xf32>, vector<16x128xf32> -> vector<16x512xf32>
    %c0_42 = arith.constant 0 : index
    %c0_43 = arith.constant 0 : index
    %90 = vector.load %arg11[%c0_42, %c0_43] : memref<512x512xf32, #tpu.memory_space<vmem>>, vector<512x512xf32>
    %cst_44 = arith.constant dense<0.000000e+00> : vector<16x512xf32>
    %91 = tpu.matmul %89, %90, %cst_44 {dimension_numbers = #tpu.dot_dimension_numbers<[1], [0], [0], [1], [0, 0, 1, 1], [], []>} : vector<16x512xf32>, vector<512x512xf32>, vector<16x512xf32> -> vector<16x512xf32>
    %c0_45 = arith.constant 0 : index
    %c0_46 = arith.constant 0 : index
    %92 = vector.load %arg12[%c0_45, %c0_46] : memref<1x512xf32, #tpu.memory_space<vmem>>, vector<1x512xf32>
    %93 = vector.broadcast %92 : vector<1x512xf32> to vector<16x512xf32>
    %94 = arith.addf %91, %93 : vector<16x512xf32>
    %c0_47 = arith.constant 0 : index
    %c0_48 = arith.constant 0 : index
    %c0_49 = arith.constant 0 : index
    %95 = vector.load %arg13[%c0_47, %c0_48, %c0_49] : memref<1x16x512xf32, #tpu.memory_space<vmem>>, vector<1x16x512xf32>
    %96 = vector.shape_cast %95 : vector<1x16x512xf32> to vector<16x512xf32>
    %97 = vector.shape_cast %94 : vector<16x512xf32> to vector<1x16x512xf32>
    tpu.vector_store %arg13[%c0_47, %c0_48, %c0_49], %97 {strides = array<i32>} : memref<1x16x512xf32, #tpu.memory_space<vmem>>, vector<1x16x512xf32>,
    return
  }
  func.func @transform_0(%arg0: i32) -> (i32, i32, i32) {
    %c0_i32 = arith.constant 0 : i32
    %c0_i32_0 = arith.constant 0 : i32
    %c0_i32_1 = arith.constant 0 : i32
    return %arg0, %c0_i32, %c0_i32_0 : i32, i32, i32
  }
  func.func @transform_1(%arg0: i32) -> (i32, i32, i32) {
    %c0_i32 = arith.constant 0 : i32
    %c0_i32_0 = arith.constant 0 : i32
    %c0_i32_1 = arith.constant 0 : i32
    return %arg0, %c0_i32, %c0_i32_0 : i32, i32, i32
  }
  func.func @transform_2(%arg0: i32) -> (i32, i32, i32) {
    %c0_i32 = arith.constant 0 : i32
    %c0_i32_0 = arith.constant 0 : i32
    %c0_i32_1 = arith.constant 0 : i32
    return %arg0, %c0_i32, %c0_i32_0 : i32, i32, i32
  }
  func.func @transform_3(%arg0: i32) -> (i32, i32, i32) {
    %c0_i32 = arith.constant 0 : i32
    %c0_i32_0 = arith.constant 0 : i32
    %c0_i32_1 = arith.constant 0 : i32
    return %arg0, %c0_i32, %c0_i32_0 : i32, i32, i32
  }
  func.func @transform_4(%arg0: i32) -> (i32, i32) {
    %c0_i32 = arith.constant 0 : i32
    %c0_i32_0 = arith.constant 0 : i32
    %c0_i32_1 = arith.constant 0 : i32
    return %c0_i32, %c0_i32_0 : i32, i32
  }
  func.func @transform_5(%arg0: i32) -> (i32, i32) {
    %c0_i32 = arith.constant 0 : i32
    %c0_i32_0 = arith.constant 0 : i32
    %c0_i32_1 = arith.constant 0 : i32
    return %c0_i32, %c0_i32_0 : i32, i32
  }
  func.func @transform_6(%arg0: i32) -> (i32, i32) {
    %c0_i32 = arith.constant 0 : i32
    %c0_i32_0 = arith.constant 0 : i32
    %c0_i32_1 = arith.constant 0 : i32
    return %c0_i32, %c0_i32_0 : i32, i32
  }
  func.func @transform_7(%arg0: i32) -> (i32, i32) {
    %c0_i32 = arith.constant 0 : i32
    %c0_i32_0 = arith.constant 0 : i32
    %c0_i32_1 = arith.constant 0 : i32
    return %c0_i32, %c0_i32_0 : i32, i32
  }
  func.func @transform_8(%arg0: i32) -> (i32, i32) {
    %c0_i32 = arith.constant 0 : i32
    %c0_i32_0 = arith.constant 0 : i32
    %c0_i32_1 = arith.constant 0 : i32
    return %c0_i32, %c0_i32_0 : i32, i32
  }
  func.func @transform_9(%arg0: i32) -> (i32, i32) {
    %c0_i32 = arith.constant 0 : i32
    %c0_i32_0 = arith.constant 0 : i32
    %c0_i32_1 = arith.constant 0 : i32
    return %c0_i32, %c0_i32_0 : i32, i32
  }
  func.func @transform_10(%arg0: i32) -> (i32, i32) {
    %c0_i32 = arith.constant 0 : i32
    %c0_i32_0 = arith.constant 0 : i32
    %c0_i32_1 = arith.constant 0 : i32
    return %c0_i32, %c0_i32_0 : i32, i32
  }
  func.func @transform_11(%arg0: i32) -> (i32, i32) {
    %c0_i32 = arith.constant 0 : i32
    %c0_i32_0 = arith.constant 0 : i32
    %c0_i32_1 = arith.constant 0 : i32
    return %c0_i32, %c0_i32_0 : i32, i32
  }
  func.func @transform_12(%arg0: i32) -> (i32, i32, i32) {
    %c0_i32 = arith.constant 0 : i32
    %c0_i32_0 = arith.constant 0 : i32
    %c0_i32_1 = arith.constant 0 : i32
    return %arg0, %c0_i32, %c0_i32_0 : i32, i32, i32
  }
}

</mosaic_0001>

<bundles_post_ra>
// kernel: tpu_custom_call.1
= control target key start
LH: loop header
LB: loop body
LE: loop exit
PB: predicated region body
PF: predicated region fallthrough
CT: control target
= control target key end

     0   :  { %s5313_s0 = inlined_call_operand.hbm [shape: f32[2,16,512], index: 0, kind: input, shape index: {}]   ;;  %s5314_s1 = inlined_call_operand.hbm [shape: f32[2,32,128], index: 1, kind: input, shape index: {}]   ;;  %s5315_s2 = inlined_call_operand.hbm [shape: f32[2,32,128], index: 2, kind: input, shape index: {}]   ;;  %s5316_s3 = inlined_call_operand.vmem [shape: f32[2,1,32], index: 3, kind: input, shape index: {}]   ;;  %s5317_s4 = inlined_call_operand.hbm [shape: f32[512,512], index: 4, kind: input, shape index: {}]   ;;  %s5318_s5 = inlined_call_operand.vmem [shape: f32[1,512], index: 5, kind: input, shape index: {}]   ;;  %s5319_s6 = inlined_call_operand.hbm [shape: f32[128,512], index: 6, kind: input, shape index: {}]   ;;  %s5320_s7 = inlined_call_operand.vmem [shape: f32[1,512], index: 7, kind: input, shape index: {}]   ;;  %s5321_s8 = inlined_call_operand.hbm [shape: f32[128,512], index: 8, kind: input, shape index: {}]   ;;  %s5322_s9 = inlined_call_operand.vmem [shape: f32[1,512], index: 9, kind: input, shape index: {}]   ;;  %s5323_s10 = inlined_call_operand.hbm [shape: f32[512,512], index: 10, kind: input, shape index: {}]   ;;  %s5324_s11 = inlined_call_operand.vmem [shape: f32[1,512], index: 11, kind: input, shape index: {}]   ;;  %s5325_s12 = inlined_call_operand.hbm [shape: f32[2,16,512], index: 12, kind: output, shape index: {}]  }
   0x1   :  { %5356 = sst [smem:[#allocation27_spill]] %s5314_s1 }
   0x2   :  { %5357 = sst [smem:[#allocation28_spill]] %s5316_s3 }
   0x3   :  { %5358 = sst [smem:[#allocation29_spill]] %s5317_s4 }
   0x4   :  { %5359 = sst [smem:[#allocation30_spill]] %s5318_s5 }
   0x5   :  { %5360 = sst [smem:[#allocation31_spill]] %s5320_s7 }
   0x6   :  { %5361 = sst [smem:[#allocation32_spill]] %s5321_s8 }
   0x7   :  { %5362 = sst [smem:[#allocation33_spill]] %s5322_s9 }
   0x8   :  { %5363 = sst [smem:[#allocation34_spill]] %s5324_s11 }
   0x9   :  { %5364 = sst [smem:[#allocation35_spill]] %s5325_s12 }
   0xa   :  { %17 = vsyncpa [#allocation3], 0 }
   0xb   :  { %19 = vsyncpa [#allocation3 + $0x1], 0 }
   0xc   :  { %20 = vsyncpa [#allocation6], 0 }
   0xd   :  { %22 = vsyncpa [#allocation6 + $0x1], 0 }
   0xe   :  { %23 = vsyncpa [#allocation9], 0 }
   0xf   :  { %24 = vsyncpa [#allocation12], 0 }
  0x10   :  { %25 = vsyncpa [#allocation4], 0 }
  0x11   :  { %27 = vsyncpa [#allocation4 + $0x1], 0  ;;  %s4624_s21 = smov 0   ;;  %s4626_s22 = smov 0  }
  0x12   :  { %s4628_s23 = smov 0   ;;  %s4630_s24 = smov 0  }
  0x13 LB: > { %5365 = sst [smem:[#allocation20_spill]] %s4530_s21  ;;  %s4645_s25 = sadd.s32 4294967295, %s4542_s24   ;;  %s4542_s24 = sphi %s4630_s24, %s5412_s24   ;;  %s4538_s23 = sphi %s4628_s23, %s5414_s23   ;;  %s4534_s22 = sphi %s4626_s22, %s5416_s22   ;;  %s4530_s21 = sphi %s4624_s21, %s5415_s21  }
  0x14   : > { %5366 = sst [smem:[#allocation21_spill]] %s4538_s23  ;;  %s3210_s26 = sadd.s32 4294967294, %s4542_s24  }
  0x15   : > { %5367 = sst [smem:[#allocation22_spill]] %s4645_s25  ;;  %p53_p0 = scmp.ne.s32.totalorder %s4534_s22, %s4530_s21 }
  0x16   : > { %p5327_p1 = scmp.eq.s32.totalorder %s4645_s25, 0  ;;  %p329_p3 = scmp.eq.s32.totalorder %s3210_s26, 1 }
  0x17   : > { %p3211_p5 = scmp.ge.s32.totalorder %s4542_s24, 1  ;;  %p336_p7 = scmp.lt.s32.totalorder %s4542_s24, 3 }
  0x18   : > { %p4654_p4 = por %p5327_p1, %p53_p0  ;;  %p4659_p6 = por %p329_p3, %p53_p0 }
  0x19   : > { %p4664_p8 = pnand %p3211_p5, %p336_p7  ;;  %s4544_s30 = smov [#allocation8]  }
  0x1a   : > { %s5368_s27 = scalar_select %p4654_p4, 1, 0 }
  0x1b   : > { %s5369_s28 = scalar_select %p4659_p6, 1, 0 }
  0x1c   : > { %s5371_s29 = scalar_select %p4664_p8, 1, 0 }
  0x1d   : > { %5370 = sst [smem:[#allocation23_spill]] %s5369_s28  ;;  %s348_s13 = sshll.u32 %s4544_s30, 4  ;;  %s4668_s13 = int_to_ptr.vmem [resolvable:$true] %s348_s13 }
  0x1e   : > { %p4149_p9 = pneg %p4664_p8  ;;  %s4545_s15 = smov [#allocation11]  }
  0x1f   : > { %s380_s16 = sshll.u32 %s4545_s15, 4  ;;  %s5373_s4 = sld [smem:[#allocation29_spill]]  ;;  %s4679_s16 = int_to_ptr.vmem [resolvable:$true] %s380_s16 }
  0x20   : > { %p4675_p11 = pnand %p4149_p9, %p5327_p1 }
  0x22   : > { %s5372_s14 = scalar_select %p4675_p11, 1, 0 }
  0x23   : > { %p4689_p13 = pneg %p4675_p11 }
  0x25   : > { %s4262_s19 = scalar_lea.hbm %s5373_s4, 32768 }
  0x26   : > { %p4263_p12 = scmp.ne.s32.totalorder %s5373_s4, %s4262_s19  ;;  %p4269_p5 = scmp.lt.u32.totalorder %s4262_s19, %s5373_s4 }
  0x27   : > { %s5374_s30 = scalar_select %p4689_p13, 1, 0 }
  0x28   : > { %p4265_p0 = pnand %p4689_p13, %p4263_p12 }
  0x2a   : > { %p4266_p3 = pneg %p4265_p0 }
  0x2c   : > { %p4271_p7 = pnand %p4269_p5, %p4266_p3 }
  0x2e   : > { %4274 = shalt.err (!%p4271_p7)
}
  0x2f   : > { %s4275_s17 = scalar_lea.vmem %s4668_s13, 32768  ;;  %p4283_p2 = scmp.lt.s32.totalorder %s4668_s13, %s4668_s13 }
  0x30   : > { %p4276_p9 = scmp.ne.s32.totalorder %s4668_s13, %s4275_s17  ;;  %p4284_p6 = scmp.lt.s32.totalorder %s4275_s17, %s4275_s17 }
  0x32   : > { %p4278_p10 = pnand %p4276_p9, %p4689_p13  ;;  %p4285_p12 = por %p4284_p6, %p4283_p2 }
  0x34   : > { %p4279_p1 = pneg %p4278_p10 }
  0x36   : > { %p4286_p0 = pnand %p4285_p12, %p4279_p1 }
  0x38   : > { %4289 = shalt.err (!%p4286_p0)
}
  0x39   : > { %s5330_s18 = smov 512   ;;  %s5332_s28 = smov 32  }
  0x3a   : > { %4152 = dma.hbm_to_vmem [thread:$0]  (!%p4675_p11), %s5373_s4, 32768, %s4668_s13, [#allocation9], %s5330_s18, %s5330_s18, %s5332_s28  }
  0x3b   : > { %s5375_s8 = sld [smem:[#allocation32_spill]] }
  0x41   : > { %s4290_s17 = scalar_lea.hbm %s5375_s8, 8192 }
  0x42   : > { %p4291_p1 = scmp.ne.s32.totalorder %s5375_s8, %s4290_s17  ;;  %p4297_p10 = scmp.lt.u32.totalorder %s4290_s17, %s5375_s8 }
  0x44   : > { %p4293_p2 = pnand %p4291_p1, %p4689_p13 }
  0x46   : > { %p4294_p6 = pneg %p4293_p2 }
  0x48   : > { %p4299_p3 = pnand %p4297_p10, %p4294_p6 }
  0x4a   : > { %4302 = shalt.err (!%p4299_p3)
}
  0x4b   : > { %s4303_s13 = scalar_lea.vmem %s4679_s16, 8192  ;;  %p4311_p12 = scmp.lt.s32.totalorder %s4679_s16, %s4679_s16 }
  0x4c   : > { %p4304_p5 = scmp.ne.s32.totalorder %s4679_s16, %s4303_s13  ;;  %p4312_p0 = scmp.lt.s32.totalorder %s4303_s13, %s4303_s13 }
  0x4e   : > { %p4306_p7 = pnand %p4304_p5, %p4689_p13  ;;  %p4313_p1 = por %p4312_p0, %p4311_p12 }
  0x50   : > { %p4307_p9 = pneg %p4306_p7 }
  0x52   : > { %p4314_p2 = pnand %p4313_p1, %p4307_p9 }
  0x54   : > { %4317 = shalt.err (!%p4314_p2)
}
  0x55   : > { %4158 = dma.hbm_to_vmem [thread:$0]  (!%p4675_p11), %s5375_s8, 8192, %s4679_s16, [#allocation12], %s5330_s18, %s5330_s18, %s5332_s28  }
  0x56   : > { %s4740_s12 = sadd.s32 1, %s4542_s24   ;;  %s40_s21 = sadd.s32 1, %s4538_s23 }
  0x57   : > { %5376 = sst [smem:[#allocation24_spill]] %s4740_s12  ;;  %s37_s19 = ssub.s32 %s4542_s24, %s4740_s12 }
  0x58   : > { %p47_p6 = scmp.ne.s32.totalorder %s4538_s23, %s4534_s22  ;;  %p38_p10 = scmp.eq.s32.totalorder %s37_s19, 0 }
  0x59   : > { %p48_p3 = scmp.eq.s32.totalorder %s4542_s24, 0  ;;  %p5377_p5 = scmp.eq.s32.totalorder %s4645_s25, 1 }
  0x5a   : > { %p4180_p9 = scmp.lt.s32.totalorder %s4542_s24, 2  ;;  %s4759_s15 = sand.u32 1, %s4538_s23  }
  0x5b   : > { %p4750_p7 = por %p5377_p5, %p47_p6  ;;  %p49_p12 = por %p48_p3, %p47_p6 }
  0x5c   : > { %s4756_s26 = scalar_select %p38_p10, %s4538_s23, %s40_s21  }
  0x5d   : > { %s5378_s20 = scalar_select %p4750_p7, 1, 0 }
  0x5e   : > { %5380 = sst [smem:[#allocation26_spill]] %s4756_s26  ;;  %s434_s16 = sand.u32 1, %s4542_s24  }
  0x5f   : > { %5379 = sst [smem:[#allocation25_spill]] %s5378_s20  ;;  %s5334_s17 = sshll.u32 %s4759_s15, 5 }
  0x60   : > { %p4763_p0 = pnand %p4180_p9, %p49_p12  ;;  %s5335_s3 = sshll.u32 %s4542_s24, 9 }
  0x61   : > { %s5382_s1 = sld [smem:[#allocation27_spill]]  ;;  %s438_s21 = scalar_lea.vmem [#allocation5], %s5334_s17 }
  0x62   : > { %s5381_s13 = scalar_select %p4763_p0, 1, 0 }
  0x63   : > { %s445_s28 = sshll.u32 %s438_s21, 4  ;;  %s4779_s4 = scalar_lea.sflag [#allocation6], %s434_s16  ;;  %s4777_s28 = int_to_ptr.vmem [resolvable:$true] %s445_s28 }
  0x64   : > { %p4785_p2 = pneg %p4763_p0 }
  0x66   : > { %s5383_s26 = scalar_select %p4785_p2, 1, 0 }
  0x67   : > { %s4773_s18 = scalar_lea.hbm %s5382_s1, %s5335_s3  ;;  %s4323_s17 = scalar_lea.hbm %s5382_s1, 1024 }
  0x68   : > { %s4318_s8 = scalar_lea.hbm %s4773_s18, 512  ;;  %p4324_p3 = scmp.lt.u32.totalorder %s4773_s18, %s5382_s1 }
  0x69   : > { %p4319_p1 = scmp.ne.s32.totalorder %s4773_s18, %s4318_s8  ;;  %p4325_p5 = scmp.lt.u32.totalorder %s4323_s17, %s4318_s8 }
  0x6a   : > { %p4327_p12 = scmp.lt.u32.totalorder %s4318_s8, %s4773_s18 }
  0x6b   : > { %p4321_p6 = pnand %p4785_p2, %p4319_p1  ;;  %p4326_p9 = por %p4325_p5, %p4324_p3 }
  0x6d   : > { %p4322_p10 = pneg %p4321_p6  ;;  %p4328_p7 = por %p4327_p12, %p4326_p9 }
  0x6f   : > { %p4329_p4 = pnand %p4328_p7, %p4322_p10 }
  0x71   : > { %4332 = shalt.err (!%p4329_p4)
}
  0x72   : > { %s4333_s16 = scalar_lea.vmem %s4777_s28, 512  ;;  %s4548_s11 = smov [#allocation5]  }
  0x73   : > { %p4334_p1 = scmp.ne.s32.totalorder %s4777_s28, %s4333_s16  ;;  %s4338_s19 = sshll.u32 %s4548_s11, 4  ;;  %s4339_s19 = int_to_ptr.vmem [resolvable:$false] %s4338_s19 }
  0x74   : > { %s4340_s3 = scalar_lea.vmem %s4339_s19, 1024  ;;  %p4341_p11 = scmp.lt.s32.totalorder %s4777_s28, %s4339_s19 }
  0x75   : > { %p4336_p6 = pnand %p4334_p1, %p4785_p2  ;;  %p4342_p13 = scmp.lt.s32.totalorder %s4340_s3, %s4333_s16 }
  0x77   : > { %p4337_p8 = pneg %p4336_p6  ;;  %p4343_p3 = por %p4342_p13, %p4341_p11 }
  0x79   : > { %p4344_p5 = pnand %p4343_p3, %p4337_p8 }
  0x7b   : > { %4347 = shalt.err (!%p4344_p5)
}
  0x7c   : > { %s5353_s8 = smov 128   ;;  %s4550_s17 = smov 8  }
  0x7d   : > { %4168 = dma.hbm_to_vmem [thread:$0]  (!%p4763_p0), %s4773_s18, 512, %s4777_s28, %s4779_s4, %s5353_s8, %s5353_s8, %s4550_s17  }
  0x7e   : > { %s5384_s21 = sshll.u32 %s4542_s24, 9  ;;  %s5385_s3 = sshll.u32 %s4759_s15, 5 }
  0x7f   : > { %s4817_s19 = scalar_lea.hbm %s5315_s2, %s5384_s21  ;;  %s459_s1 = scalar_lea.vmem [#allocation7], %s5385_s3 }
  0x80   : > { %s466_s23 = sshll.u32 %s459_s1, 4  ;;  %s4551_s12 = smov [#allocation10]   ;;  %s4821_s23 = int_to_ptr.vmem [resolvable:$true] %s466_s23 }
  0x81   : > { %s364_s20 = sshll.u32 %s4551_s12, 4  ;;  %s4348_s5 = scalar_lea.hbm %s5319_s6, 8192  ;;  %s365_s20 = int_to_ptr.vmem [resolvable:$true] %s364_s20 }
  0x82   : > { %p4349_p4 = scmp.ne.s32.totalorder %s5319_s6, %s4348_s5  ;;  %p5386_p8 = scmp.ne.s32.totalorder %s5374_s30, 0 }
  0x83   : > { %p4355_p7 = scmp.lt.u32.totalorder %s4348_s5, %s5319_s6 }
  0x84   : > { %p4351_p11 = pnand %p4349_p4, %p5386_p8 }
  0x86   : > { %p4352_p13 = pneg %p4351_p11 }
  0x88   : > { %p4357_p10 = pnand %p4355_p7, %p4352_p13 }
  0x8a   : > { %4360 = shalt.err (!%p4357_p10)
}
  0x8b   : > { %s4361_s1 = scalar_lea.vmem %s365_s20, 8192  ;;  %p4369_p6 = scmp.lt.s32.totalorder %s365_s20, %s365_s20 }
  0x8c   : > { %p4362_p9 = scmp.ne.s32.totalorder %s365_s20, %s4361_s1  ;;  %p4370_p3 = scmp.lt.s32.totalorder %s4361_s1, %s4361_s1 }
  0x8e   : > { %p4364_p12 = pnand %p4362_p9, %p5386_p8  ;;  %p4371_p5 = por %p4370_p3, %p4369_p6 }
  0x90   : > { %p4365_p1 = pneg %p4364_p12 }
  0x92   : > { %p4372_p0 = pnand %p4371_p5, %p4365_p1 }
  0x94   : > { %4375 = shalt.err (!%p4372_p0)
}
  0x95   : > { %p5387_p4 = scmp.ne.s32.totalorder %s5372_s14, 0  ;;  %s5388_s7 = smov 32  }
  0x96   : > { %s5389_s9 = smov 512   ;;  %s4552_s12 = smov [#allocation13]  }
  0x97   : > { %4155 = dma.hbm_to_vmem [thread:$0]  (!%p5387_p4), %s5319_s6, 8192, %s365_s20, [#allocation9], %s5389_s9, %s5389_s9, %s5388_s7  }
  0x98   : > { %s396_s11 = sshll.u32 %s4552_s12, 4  ;;  %s3217_s16 = sshll.u32 %s4759_s15, 6  ;;  %s397_s11 = int_to_ptr.vmem [resolvable:$true] %s396_s11 }
  0x99   : > { %s4376_s28 = scalar_lea.hbm %s5323_s10, 32768 }
  0x9a   : > { %p4377_p0 = scmp.ne.s32.totalorder %s5323_s10, %s4376_s28  ;;  %p4383_p7 = scmp.lt.u32.totalorder %s4376_s28, %s5323_s10 }
  0x9c   : > { %p4379_p11 = pnand %p4377_p0, %p5386_p8 }
  0x9e   : > { %p4380_p13 = pneg %p4379_p11 }
  0xa0   : > { %p4385_p10 = pnand %p4383_p7, %p4380_p13 }
  0xa2   : > { %4388 = shalt.err (!%p4385_p10)
}
  0xa3   : > { %s4389_s20 = scalar_lea.vmem %s397_s11, 32768  ;;  %p4397_p6 = scmp.lt.s32.totalorder %s397_s11, %s397_s11 }
  0xa4   : > { %p4390_p9 = scmp.ne.s32.totalorder %s397_s11, %s4389_s20  ;;  %p4398_p3 = scmp.lt.s32.totalorder %s4389_s20, %s4389_s20 }
  0xa6   : > { %p4392_p12 = pnand %p4390_p9, %p5386_p8  ;;  %p4399_p5 = por %p4398_p3, %p4397_p6 }
  0xa8   : > { %p4393_p1 = pneg %p4392_p12 }
  0xaa   : > { %p4400_p2 = pnand %p4399_p5, %p4393_p1 }
  0xac   : > { %4403 = shalt.err (!%p4400_p2)
}
  0xad   : > { %4161 = dma.hbm_to_vmem [thread:$0]  (!%p5387_p4), %s5323_s10, 32768, %s397_s11, [#allocation12], %s5389_s9, %s5389_s9, %s5388_s7  }
  0xae   : > { %s3249_s30 = sshll.u32 %s4542_s24, 10  ;;  %s417_s14 = scalar_lea.vmem [#allocation2], %s3217_s16 }
  0xaf   : > { %s4870_s18 = scalar_lea.hbm %s5313_s0, %s3249_s30  ;;  %s424_s28 = sshll.u32 %s417_s14, 4  ;;  %s4872_s28 = int_to_ptr.vmem [resolvable:$true] %s424_s28 }
  0xb0   : > { %s414_s21 = scalar_lea.sflag [#allocation3], %s4759_s15  ;;  %s4404_s1 = scalar_lea.hbm %s4870_s18, 1024 }
  0xb1   : > { %p4405_p2 = scmp.ne.s32.totalorder %s4870_s18, %s4404_s1  ;;  %p5390_p8 = scmp.ne.s32.totalorder %s5383_s26, 0 }
  0xb2   : > { %s4409_s20 = scalar_lea.hbm %s5313_s0, 2048  ;;  %p4410_p11 = scmp.lt.u32.totalorder %s4870_s18, %s5313_s0 }
  0xb3   : > { %p4407_p0 = pnand %p4405_p2, %p5390_p8  ;;  %p4411_p13 = scmp.lt.u32.totalorder %s4409_s20, %s4404_s1 }
  0xb4   : > { %p4413_p10 = scmp.lt.u32.totalorder %s4404_s1, %s4870_s18 }
  0xb5   : > { %p4408_p4 = pneg %p4407_p0  ;;  %p4412_p7 = por %p4411_p13, %p4410_p11 }
  0xb7   : > { %p4414_p9 = por %p4413_p10, %p4412_p7 }
  0xb9   : > { %p4415_p12 = pnand %p4414_p9, %p4408_p4 }
  0xbb   : > { %4418 = shalt.err (!%p4415_p12)
}
  0xbc   : > { %s4419_s16 = scalar_lea.vmem %s4872_s28, 1024  ;;  %s4553_s30 = smov [#allocation2]  }
  0xbd   : > { %p4420_p1 = scmp.ne.s32.totalorder %s4872_s28, %s4419_s16  ;;  %s4424_s12 = sshll.u32 %s4553_s30, 4  ;;  %s4425_s12 = int_to_ptr.vmem [resolvable:$false] %s4424_s12 }
  0xbe   : > { %s4426_s3 = scalar_lea.vmem %s4425_s12, 2048  ;;  %p4427_p5 = scmp.lt.s32.totalorder %s4872_s28, %s4425_s12 }
  0xbf   : > { %p4422_p6 = pnand %p4420_p1, %p5390_p8  ;;  %p4428_p2 = scmp.lt.s32.totalorder %s4426_s3, %s4419_s16 }
  0xc1   : > { %p4423_p3 = pneg %p4422_p6  ;;  %p4429_p0 = por %p4428_p2, %p4427_p5 }
  0xc3   : > { %p4430_p11 = pnand %p4429_p0, %p4423_p3 }
  0xc5   : > { %4433 = shalt.err (!%p4430_p11)
}
  0xc6   : > { %p5391_p4 = scmp.ne.s32.totalorder %s5381_s13, 0  ;;  %s4434_s14 = scalar_lea.hbm %s4817_s19, 512 }
  0xc7   : > { %p4435_p13 = scmp.ne.s32.totalorder %s4817_s19, %s4434_s14  ;;  %s4439_s25 = scalar_lea.hbm %s5315_s2, 1024 }
  0xc8   : > { %4165 = dma.hbm_to_vmem [thread:$0]  (!%p5391_p4), %s4870_s18, 1024, %s4872_s28, %s414_s21, %s5389_s9, %s5389_s9, %s5388_s7  }
  0xc9   : > { %p4437_p7 = pnand %p4435_p13, %p5390_p8  ;;  %p4440_p9 = scmp.lt.u32.totalorder %s4817_s19, %s5315_s2 }
  0xca   : > { %p4441_p12 = scmp.lt.u32.totalorder %s4439_s25, %s4434_s14  ;;  %p4443_p6 = scmp.lt.u32.totalorder %s4434_s14, %s4817_s19 }
  0xcb   : > { %p4438_p10 = pneg %p4437_p7 }
  0xcc   : > { %p4442_p1 = por %p4441_p12, %p4440_p9 }
  0xce   : > { %p4444_p3 = por %p4443_p6, %p4442_p1 }
  0xd0   : > { %p4445_p5 = pnand %p4444_p3, %p4438_p10 }
  0xd2   : > { %4448 = shalt.err (!%p4445_p5)
}
  0xd3   : > { %s4449_s15 = scalar_lea.vmem %s4821_s23, 512  ;;  %s4554_s7 = smov [#allocation7]  }
  0xd4   : > { %p4450_p2 = scmp.ne.s32.totalorder %s4821_s23, %s4449_s15  ;;  %s4454_s9 = sshll.u32 %s4554_s7, 4  ;;  %s4455_s9 = int_to_ptr.vmem [resolvable:$false] %s4454_s9 }
  0xd5   : > { %s4456_s18 = scalar_lea.vmem %s4455_s9, 1024  ;;  %p4457_p13 = scmp.lt.s32.totalorder %s4821_s23, %s4455_s9 }
  0xd6   : > { %p4452_p0 = pnand %p4450_p2, %p5390_p8  ;;  %p4458_p7 = scmp.lt.s32.totalorder %s4456_s18, %s4449_s15 }
  0xd8   : > { %p4453_p11 = pneg %p4452_p0  ;;  %p4459_p9 = por %p4458_p7, %p4457_p13 }
  0xda   : > { %p4460_p12 = pnand %p4459_p9, %p4453_p11 }
  0xdc   : > { %4463 = shalt.err (!%p4460_p12)
}
  0xdd   : > { %s5392_s28 = smov 128   ;;  %p5393_p8 = scmp.ne.s32.totalorder %s5371_s29, 0 }
  0xde   : > { %4171 = dma.hbm_to_vmem [thread:$0]  (!%p5391_p4), %s4817_s19, 512, %s4821_s23, %s4779_s4, %s5392_s28, %s5392_s28, %s4550_s17  }
  0xdf   : > { %484 = sbr.rel (%p5393_p8) target bundleno = 2736 (0xab0), region = 68  ;;  %s4929_s26 = sand.u32 (!%p5393_p8), 1, %s4534_s22  }
  0xe0   : > { %s3227_s21 = sshll.u32 (!%p5393_p8), %s4929_s26, 6  ;;  %s487_s5 = scalar_lea.sflag (!%p5393_p8), [#allocation3], %s4929_s26 }
  0xe1   : > { %s4935_s13 = scalar_lea.vmem (!%p5393_p8), [#allocation2], %s3227_s21  ;;  %p5394_p10 = scmp.ne.s32.totalorder (!%p5393_p8), %s5368_s27, 0 }
  0xe6   : > { %4509 = dma.done.wait (%p5394_p10), %s487_s5, 1024  }
  0xe7   : > { %4511 = vsyncadd (%p5394_p10), %s487_s5, 4294966272  ;;  %s5395_s4 = sld [smem:[#allocation22_spill]]  ;;  %s3228_s29 = sshll.u32 %s4929_s26, 5 }
  0xe8   : > { %s4943_s19 = scalar_lea.vmem [#allocation5], %s3228_s29 }
  0xed   : > { %s495_s23 = sand.u32 1, %s5395_s4  }
  0xee   : > { %s496_s17 = scalar_lea.sflag [#allocation6], %s495_s23 }
  0xef   : > { %4513 = dma.done.wait (%p5394_p10), %s496_s17, 1024  }
  0xf0   : > { %4515 = vsyncadd (%p5394_p10), %s496_s17, 4294966272  ;;  %s4949_s16 = scalar_lea.vmem [#allocation7], %s3228_s29  ;;  %p5396_p4 = scmp.eq.s32.totalorder %s5395_s4, 0 }
  0xf2   : > { %4517 = dma.done.wait (%p5396_p4), [#allocation9], 40960   ;;  %p5397_p1 = pmov %p5396_p4 }
  0xf4   : > { %4519 = vsyncadd (%p5397_p1), [#allocation9], 4294926336  ;;  %p5398_p6 = pmov %p5397_p1 }
  0xf5   : > { %p5399_p3 = pmov %p5397_p1 }
  0xf6   : > { %4521 = dma.done.wait (%p5398_p6), [#allocation12], 40960  }
  0xf7   : > { %4523 = vsyncadd (%p5399_p3), [#allocation12], 4294926336  ;;  %v598_v0 = vld [vmem:[#allocation8 + $0x8] sm:$0xff]  ;;  %v597_v2 = vld [vmem:[#allocation8] sm:$0xff]  ;;  %s5400_s12 = sld [smem:[#allocation30_spill]]  ;;  %s5401_s1 = sld [smem:[#allocation31_spill]] }
  0xf8   : > { %v602_v1 = vld [vmem:[#allocation8 + $0x28] sm:$0xff]  ;;  %v601_v4 = vld [vmem:[#allocation8 + $0x20] sm:$0xff]  ;;  %s5402_s20 = sld [smem:[#allocation33_spill]]  ;;  %p578_p5 = scmp.lt.s32.totalorder %s5395_s4, 1  ;;  %vm1801_vm0 = vcmask 261120  }
  0xf9   : > { %v3389_v3 = vpack.c.bf16 %v602_v1, %v598_v0  ;;  %v606_v5 = vld [vmem:[#allocation8 + $0x48] sm:$0xff]  ;;  %v3391_v7 = vpack.c.bf16 %v601_v4, %v597_v2  ;;  %v605_v9 = vld [vmem:[#allocation8 + $0x40] sm:$0xff]  ;;  %s5403_s9 = sld [smem:[#allocation28_spill]]  ;;  %s5404_s29 = sld [smem:[#allocation34_spill]] }
  0xfa   : > { %v610_v6 = vld [vmem:[#allocation8 + $0x68] sm:$0xff]  ;;  %v609_v10 = vld [vmem:[#allocation8 + $0x60] sm:$0xff]  ;;  %s579_s8 = scalar_select %p578_p5, %s5395_s4, 1 }
  0xfb   : > { %v3393_v8 = vpack.c.bf16 %v610_v6, %v606_v5  ;;  %v614_v11 = vld [vmem:[#allocation8 + $0x88] sm:$0xff]  ;;  %3390 = vmatprep.subr.bf16.mxu0 %v3389_v3  ;;  %v3395_v13 = vpack.c.bf16 %v609_v10, %v605_v9  ;;  %v613_v15 = vld [vmem:[#allocation8 + $0x80] sm:$0xff]  ;;  %s577_s17 = scalar_lea.vmem [#allocation14], %s3227_s21  ;;  %s5405_s27 = sld [smem:[#allocation25_spill]] }
  0xfc   : > { %v618_v12 = vld [vmem:[#allocation8 + $0xa8] sm:$0xff]  ;;  %3392 = vmatpush1.bf16.msra.mxu0 %v3391_v7  ;;  %v617_v16 = vld [vmem:[#allocation8 + $0xa0] sm:$0xff]  ;;  %s5406_s3 = sld [smem:[#allocation35_spill]]  ;;  %s3034_s14 = scalar_lea.sflag [#allocation4], %s4929_s26 }
  0xfd   : > { %3394 = vmatprep.subr.bf16.mxu0 %v3393_v8  ;;  %v3397_v14 = vpack.c.bf16 %v618_v12, %v614_v11  ;;  %v622_v17 = vld [vmem:[#allocation8 + $0xc8] sm:$0xff]  ;;  %v3399_v19 = vpack.c.bf16 %v617_v16, %v613_v15  ;;  %v621_v21 = vld [vmem:[#allocation8 + $0xc0] sm:$0xff]  ;;  %s4556_s11 = smov [#allocation14]  }
  0xfe   : > { %v626_v18 = vld [vmem:[#allocation8 + $0xe8] sm:$0xff]  ;;  %v625_v22 = vld [vmem:[#allocation8 + $0xe0] sm:$0xff]  ;;  %s4468_s25 = sshll.u32 %s4556_s11, 4  ;;  %s4469_s25 = int_to_ptr.vmem [resolvable:$false] %s4468_s25 }
  0xff   : > { %v3401_v20 = vpack.c.bf16 %v626_v18, %v622_v17  ;;  %v630_v23 = vld [vmem:[#allocation8 + $0x108] sm:$0xff]  ;;  %v3403_v25 = vpack.c.bf16 %v625_v22, %v621_v21  ;;  %v629_v27 = vld [vmem:[#allocation8 + $0x100] sm:$0xff]  ;;  %s580_s18 = scalar_lea.vmem %s5403_s9, %s579_s8 }
 0x100   : > { %3396 = vmatpush1.bf16.msra.mxu0 %v3395_v13  ;;  %v634_v24 = vld [vmem:[#allocation8 + $0x128] sm:$0xff]  ;;  %v633_v28 = vld [vmem:[#allocation8 + $0x120] sm:$0xff] }
 0x101   : > { %3398 = vmatprep.subr.bf16.mxu0 %v3397_v14  ;;  %v3405_v26 = vpack.c.bf16 %v634_v24, %v630_v23  ;;  %v638_v29 = vld [vmem:[#allocation8 + $0x148] sm:$0xff]  ;;  %v3407_v31 = vpack.c.bf16 %v633_v28, %v629_v27  ;;  %v637_v33 = vld [vmem:[#allocation8 + $0x140] sm:$0xff]  ;;  %p5407_p0 = scmp.ne.s32.totalorder %s5405_s27, 0 }
 0x102   : > { %v642_v30 = vld [vmem:[#allocation8 + $0x168] sm:$0xff]  ;;  %v641_v34 = vld [vmem:[#allocation8 + $0x160] sm:$0xff] }
 0x103   : > { %v3409_v32 = vpack.c.bf16 %v642_v30, %v638_v29  ;;  %v646_v35 = vld [vmem:[#allocation8 + $0x188] sm:$0xff]  ;;  %v3411_v37 = vpack.c.bf16 %v641_v34, %v637_v33  ;;  %v645_v39 = vld [vmem:[#allocation8 + $0x180] sm:$0xff] }
 0x104   : > { %3400 = vmatpush1.bf16.msra.mxu0 %v3399_v19  ;;  %v650_v36 = vld [vmem:[#allocation8 + $0x1a8] sm:$0xff]  ;;  %v649_v40 = vld [vmem:[#allocation8 + $0x1a0] sm:$0xff] }
 0x105   : > { %3402 = vmatprep.subr.bf16.mxu0 %v3401_v20  ;;  %v3413_v38 = vpack.c.bf16 %v650_v36, %v646_v35  ;;  %v582_v41 = vld [vmem:[%s4935_s13 + $0x8] sm:$0xff]  ;;  %v3415_v44 = vpack.c.bf16 %v649_v40, %v645_v39  ;;  %v653_v46 = vld [vmem:[#allocation8 + $0x1c0] sm:$0xff] }
 0x106   : > { %v654_v42 = vld [vmem:[#allocation8 + $0x1c8] sm:$0xff]  ;;  %939 = vmatprep.mubr.f32.mxu0 %v582_v41  ;;  %1093 = vmatprep.mubr.f32.mxu1 %v582_v41  ;;  %v657_v47 = vld [vmem:[#allocation8 + $0x1e0] sm:$0xff] }
 0x107   : > { %v658_v43 = vld [vmem:[#allocation8 + $0x1e8] sm:$0xff]  ;;  %v3419_v50 = vpack.c.bf16 %v657_v47, %v653_v46  ;;  %v661_v52 = vld [vmem:[#allocation8 + $0x200] sm:$0xff] }
 0x108   : > { %3404 = vmatpush1.bf16.msra.mxu0 %v3403_v25  ;;  %v3417_v45 = vpack.c.bf16 %v658_v43, %v654_v42  ;;  %v662_v48 = vld [vmem:[#allocation8 + $0x208] sm:$0xff]  ;;  %v665_v53 = vld [vmem:[#allocation8 + $0x220] sm:$0xff] }
 0x109   : > { %3406 = vmatprep.subr.bf16.mxu0 %v3405_v26  ;;  %v666_v49 = vld [vmem:[#allocation8 + $0x228] sm:$0xff]  ;;  %v3423_v56 = vpack.c.bf16 %v665_v53, %v661_v52  ;;  %v669_v58 = vld [vmem:[#allocation8 + $0x240] sm:$0xff]  ;;  %v4972_v53 = vld [vmem:[%s4935_s13 + $0x18] sm:$0xff] }
 0x10a   : > { %v3421_v51 = vpack.c.bf16 %v666_v49, %v662_v48  ;;  %v670_v54 = vld [vmem:[#allocation8 + $0x248] sm:$0xff]  ;;  %v673_v59 = vld [vmem:[#allocation8 + $0x260] sm:$0xff] }
 0x10b   : > { %v674_v55 = vld [vmem:[#allocation8 + $0x268] sm:$0xff]  ;;  %v3427_v62 = vpack.c.bf16 %v673_v59, %v669_v58  ;;  %v677_v0 = vld [vmem:[#allocation8 + $0x280] sm:$0xff] }
 0x10c   : > { %3408 = vmatpush1.bf16.msra.mxu0 %v3407_v31  ;;  %v3425_v57 = vpack.c.bf16 %v674_v55, %v670_v54  ;;  %v678_v60 = vld [vmem:[#allocation8 + $0x288] sm:$0xff]  ;;  %v681_v1 = vld [vmem:[#allocation8 + $0x2a0] sm:$0xff] }
 0x10d   : > { %3410 = vmatprep.subr.bf16.mxu0 %v3409_v32  ;;  %v682_v61 = vld [vmem:[#allocation8 + $0x2a8] sm:$0xff]  ;;  %v3431_v4 = vpack.c.bf16 %v681_v1, %v677_v0  ;;  %v685_v6 = vld [vmem:[#allocation8 + $0x2c0] sm:$0xff] }
 0x10e   : > { %v3429_v63 = vpack.c.bf16 %v682_v61, %v678_v60  ;;  %v686_v2 = vld [vmem:[#allocation8 + $0x2c8] sm:$0xff]  ;;  %v689_v7 = vld [vmem:[#allocation8 + $0x2e0] sm:$0xff] }
 0x10f   : > { %v690_v3 = vld [vmem:[#allocation8 + $0x2e8] sm:$0xff]  ;;  %v3435_v10 = vpack.c.bf16 %v689_v7, %v685_v6  ;;  %v693_v12 = vld [vmem:[#allocation8 + $0x300] sm:$0xff] }
 0x110   : > { %3412 = vmatpush1.bf16.msra.mxu0 %v3411_v37  ;;  %v3433_v5 = vpack.c.bf16 %v690_v3, %v686_v2  ;;  %v694_v8 = vld [vmem:[#allocation8 + $0x308] sm:$0xff]  ;;  %v697_v13 = vld [vmem:[#allocation8 + $0x320] sm:$0xff] }
 0x111   : > { %3414 = vmatprep.subr.bf16.mxu0 %v3413_v38  ;;  %v698_v9 = vld [vmem:[#allocation8 + $0x328] sm:$0xff]  ;;  %v3439_v16 = vpack.c.bf16 %v697_v13, %v693_v12  ;;  %v701_v18 = vld [vmem:[#allocation8 + $0x340] sm:$0xff] }
 0x112   : > { %v3437_v11 = vpack.c.bf16 %v698_v9, %v694_v8  ;;  %v702_v14 = vld [vmem:[#allocation8 + $0x348] sm:$0xff]  ;;  %v705_v19 = vld [vmem:[#allocation8 + $0x360] sm:$0xff] }
 0x113   : > { %v706_v15 = vld [vmem:[#allocation8 + $0x368] sm:$0xff]  ;;  %v3443_v22 = vpack.c.bf16 %v705_v19, %v701_v18  ;;  %v709_v24 = vld [vmem:[#allocation8 + $0x380] sm:$0xff] }
 0x114   : > { %3416 = vmatpush1.bf16.msra.mxu0 %v3415_v44  ;;  %v3441_v17 = vpack.c.bf16 %v706_v15, %v702_v14  ;;  %v710_v20 = vld [vmem:[#allocation8 + $0x388] sm:$0xff]  ;;  %v713_v25 = vld [vmem:[#allocation8 + $0x3a0] sm:$0xff] }
 0x115   : > { %3418 = vmatprep.subr.bf16.mxu0 %v3417_v45  ;;  %v714_v21 = vld [vmem:[#allocation8 + $0x3a8] sm:$0xff]  ;;  %v3447_v28 = vpack.c.bf16 %v713_v25, %v709_v24  ;;  %v717_v30 = vld [vmem:[#allocation8 + $0x3c0] sm:$0xff] }
 0x116   : > { %v3445_v23 = vpack.c.bf16 %v714_v21, %v710_v20  ;;  %v718_v26 = vld [vmem:[#allocation8 + $0x3c8] sm:$0xff]  ;;  %v721_v31 = vld [vmem:[#allocation8 + $0x3e0] sm:$0xff] }
 0x117   : > { %v722_v27 = vld [vmem:[#allocation8 + $0x3e8] sm:$0xff]  ;;  %v3451_v34 = vpack.c.bf16 %v721_v31, %v717_v30  ;;  %v725_v36 = vld [vmem:[#allocation8 + $0x400] sm:$0xff] }
 0x118   : > { %3420 = vmatpush1.bf16.msra.mxu0 %v3419_v50  ;;  %v3449_v29 = vpack.c.bf16 %v722_v27, %v718_v26  ;;  %v726_v32 = vld [vmem:[#allocation8 + $0x408] sm:$0xff]  ;;  %v729_v37 = vld [vmem:[#allocation8 + $0x420] sm:$0xff] }
 0x119   : > { %3422 = vmatprep.subr.bf16.mxu0 %v3421_v51  ;;  %v730_v33 = vld [vmem:[#allocation8 + $0x428] sm:$0xff]  ;;  %v4961_v40 = vld [vmem:[%s4935_s13] sm:$0xff]  ;;  %v3455_v41 = vpack.c.bf16 %v729_v37, %v725_v36 }
 0x11a   : > { %v3453_v35 = vpack.c.bf16 %v730_v33, %v726_v32  ;;  %v734_v38 = vld [vmem:[#allocation8 + $0x448] sm:$0xff]  ;;  %v733_v43 = vld [vmem:[#allocation8 + $0x440] sm:$0xff] }
 0x11b   : > { %v738_v39 = vld [vmem:[#allocation8 + $0x468] sm:$0xff]  ;;  %v737_v44 = vld [vmem:[#allocation8 + $0x460] sm:$0xff] }
 0x11c   : > { %3424 = vmatpush1.bf16.msra.mxu0 %v3423_v56  ;;  %v3457_v42 = vpack.c.bf16 %v738_v39, %v734_v38  ;;  %v4964_v45 = vld [vmem:[%s4935_s13 + $0x28] sm:$0xff]  ;;  %v3459_v48 = vpack.c.bf16 %v737_v44, %v733_v43  ;;  %v4969_v49 = vld [vmem:[%s4935_s13 + $0x20] sm:$0xff] }
 0x11d   : > { %3426 = vmatprep.subr.bf16.mxu0 %v3425_v57  ;;  %v742_v46 = vld [vmem:[#allocation8 + $0x488] sm:$0xff]  ;;  %v741_v51 = vld [vmem:[#allocation8 + $0x480] sm:$0xff] }
 0x11e   : > { %v746_v47 = vld [vmem:[#allocation8 + $0x4a8] sm:$0xff]  ;;  %v745_v52 = vld [vmem:[#allocation8 + $0x4a0] sm:$0xff] }
 0x11f   : > { %v3461_v50 = vpack.c.bf16 %v746_v47, %v742_v46  ;;  %v750_v54 = vld [vmem:[#allocation8 + $0x4c8] sm:$0xff]  ;;  %v3463_v56 = vpack.c.bf16 %v745_v52, %v741_v51  ;;  %v749_v58 = vld [vmem:[#allocation8 + $0x4c0] sm:$0xff] }
 0x120   : > { %3428 = vmatpush1.bf16.msra.mxu0 %v3427_v62  ;;  %v754_v55 = vld [vmem:[#allocation8 + $0x4e8] sm:$0xff]  ;;  %v753_v59 = vld [vmem:[#allocation8 + $0x4e0] sm:$0xff] }
 0x121   : > { %3430 = vmatprep.subr.bf16.mxu0 %v3429_v63  ;;  %v3465_v57 = vpack.c.bf16 %v754_v55, %v750_v54  ;;  %v758_v60 = vld [vmem:[#allocation8 + $0x508] sm:$0xff]  ;;  %v3467_v62 = vpack.c.bf16 %v753_v59, %v749_v58  ;;  %v757_v0 = vld [vmem:[#allocation8 + $0x500] sm:$0xff] }
 0x122   : > { %v762_v61 = vld [vmem:[#allocation8 + $0x528] sm:$0xff]  ;;  %v761_v1 = vld [vmem:[#allocation8 + $0x520] sm:$0xff] }
 0x123   : > { %v3469_v63 = vpack.c.bf16 %v762_v61, %v758_v60  ;;  %v766_v2 = vld [vmem:[#allocation8 + $0x548] sm:$0xff]  ;;  %v765_v6 = vld [vmem:[#allocation8 + $0x540] sm:$0xff] }
 0x124   : > { %3432 = vmatpush1.bf16.msra.mxu0 %v3431_v4  ;;  %v770_v3 = vld [vmem:[#allocation8 + $0x568] sm:$0xff]  ;;  %v3471_v4 = vpack.c.bf16 %v761_v1, %v757_v0  ;;  %v769_v7 = vld [vmem:[#allocation8 + $0x560] sm:$0xff] }
 0x125   : > { %3434 = vmatprep.subr.bf16.mxu0 %v3433_v5  ;;  %v3473_v5 = vpack.c.bf16 %v770_v3, %v766_v2  ;;  %v774_v8 = vld [vmem:[#allocation8 + $0x588] sm:$0xff]  ;;  %v773_v12 = vld [vmem:[#allocation8 + $0x580] sm:$0xff] }
 0x126   : > { %v778_v9 = vld [vmem:[#allocation8 + $0x5a8] sm:$0xff]  ;;  %v777_v13 = vld [vmem:[#allocation8 + $0x5a0] sm:$0xff] }
 0x127   : > { %v782_v14 = vld [vmem:[#allocation8 + $0x5c8] sm:$0xff]  ;;  %v781_v18 = vld [vmem:[#allocation8 + $0x5c0] sm:$0xff] }
 0x128   : > { %3436 = vmatpush1.bf16.msra.mxu0 %v3435_v10  ;;  %v3475_v10 = vpack.c.bf16 %v769_v7, %v765_v6  ;;  %v786_v15 = vld [vmem:[#allocation8 + $0x5e8] sm:$0xff]  ;;  %v785_v19 = vld [vmem:[#allocation8 + $0x5e0] sm:$0xff] }
 0x129   : > { %3438 = vmatprep.subr.bf16.mxu0 %v3437_v11  ;;  %v3477_v11 = vpack.c.bf16 %v778_v9, %v774_v8  ;;  %v790_v20 = vld [vmem:[#allocation8 + $0x608] sm:$0xff]  ;;  %v789_v24 = vld [vmem:[#allocation8 + $0x600] sm:$0xff] }
 0x12a   : > { %v794_v21 = vld [vmem:[#allocation8 + $0x628] sm:$0xff]  ;;  %v793_v25 = vld [vmem:[#allocation8 + $0x620] sm:$0xff] }
 0x12b   : > { %v798_v26 = vld [vmem:[#allocation8 + $0x648] sm:$0xff]  ;;  %v797_v30 = vld [vmem:[#allocation8 + $0x640] sm:$0xff] }
 0x12c   : > { %3440 = vmatpush1.bf16.msra.mxu0 %v3439_v16  ;;  %v3479_v16 = vpack.c.bf16 %v777_v13, %v773_v12  ;;  %v802_v27 = vld [vmem:[#allocation8 + $0x668] sm:$0xff]  ;;  %v801_v31 = vld [vmem:[#allocation8 + $0x660] sm:$0xff] }
 0x12d   : > { %3442 = vmatprep.subr.bf16.mxu0 %v3441_v17  ;;  %v3481_v17 = vpack.c.bf16 %v786_v15, %v782_v14  ;;  %v806_v32 = vld [vmem:[#allocation8 + $0x688] sm:$0xff]  ;;  %v805_v36 = vld [vmem:[#allocation8 + $0x680] sm:$0xff] }
 0x12e   : > { %v810_v33 = vld [vmem:[#allocation8 + $0x6a8] sm:$0xff]  ;;  %v809_v37 = vld [vmem:[#allocation8 + $0x6a0] sm:$0xff] }
 0x12f   : > { %v814_v38 = vld [vmem:[#allocation8 + $0x6c8] sm:$0xff]  ;;  %v813_v43 = vld [vmem:[#allocation8 + $0x6c0] sm:$0xff] }
 0x130   : > { %3444 = vmatpush1.bf16.msra.mxu0 %v3443_v22  ;;  %v3483_v22 = vpack.c.bf16 %v785_v19, %v781_v18  ;;  %v818_v39 = vld [vmem:[#allocation8 + $0x6e8] sm:$0xff]  ;;  %v817_v44 = vld [vmem:[#allocation8 + $0x6e0] sm:$0xff]  ;;  %v4980_v18 = vld [vmem:[%s4935_s13 + $0x38] sm:$0xff] }
 0x131   : > { %3446 = vmatprep.subr.bf16.mxu0 %v3445_v23  ;;  %v3485_v23 = vpack.c.bf16 %v794_v21, %v790_v20  ;;  %v822_v46 = vld [vmem:[#allocation8 + $0x708] sm:$0xff]  ;;  %v821_v51 = vld [vmem:[#allocation8 + $0x700] sm:$0xff] }
 0x132   : > { %v826_v47 = vld [vmem:[#allocation8 + $0x728] sm:$0xff]  ;;  %v825_v52 = vld [vmem:[#allocation8 + $0x720] sm:$0xff] }
 0x133   : > { %v830_v54 = vld [vmem:[#allocation8 + $0x748] sm:$0xff]  ;;  %v829_v58 = vld [vmem:[#allocation8 + $0x740] sm:$0xff] }
 0x134   : > { %3448 = vmatpush1.bf16.msra.mxu0 %v3447_v28  ;;  %v3487_v28 = vpack.c.bf16 %v793_v25, %v789_v24  ;;  %v834_v55 = vld [vmem:[#allocation8 + $0x768] sm:$0xff]  ;;  %v833_v59 = vld [vmem:[#allocation8 + $0x760] sm:$0xff]  ;;  %v4985_v24 = vld [vmem:[%s4935_s13 + $0x30] sm:$0xff] }
 0x135   : > { %3450 = vmatprep.subr.bf16.mxu0 %v3449_v29  ;;  %v3489_v29 = vpack.c.bf16 %v802_v27, %v798_v26  ;;  %v838_v60 = vld [vmem:[#allocation8 + $0x788] sm:$0xff]  ;;  %v837_v0 = vld [vmem:[#allocation8 + $0x780] sm:$0xff] }
 0x136   : > { %v842_v61 = vld [vmem:[#allocation8 + $0x7a8] sm:$0xff]  ;;  %v841_v1 = vld [vmem:[#allocation8 + $0x7a0] sm:$0xff] }
 0x137   : > { %v846_v2 = vld [vmem:[#allocation8 + $0x7c8] sm:$0xff]  ;;  %v845_v6 = vld [vmem:[#allocation8 + $0x7c0] sm:$0xff] }
 0x138   : > { %3452 = vmatpush1.bf16.msra.mxu0 %v3451_v34  ;;  %v3491_v34 = vpack.c.bf16 %v801_v31, %v797_v30  ;;  %v850_v3 = vld [vmem:[#allocation8 + $0x7e8] sm:$0xff]  ;;  %v849_v7 = vld [vmem:[#allocation8 + $0x7e0] sm:$0xff] }
 0x139   : > { %3454 = vmatprep.subr.bf16.mxu0 %v3453_v35  ;;  %v3493_v35 = vpack.c.bf16 %v810_v33, %v806_v32  ;;  %v1192_v8 = vld [vmem:[#allocation10 + $0x8] sm:$0xff]  ;;  %v1191_v12 = vld [vmem:[#allocation10] sm:$0xff]  ;;  %v4555_v32 = vmov 0.0  }
 0x13a   : > { %v1196_v9 = vld [vmem:[#allocation10 + $0x28] sm:$0xff]  ;;  %v1195_v13 = vld [vmem:[#allocation10 + $0x20] sm:$0xff] }
 0x13b   : > { %940 = vmatmul.mubr.f32.vlgmr.msra.gmra.mrb[0].mxu0 %v4961_v40  ;;  %v1200_v14 = vld [vmem:[#allocation10 + $0x48] sm:$0xff]  ;;  %v1199_v20 = vld [vmem:[#allocation10 + $0x40] sm:$0xff] }
 0x13c   : > { %3456 = vmatpush1.bf16.msra.mxu0 %v3455_v41  ;;  %945 = vmatprep.mubr.f32.mxu0 %v4964_v45  ;;  %v3495_v41 = vpack.c.bf16 %v809_v37, %v805_v36  ;;  %v1204_v15 = vld [vmem:[#allocation10 + $0x68] sm:$0xff]  ;;  %v1203_v21 = vld [vmem:[#allocation10 + $0x60] sm:$0xff] }
 0x13d   : > { %3458 = vmatprep.subr.bf16.mxu0 %v3457_v42  ;;  %v3497_v42 = vpack.c.bf16 %v818_v39, %v814_v38  ;;  %v3649_v19 = vpack.c.bf16 %v1204_v15, %v1200_v14  ;;  %v3651_v25 = vpack.c.bf16 %v1203_v21, %v1199_v20  ;;  %v1207_v27 = vld [vmem:[#allocation10 + $0x80] sm:$0xff]  ;;  %v1220_v30 = vld [vmem:[#allocation10 + $0xe8] sm:$0xff] }
 0x13e   : > { %v1224_v36 = vld [vmem:[#allocation10 + $0x108] sm:$0xff]  ;;  %v1471_v20 = vld [vmem:[#allocation11 + $0x80] sm:$0xff] }
 0x13f   : > { %946 = vmatmul.mubr.f32.gmra.mrb[2].mxu0 %v4969_v49  ;;  %v1228_v37 = vld [vmem:[#allocation10 + $0x128] sm:$0xff]  ;;  %v1475_v21 = vld [vmem:[#allocation11 + $0xa0] sm:$0xff] }
 0x140   : > { %3460 = vmatpush1.bf16.msra.mxu0 %v3459_v48  ;;  %1016 = vmatprep.mubr.f32.mxu0 %v4972_v53  ;;  %v3499_v48 = vpack.c.bf16 %v817_v44, %v813_v43  ;;  %v3661_v39 = vpack.c.bf16 %v1228_v37, %v1224_v36  ;;  %v1232_v43 = vld [vmem:[#allocation10 + $0x148] sm:$0xff]  ;;  %v1487_v36 = vld [vmem:[#allocation11 + $0x100] sm:$0xff] }
 0x141   : > { %3462 = vmatprep.subr.bf16.mxu0 %v3461_v50  ;;  %v3501_v50 = vpack.c.bf16 %v826_v47, %v822_v46  ;;  %v1236_v44 = vld [vmem:[#allocation10 + $0x168] sm:$0xff]  ;;  %v1491_v37 = vld [vmem:[#allocation11 + $0x120] sm:$0xff] }
 0x142   : > { %v3665_v47 = vpack.c.bf16 %v1236_v44, %v1232_v43  ;;  %v1476_v14 = vld [vmem:[#allocation11 + $0xa8] sm:$0xff]  ;;  %v1495_v43 = vld [vmem:[#allocation11 + $0x140] sm:$0xff] }
 0x143   : > { %v4995_v15 = vld [vmem:[%s4943_s19 + $0x8] sm:$0xff]  ;;  %v1499_v44 = vld [vmem:[#allocation11 + $0x160] sm:$0xff] }
 0x144   : > { %3464 = vmatpush1.bf16.msra.mxu0 %v3463_v56  ;;  %v3503_v56 = vpack.c.bf16 %v825_v52, %v821_v51  ;;  %v1240_v51 = vld [vmem:[#allocation10 + $0x188] sm:$0xff] }
 0x145   : > { %3466 = vmatprep.subr.bf16.mxu0 %v3465_v57  ;;  %v3505_v57 = vpack.c.bf16 %v834_v55, %v830_v54  ;;  %v1244_v52 = vld [vmem:[#allocation10 + $0x1a8] sm:$0xff] }
 0x146   : > { %v3669_v55 = vpack.c.bf16 %v1244_v52, %v1240_v51  ;;  %v1503_v51 = vld [vmem:[#allocation11 + $0x180] sm:$0xff] }
 0x147   : > { %v1507_v52 = vld [vmem:[#allocation11 + $0x1a0] sm:$0xff] }
 0x148   : > { %3468 = vmatpush1.bf16.msra.mxu0 %v3467_v62  ;;  %v3507_v62 = vpack.c.bf16 %v833_v59, %v829_v58  ;;  %v1248_v58 = vld [vmem:[#allocation10 + $0x1c8] sm:$0xff] }
 0x149   : > { %3470 = vmatprep.subr.bf16.mxu0 %v3469_v63  ;;  %v3509_v63 = vpack.c.bf16 %v842_v61, %v838_v60  ;;  %v1252_v59 = vld [vmem:[#allocation10 + $0x1e8] sm:$0xff] }
 0x14a   : > { %v3673_v61 = vpack.c.bf16 %v1252_v59, %v1248_v58  ;;  %v1511_v58 = vld [vmem:[#allocation11 + $0x1c0] sm:$0xff] }
 0x14b   : > { %v1515_v59 = vld [vmem:[#allocation11 + $0x1e0] sm:$0xff] }
 0x14c   : > { %3472 = vmatpush1.bf16.msra.mxu0 %v3471_v4  ;;  %v3511_v4 = vpack.c.bf16 %v841_v1, %v837_v0  ;;  %v1456_v0 = vld [vmem:[#allocation11 + $0x8] sm:$0xff] }
 0x14d   : > { %3474 = vmatprep.subr.bf16.mxu0 %v3473_v5  ;;  %v3513_v5 = vpack.c.bf16 %v850_v3, %v846_v2  ;;  %v1460_v1 = vld [vmem:[#allocation11 + $0x28] sm:$0xff] }
 0x14e   : > { %v3709_v3 = vpack.c.bf16 %v1460_v1, %v1456_v0  ;;  %v5025_v0 = vld [vmem:[%s4949_s16 + $0x18] sm:$0xff] }
 0x14f   : > { %v600_v1 = vld [vmem:[#allocation8 + $0x18] sm:$0xff] }
 0x150   : > { %3476 = vmatpush1.bf16.msra.mxu0 %v3475_v10  ;;  %v3515_v10 = vpack.c.bf16 %v849_v7, %v845_v6  ;;  %v1464_v6 = vld [vmem:[#allocation11 + $0x48] sm:$0xff] }
 0x151   : > { %3478 = vmatprep.subr.bf16.mxu0 %v3477_v11  ;;  %v3645_v11 = vpack.c.bf16 %v1196_v9, %v1192_v8  ;;  %v1468_v7 = vld [vmem:[#allocation11 + $0x68] sm:$0xff]  ;;  %v4990_v8 = vld [vmem:[%s4943_s19] sm:$0xff] }
 0x154   : > { %3480 = vmatpush1.bf16.msra.mxu0 %v3479_v16  ;;  %v4977_v16 = vld [vmem:[%s4935_s13 + $0x10] sm:$0xff] }
 0x155   : > { %3482 = vmatprep.subr.bf16.mxu0 %v3481_v17  ;;  %v3647_v17 = vpack.c.bf16 %v1195_v13, %v1191_v12  ;;  %v1467_v12 = vld [vmem:[#allocation11 + $0x60] sm:$0xff]  ;;  %v1472_v13 = vld [vmem:[#allocation11 + $0x88] sm:$0xff] }
 0x158   : > { %3484 = vmatpush1.bf16.msra.mxu0 %v3483_v22  ;;  %v1208_v22 = vld [vmem:[#allocation10 + $0x88] sm:$0xff] }
 0x159   : > { %3486 = vmatprep.subr.bf16.mxu0 %v3485_v23  ;;  %v1212_v23 = vld [vmem:[#allocation10 + $0xa8] sm:$0xff] }
 0x15a   : > { %v3653_v26 = vpack.c.bf16 %v1212_v23, %v1208_v22  ;;  %v1480_v22 = vld [vmem:[#allocation11 + $0xc8] sm:$0xff] }
 0x15b   : > { %v1484_v23 = vld [vmem:[#allocation11 + $0xe8] sm:$0xff] }
 0x15c   : > { %3488 = vmatpush1.bf16.msra.mxu0 %v3487_v28  ;;  %v1211_v28 = vld [vmem:[#allocation10 + $0xa0] sm:$0xff] }
 0x15d   : > { %3490 = vmatprep.subr.bf16.mxu0 %v3489_v29  ;;  %v1216_v29 = vld [vmem:[#allocation10 + $0xc8] sm:$0xff]  ;;  %v3655_v31 = vpack.c.bf16 %v1211_v28, %v1207_v27  ;;  %v3721_v27 = vpack.c.bf16 %v1484_v23, %v1480_v22  ;;  %v1479_v28 = vld [vmem:[#allocation11 + $0xc0] sm:$0xff]  ;;  %v624_v22 = vld [vmem:[#allocation8 + $0xd8] sm:$0xff] }
 0x15e   : > { %v3657_v33 = vpack.c.bf16 %v1220_v30, %v1216_v29  ;;  %v1483_v29 = vld [vmem:[#allocation11 + $0xe0] sm:$0xff]  ;;  %v1488_v30 = vld [vmem:[#allocation11 + $0x108] sm:$0xff] }
 0x160   : > { %3492 = vmatpush1.bf16.msra.mxu0 %v3491_v34  ;;  %v1215_v34 = vld [vmem:[#allocation10 + $0xc0] sm:$0xff] }
 0x161   : > { %3494 = vmatprep.subr.bf16.mxu0 %v3493_v35  ;;  %v1219_v35 = vld [vmem:[#allocation10 + $0xe0] sm:$0xff] }
 0x162   : > { %v3659_v38 = vpack.c.bf16 %v1219_v35, %v1215_v34  ;;  %v3723_v34 = vpack.c.bf16 %v1483_v29, %v1479_v28  ;;  %v627_v28 = vld [vmem:[#allocation8 + $0xf0] sm:$0xff] }
 0x164   : > { %3496 = vmatpush1.bf16.msra.mxu0 %v3495_v41  ;;  %v1223_v41 = vld [vmem:[#allocation10 + $0x100] sm:$0xff] }
 0x165   : > { %3498 = vmatprep.subr.bf16.mxu0 %v3497_v42  ;;  %v1227_v42 = vld [vmem:[#allocation10 + $0x120] sm:$0xff] }
 0x166   : > { %v3663_v46 = vpack.c.bf16 %v1227_v42, %v1223_v41  ;;  %v3727_v41 = vpack.c.bf16 %v1491_v37, %v1487_v36  ;;  %v635_v37 = vld [vmem:[#allocation8 + $0x130] sm:$0xff] }
 0x168   : > { %3500 = vmatpush1.bf16.msra.mxu0 %v3499_v48  ;;  %v1231_v48 = vld [vmem:[#allocation10 + $0x140] sm:$0xff] }
 0x169   : > { %3502 = vmatprep.subr.bf16.mxu0 %v3501_v50  ;;  %v1235_v50 = vld [vmem:[#allocation10 + $0x160] sm:$0xff] }
 0x16a   : > { %v3667_v54 = vpack.c.bf16 %v1235_v50, %v1231_v48  ;;  %v3731_v48 = vpack.c.bf16 %v1499_v44, %v1495_v43  ;;  %v639_v43 = vld [vmem:[#allocation8 + $0x150] sm:$0xff] }
 0x16b   : > { %v643_v44 = vld [vmem:[#allocation8 + $0x170] sm:$0xff] }
 0x16c   : > { %3504 = vmatpush1.bf16.msra.mxu0 %v3503_v56  ;;  %v1239_v56 = vld [vmem:[#allocation10 + $0x180] sm:$0xff] }
 0x16d   : > { %3506 = vmatprep.subr.bf16.mxu0 %v3505_v57  ;;  %v1243_v57 = vld [vmem:[#allocation10 + $0x1a0] sm:$0xff] }
 0x16e   : > { %v3671_v60 = vpack.c.bf16 %v1243_v57, %v1239_v56  ;;  %v3735_v56 = vpack.c.bf16 %v1507_v52, %v1503_v51  ;;  %v647_v51 = vld [vmem:[#allocation8 + $0x190] sm:$0xff] }
 0x16f   : > { %v651_v52 = vld [vmem:[#allocation8 + $0x1b0] sm:$0xff] }
 0x170   : > { %3508 = vmatpush1.bf16.msra.mxu0 %v3507_v62  ;;  %v1247_v62 = vld [vmem:[#allocation10 + $0x1c0] sm:$0xff] }
 0x171   : > { %3510 = vmatprep.subr.bf16.mxu0 %v3509_v63  ;;  %v1251_v63 = vld [vmem:[#allocation10 + $0x1e0] sm:$0xff] }
 0x172   : > { %v3675_v2 = vpack.c.bf16 %v1251_v63, %v1247_v62  ;;  %v5015_v62 = vld [vmem:[%s4949_s16 + $0x8] sm:$0xff]  ;;  %v5020_v63 = vld [vmem:[%s4949_s16 + $0x10] sm:$0xff] }
 0x174   : > { %3512 = vmatpush1.bf16.msra.mxu0 %v3511_v4  ;;  %v1455_v4 = vld [vmem:[#allocation11] sm:$0xff] }
 0x175   : > { %3514 = vmatprep.subr.bf16.mxu0 %v3513_v5  ;;  %v1459_v5 = vld [vmem:[#allocation11 + $0x20] sm:$0xff] }
 0x176   : > { %v3711_v9 = vpack.c.bf16 %v1459_v5, %v1455_v4  ;;  %v599_v4 = vld [vmem:[#allocation8 + $0x10] sm:$0xff] }
 0x177   : > { %v603_v5 = vld [vmem:[#allocation8 + $0x30] sm:$0xff] }
 0x178   : > { %3516 = vmatpush1.bf16.msra.mxu0 %v3515_v10  ;;  %v3713_v10 = vpack.c.bf16 %v1468_v7, %v1464_v6  ;;  %v3519_v6 = vpack.c.bf16 %v603_v5, %v599_v4  ;;  %v608_v7 = vld [vmem:[#allocation8 + $0x58] sm:$0xff]  ;;  %v663_v4 = vld [vmem:[#allocation8 + $0x210] sm:$0xff] }
 0x179   : > { %3646 = vmatprep.subr.bf16.mxu0 %v3645_v11  ;;  %v1463_v11 = vld [vmem:[#allocation11 + $0x40] sm:$0xff]  ;;  %v667_v5 = vld [vmem:[#allocation8 + $0x230] sm:$0xff] }
 0x17b   : > { %1017 = vmatmul.mubr.f32.vlgmr.msra.gmra.mrb[0].mxu0 %v4977_v16 }
 0x17c   : > { %3648 = vmatpush1.bf16.msra.mxu0 %v3647_v17  ;;  %1022 = vmatprep.mubr.f32.mxu0 %v4980_v18  ;;  %v3715_v17 = vpack.c.bf16 %v1467_v12, %v1463_v11  ;;  %v611_v12 = vld [vmem:[#allocation8 + $0x70] sm:$0xff] }
 0x17d   : > { %3650 = vmatprep.subr.bf16.mxu0 %v3649_v19  ;;  %v3717_v19 = vpack.c.bf16 %v1476_v14, %v1472_v13  ;;  %v616_v14 = vld [vmem:[#allocation8 + $0x98] sm:$0xff] }
 0x17f   : > { %1023 = vmatmul.mubr.f32.gmra.mrb[2].mxu0 %v4985_v24 }
 0x180   : > { %3652 = vmatpush1.bf16.msra.mxu0 %v3651_v25  ;;  %1341 = vmatprep.mubr.f32.mxu0 %v4555_v32  ;;  %v5000_v25 = vld [vmem:[%s4943_s19 + $0x10] sm:$0xff] }
 0x181   : > { %3654 = vmatprep.subr.bf16.mxu0 %v3653_v26  ;;  %v3719_v26 = vpack.c.bf16 %v1475_v21, %v1471_v20  ;;  %v615_v20 = vld [vmem:[#allocation8 + $0x90] sm:$0xff] }
 0x182   : > { %v619_v21 = vld [vmem:[#allocation8 + $0xb0] sm:$0xff] }
 0x183   : > { %v3527_v23 = vpack.c.bf16 %v619_v21, %v615_v20  ;;  %v679_v20 = vld [vmem:[#allocation8 + $0x290] sm:$0xff] }
 0x184   : > { %3656 = vmatpush1.bf16.msra.mxu0 %v3655_v31  ;;  %v1492_v31 = vld [vmem:[#allocation11 + $0x128] sm:$0xff]  ;;  %v683_v21 = vld [vmem:[#allocation8 + $0x2b0] sm:$0xff] }
 0x185   : > { %3658 = vmatprep.subr.bf16.mxu0 %v3657_v33  ;;  %v5005_v33 = vld [vmem:[%s4943_s19 + $0x18] sm:$0xff]  ;;  %v3725_v35 = vpack.c.bf16 %v1492_v31, %v1488_v30  ;;  %s3047_s19 = sshll.u32 %s577_s17, 4  ;;  %s5264_s19 = int_to_ptr.vmem [resolvable:$true] %s3047_s19 }
 0x186   : > { %v632_v31 = vld [vmem:[#allocation8 + $0x118] sm:$0xff]  ;;  %p4471_p7 = scmp.lt.s32.totalorder %s5264_s19, %s4469_s25 }
 0x188   : > { %3660 = vmatpush1.bf16.msra.mxu0 %v3659_v38  ;;  %v1496_v38 = vld [vmem:[#allocation11 + $0x148] sm:$0xff] }
 0x189   : > { %3662 = vmatprep.subr.bf16.mxu0 %v3661_v39  ;;  %v1500_v39 = vld [vmem:[#allocation11 + $0x168] sm:$0xff] }
 0x18a   : > { %v3729_v42 = vpack.c.bf16 %v1500_v39, %v1496_v38  ;;  %v640_v38 = vld [vmem:[#allocation8 + $0x158] sm:$0xff] }
 0x18b   : > { %v644_v39 = vld [vmem:[#allocation8 + $0x178] sm:$0xff] }
 0x18c   : > { %3664 = vmatpush1.bf16.msra.mxu0 %v3663_v46  ;;  %v1504_v46 = vld [vmem:[#allocation11 + $0x188] sm:$0xff] }
 0x18d   : > { %3666 = vmatprep.subr.bf16.mxu0 %v3665_v47  ;;  %v1508_v47 = vld [vmem:[#allocation11 + $0x1a8] sm:$0xff] }
 0x18e   : > { %v3733_v50 = vpack.c.bf16 %v1508_v47, %v1504_v46  ;;  %v648_v46 = vld [vmem:[#allocation8 + $0x198] sm:$0xff] }
 0x18f   : > { %v652_v47 = vld [vmem:[#allocation8 + $0x1b8] sm:$0xff] }
 0x190   : > { %3668 = vmatpush1.bf16.msra.mxu0 %v3667_v54  ;;  %v1512_v54 = vld [vmem:[#allocation11 + $0x1c8] sm:$0xff] }
 0x191   : > { %3670 = vmatprep.subr.bf16.mxu0 %v3669_v55  ;;  %v1516_v55 = vld [vmem:[#allocation11 + $0x1e8] sm:$0xff] }
 0x192   : > { %v3737_v57 = vpack.c.bf16 %v1516_v55, %v1512_v54  ;;  %v656_v54 = vld [vmem:[#allocation8 + $0x1d8] sm:$0xff] }
 0x193   : > { %v660_v55 = vld [vmem:[#allocation8 + $0x1f8] sm:$0xff] }
 0x194   : > { %3672 = vmatpush1.bf16.msra.mxu0 %v3671_v60  ;;  %v3739_v60 = vpack.c.bf16 %v1515_v59, %v1511_v58  ;;  %v655_v58 = vld [vmem:[#allocation8 + $0x1d0] sm:$0xff] }
 0x195   : > { %3674 = vmatprep.subr.bf16.mxu0 %v3673_v61  ;;  %v5010_v61 = vld [vmem:[%s4949_s16] sm:$0xff]  ;;  %v659_v59 = vld [vmem:[#allocation8 + $0x1f0] sm:$0xff]  ;;  %s3252_s16 = sshll.u32 %s5395_s4, 10 }
 0x196   : > { %s5269_s4 = scalar_lea.hbm %s5406_s3, %s3252_s16 }
 0x198   : > { %3676 = vmatpush1.bf16.msra.mxu0 %v3675_v2  ;;  %v604_v2 = vld [vmem:[#allocation8 + $0x38] sm:$0xff] }
 0x199   : > { %3710 = vmatprep.subr.bf16.mxu0 %v3709_v3  ;;  %v3517_v3 = vpack.c.bf16 %v604_v2, %v600_v1  ;;  %v668_v1 = vld [vmem:[#allocation8 + $0x238] sm:$0xff]  ;;  %v3547_v2 = vpack.c.bf16 %v659_v59, %v655_v58  ;;  %v719_v59 = vld [vmem:[#allocation8 + $0x3d0] sm:$0xff] }
 0x19b   : > { %1342 = vmatmul.mubr.f32.vlgmr.msra.gmra.mrb[4].mxu0 %v4990_v8  ;;  %3518 = vmatprep.subr.bf16.mxu1 %v3517_v3 }
 0x19c   : > { %1347 = vmatprep.mubr.f32.mxu0 %v4555_v32  ;;  %3712 = vmatpush1.bf16.msra.mxu0 %v3711_v9  ;;  %v612_v9 = vld [vmem:[#allocation8 + $0x78] sm:$0xff] }
 0x19d   : > { %3714 = vmatprep.subr.bf16.mxu0 %v3713_v10  ;;  %v607_v10 = vld [vmem:[#allocation8 + $0x50] sm:$0xff]  ;;  %v3521_v11 = vpack.c.bf16 %v612_v9, %v608_v7  ;;  %3520 = vmatpush1.bf16.msra.mxu1 %v3519_v6  ;;  %v672_v6 = vld [vmem:[#allocation8 + $0x258] sm:$0xff]  ;;  %v3551_v9 = vpack.c.bf16 %v667_v5, %v663_v4 }
 0x19e   : > { %v3523_v13 = vpack.c.bf16 %v611_v12, %v607_v10  ;;  %v676_v7 = vld [vmem:[#allocation8 + $0x278] sm:$0xff]  ;;  %v675_v12 = vld [vmem:[#allocation8 + $0x270] sm:$0xff] }
 0x19f   : > { %1348 = vmatmul.mubr.f32.gmra.mrb[6].mxu0 %v4995_v15  ;;  %3522 = vmatprep.subr.bf16.mxu1 %v3521_v11  ;;  %v3553_v10 = vpack.c.bf16 %v676_v7, %v672_v6  ;;  %v671_v11 = vld [vmem:[#allocation8 + $0x250] sm:$0xff] }
 0x1a0   : > { %1353 = vmatprep.mubr.f32.mxu0 %v4555_v32  ;;  %3716 = vmatpush1.bf16.msra.mxu0 %v3715_v17  ;;  %v620_v17 = vld [vmem:[#allocation8 + $0xb8] sm:$0xff]  ;;  %v727_v6 = vld [vmem:[#allocation8 + $0x410] sm:$0xff] }
 0x1a1   : > { %3718 = vmatprep.subr.bf16.mxu0 %v3717_v19  ;;  %3524 = vmatpush1.bf16.msra.mxu1 %v3523_v13  ;;  %v3525_v19 = vpack.c.bf16 %v620_v17, %v616_v14  ;;  %v680_v13 = vld [vmem:[#allocation8 + $0x298] sm:$0xff]  ;;  %v3555_v17 = vpack.c.bf16 %v675_v12, %v671_v11  ;;  %v731_v7 = vld [vmem:[#allocation8 + $0x430] sm:$0xff] }
 0x1a2   : > { %v684_v14 = vld [vmem:[#allocation8 + $0x2b8] sm:$0xff]  ;;  %v3583_v12 = vpack.c.bf16 %v731_v7, %v727_v6  ;;  %v783_v6 = vld [vmem:[#allocation8 + $0x5d0] sm:$0xff] }
 0x1a3   : > { %1354 = vmatmul.mubr.f32.gmra.mrb[8].mxu0 %v5000_v25  ;;  %3526 = vmatprep.subr.bf16.mxu1 %v3525_v19  ;;  %v3557_v19 = vpack.c.bf16 %v684_v14, %v680_v13  ;;  %v5036_v13 = vld [vmem:[%s5400_s12] sm:$0xf]  ;;  %v787_v7 = vld [vmem:[#allocation8 + $0x5f0] sm:$0xff] }
 0x1a4   : > { %1359 = vmatprep.mubr.f32.mxu0 %v4555_v32  ;;  %3720 = vmatpush1.bf16.msra.mxu0 %v3719_v26  ;;  %v628_v26 = vld [vmem:[#allocation8 + $0xf8] sm:$0xff] }
 0x1a5   : > { %3722 = vmatprep.subr.bf16.mxu0 %v3721_v27  ;;  %v623_v27 = vld [vmem:[#allocation8 + $0xd0] sm:$0xff]  ;;  %v3529_v29 = vpack.c.bf16 %v628_v26, %v624_v22  ;;  %3528 = vmatpush1.bf16.msra.mxu1 %v3527_v23  ;;  %v688_v22 = vld [vmem:[#allocation8 + $0x2d8] sm:$0xff]  ;;  %v3559_v26 = vpack.c.bf16 %v683_v21, %v679_v20 }
 0x1a6   : > { %v3531_v30 = vpack.c.bf16 %v627_v28, %v623_v27  ;;  %v692_v23 = vld [vmem:[#allocation8 + $0x2f8] sm:$0xff]  ;;  %v687_v28 = vld [vmem:[#allocation8 + $0x2d0] sm:$0xff] }
 0x1a7   : > { %1360 = vmatmul.mubr.f32.gmra.mrb[10].mxu0 %v5005_v33  ;;  %3530 = vmatprep.subr.bf16.mxu1 %v3529_v29  ;;  %v3561_v27 = vpack.c.bf16 %v692_v23, %v688_v22  ;;  %v691_v29 = vld [vmem:[#allocation8 + $0x2f0] sm:$0xff]  ;;  %v744_v20 = vld [vmem:[#allocation8 + $0x498] sm:$0xff] }
 0x1a8   : > { %3724 = vmatpush1.bf16.msra.mxu0 %v3723_v34  ;;  %1605 = vmatprep.mubr.f32.mxu0 %v4555_v32  ;;  %v636_v34 = vld [vmem:[#allocation8 + $0x138] sm:$0xff] }
 0x1a9   : > { %3726 = vmatprep.subr.bf16.mxu0 %v3725_v35  ;;  %3532 = vmatpush1.bf16.msra.mxu1 %v3531_v30  ;;  %v631_v35 = vld [vmem:[#allocation8 + $0x110] sm:$0xff]  ;;  %v3533_v36 = vpack.c.bf16 %v636_v34, %v632_v31  ;;  %v696_v30 = vld [vmem:[#allocation8 + $0x318] sm:$0xff]  ;;  %v3563_v34 = vpack.c.bf16 %v691_v29, %v687_v28 }
 0x1aa   : > { %v700_v31 = vld [vmem:[#allocation8 + $0x338] sm:$0xff]  ;;  %v747_v28 = vld [vmem:[#allocation8 + $0x4b0] sm:$0xff] }
 0x1ab   : > { %3534 = vmatprep.subr.bf16.mxu1 %v3533_v36  ;;  %v695_v36 = vld [vmem:[#allocation8 + $0x310] sm:$0xff]  ;;  %v748_v21 = vld [vmem:[#allocation8 + $0x4b8] sm:$0xff] }
 0x1ac   : > { %3728 = vmatpush1.bf16.msra.mxu0 %v3727_v41  ;;  %v3535_v41 = vpack.c.bf16 %v635_v37, %v631_v35  ;;  %v3565_v35 = vpack.c.bf16 %v700_v31, %v696_v30  ;;  %v699_v37 = vld [vmem:[#allocation8 + $0x330] sm:$0xff]  ;;  %v752_v29 = vld [vmem:[#allocation8 + $0x4d8] sm:$0xff] }
 0x1ad   : > { %3730 = vmatprep.subr.bf16.mxu0 %v3729_v42  ;;  %v3537_v42 = vpack.c.bf16 %v644_v39, %v640_v38  ;;  %v704_v38 = vld [vmem:[#allocation8 + $0x358] sm:$0xff] }
 0x1ae   : > { %3536 = vmatpush1.bf16.msra.mxu1 %v3535_v41  ;;  %v708_v39 = vld [vmem:[#allocation8 + $0x378] sm:$0xff]  ;;  %v3567_v41 = vpack.c.bf16 %v699_v37, %v695_v36  ;;  %v755_v37 = vld [vmem:[#allocation8 + $0x4f0] sm:$0xff] }
 0x1af   : > { %3538 = vmatprep.subr.bf16.mxu1 %v3537_v42  ;;  %v3569_v42 = vpack.c.bf16 %v708_v39, %v704_v38  ;;  %v756_v30 = vld [vmem:[#allocation8 + $0x4f8] sm:$0xff] }
 0x1b0   : > { %3732 = vmatpush1.bf16.msra.mxu0 %v3731_v48  ;;  %v3539_v48 = vpack.c.bf16 %v643_v44, %v639_v43  ;;  %v703_v43 = vld [vmem:[#allocation8 + $0x350] sm:$0xff]  ;;  %v3593_v36 = vpack.c.bf16 %v756_v30, %v752_v29  ;;  %v760_v39 = vld [vmem:[#allocation8 + $0x518] sm:$0xff] }
 0x1b1   : > { %3734 = vmatprep.subr.bf16.mxu0 %v3733_v50  ;;  %v3541_v50 = vpack.c.bf16 %v652_v47, %v648_v46  ;;  %v707_v44 = vld [vmem:[#allocation8 + $0x370] sm:$0xff]  ;;  %v712_v46 = vld [vmem:[#allocation8 + $0x398] sm:$0xff] }
 0x1b2   : > { %3540 = vmatpush1.bf16.msra.mxu1 %v3539_v48  ;;  %v716_v47 = vld [vmem:[#allocation8 + $0x3b8] sm:$0xff]  ;;  %v3571_v48 = vpack.c.bf16 %v707_v44, %v703_v43 }
 0x1b3   : > { %3542 = vmatprep.subr.bf16.mxu1 %v3541_v50  ;;  %v3573_v50 = vpack.c.bf16 %v716_v47, %v712_v46  ;;  %v759_v46 = vld [vmem:[#allocation8 + $0x510] sm:$0xff]  ;;  %v808_v29 = vld [vmem:[#allocation8 + $0x698] sm:$0xff] }
 0x1b4   : > { %3736 = vmatpush1.bf16.msra.mxu0 %v3735_v56  ;;  %v3543_v56 = vpack.c.bf16 %v651_v52, %v647_v51  ;;  %v711_v51 = vld [vmem:[#allocation8 + $0x390] sm:$0xff]  ;;  %v812_v30 = vld [vmem:[#allocation8 + $0x6b8] sm:$0xff] }
 0x1b5   : > { %3738 = vmatprep.subr.bf16.mxu0 %v3737_v57  ;;  %v3545_v57 = vpack.c.bf16 %v660_v55, %v656_v54  ;;  %v715_v52 = vld [vmem:[#allocation8 + $0x3b0] sm:$0xff]  ;;  %v720_v54 = vld [vmem:[#allocation8 + $0x3d8] sm:$0xff] }
 0x1b6   : > { %3544 = vmatpush1.bf16.msra.mxu1 %v3543_v56  ;;  %v724_v55 = vld [vmem:[#allocation8 + $0x3f8] sm:$0xff]  ;;  %v855_v56 = vlaneseq  ;;  %v763_v47 = vld [vmem:[#allocation8 + $0x530] sm:$0xff] }
 0x1b7   : > { %3546 = vmatprep.subr.bf16.mxu1 %v3545_v57  ;;  %v3575_v57 = vpack.c.bf16 %v715_v52, %v711_v51  ;;  %v3577_v58 = vpack.c.bf16 %v724_v55, %v720_v54  ;;  %v767_v52 = vld [vmem:[#allocation8 + $0x550] sm:$0xff]  ;;  %v776_v55 = vld [vmem:[#allocation8 + $0x598] sm:$0xff] }
 0x1b8   : > { %3740 = vmatpush1.bf16.msra.mxu0 %v3739_v60  ;;  %v664_v60 = vld [vmem:[#allocation8 + $0x218] sm:$0xff]  ;;  %v771_v54 = vld [vmem:[#allocation8 + $0x570] sm:$0xff] }
 0x1b9   : > { %v3549_v3 = vpack.c.bf16 %v668_v1, %v664_v60  ;;  %v723_v60 = vld [vmem:[#allocation8 + $0x3f0] sm:$0xff]  ;;  %v728_v1 = vld [vmem:[#allocation8 + $0x418] sm:$0xff] }
 0x1ba   : > { %3548 = vmatpush1.bf16.msra.mxu1 %v3547_v2  ;;  %v732_v2 = vld [vmem:[#allocation8 + $0x438] sm:$0xff]  ;;  %v3579_v4 = vpack.c.bf16 %v723_v60, %v719_v59  ;;  %v775_v59 = vld [vmem:[#allocation8 + $0x590] sm:$0xff] }
 0x1bb   : > { %1606 = vmatmul.mubr.f32.vlgmr.msra.gmra.mrb[12].mxu0 %v5010_v61  ;;  %3550 = vmatprep.subr.bf16.mxu1 %v3549_v3  ;;  %v5028_v3 = vshrl.u32 %v855_v56, 7  ;;  %v3581_v5 = vpack.c.bf16 %v732_v2, %v728_v1  ;;  %v780_v56 = vld [vmem:[#allocation8 + $0x5b8] sm:$0xff]  ;;  %v779_v60 = vld [vmem:[#allocation8 + $0x5b0] sm:$0xff] }
 0x1bc   : > { %1611 = vmatprep.mubr.f32.mxu0 %v4555_v32  ;;  %v784_v1 = vld [vmem:[#allocation8 + $0x5d8] sm:$0xff] }
 0x1bd   : > { %v5031_v11 = vsub.s32 0, %v5028_v3  ;;  %v788_v2 = vld [vmem:[#allocation8 + $0x5f8] sm:$0xff] }
 0x1be   : > { %3552 = vmatpush1.bf16.msra.mxu1 %v3551_v9  ;;  %v736_v9 = vld [vmem:[#allocation8 + $0x458] sm:$0xff] }
 0x1bf   : > { %1612 = vmatmul.mubr.f32.gmra.mrb[14].mxu0 %v5015_v62  ;;  %3554 = vmatprep.subr.bf16.mxu1 %v3553_v10  ;;  %v740_v10 = vld [vmem:[#allocation8 + $0x478] sm:$0xff]  ;;  %v5041_v22 = vrot.slane %v5036_v13, %v5031_v11 }
 0x1c0   : > { %1617 = vmatprep.mubr.f32.mxu0 %v4555_v32  ;;  %v3585_v14 = vpack.c.bf16 %v740_v10, %v736_v9  ;;  %v792_v9 = vld [vmem:[#allocation8 + $0x618] sm:$0xff] }
 0x1c1   : > { %v796_v10 = vld [vmem:[#allocation8 + $0x638] sm:$0xff] }
 0x1c2   : > { %3556 = vmatpush1.bf16.msra.mxu1 %v3555_v17  ;;  %v735_v17 = vld [vmem:[#allocation8 + $0x450] sm:$0xff] }
 0x1c3   : > { %1618 = vmatmul.mubr.f32.gmra.mrb[16].mxu0 %v5020_v63  ;;  %3558 = vmatprep.subr.bf16.mxu1 %v3557_v19  ;;  %v739_v19 = vld [vmem:[#allocation8 + $0x470] sm:$0xff] }
 0x1c4   : > { %1623 = vmatprep.mubr.f32.mxu0 %v4555_v32  ;;  %v3587_v23 = vpack.c.bf16 %v739_v19, %v735_v17  ;;  %v791_v17 = vld [vmem:[#allocation8 + $0x610] sm:$0xff] }
 0x1c5   : > { %v795_v19 = vld [vmem:[#allocation8 + $0x630] sm:$0xff] }
 0x1c6   : > { %3560 = vmatpush1.bf16.msra.mxu1 %v3559_v26  ;;  %v3589_v26 = vpack.c.bf16 %v748_v21, %v744_v20  ;;  %v800_v20 = vld [vmem:[#allocation8 + $0x658] sm:$0xff] }
 0x1c7   : > { %1624 = vmatmul.mubr.f32.gmra.mrb[18].mxu0 %v5025_v0  ;;  %3562 = vmatprep.subr.bf16.mxu1 %v3561_v27  ;;  %v743_v27 = vld [vmem:[#allocation8 + $0x490] sm:$0xff]  ;;  %v804_v21 = vld [vmem:[#allocation8 + $0x678] sm:$0xff] }
 0x1ca   : > { %3564 = vmatpush1.bf16.msra.mxu1 %v3563_v34 }
 0x1cb   : > { %3566 = vmatprep.subr.bf16.mxu1 %v3565_v35  ;;  %v3591_v35 = vpack.c.bf16 %v747_v28, %v743_v27  ;;  %v799_v27 = vld [vmem:[#allocation8 + $0x650] sm:$0xff] }
 0x1cc   : > { %v803_v28 = vld [vmem:[#allocation8 + $0x670] sm:$0xff] }
 0x1ce   : > { %3568 = vmatpush1.bf16.msra.mxu1 %v3567_v41  ;;  %v764_v41 = vld [vmem:[#allocation8 + $0x538] sm:$0xff] }
 0x1cf   : > { %3570 = vmatprep.subr.bf16.mxu1 %v3569_v42  ;;  %v3597_v44 = vpack.c.bf16 %v764_v41, %v760_v39  ;;  %v5059_v39 = vsub.s32 1, %v5028_v3 }
 0x1d2   : > { %3572 = vmatpush1.bf16.msra.mxu1 %v3571_v48  ;;  %v768_v48 = vld [vmem:[#allocation8 + $0x558] sm:$0xff] }
 0x1d3   : > { %3574 = vmatprep.subr.bf16.mxu1 %v3573_v50  ;;  %v3599_v50 = vpack.c.bf16 %v763_v47, %v759_v46 }
 0x1d6   : > { %3576 = vmatpush1.bf16.msra.mxu1 %v3575_v57  ;;  %v3603_v57 = vpack.c.bf16 %v771_v54, %v767_v52  ;;  %v828_v52 = vld [vmem:[#allocation8 + $0x738] sm:$0xff] }
 0x1d7   : > { %3578 = vmatprep.subr.bf16.mxu1 %v3577_v58  ;;  %v3605_v58 = vpack.c.bf16 %v780_v56, %v776_v55 }
 0x1da   : > { %3580 = vmatpush1.bf16.msra.mxu1 %v3579_v4  ;;  %v3607_v4 = vpack.c.bf16 %v779_v60, %v775_v59 }
 0x1db   : > { %3582 = vmatprep.subr.bf16.mxu1 %v3581_v5  ;;  %v3609_v5 = vpack.c.bf16 %v788_v2, %v784_v1  ;;  %v823_v2 = vld [vmem:[#allocation8 + $0x710] sm:$0xff] }
 0x1dd   : > { %1094 = vmatmul.mubr.f32.vlgmr.msra.gmra.mrb[0].mxu1 %v4961_v40 }
 0x1de   : > { %3584 = vmatpush1.bf16.msra.mxu1 %v3583_v12  ;;  %1099 = vmatprep.mubr.f32.mxu1 %v4964_v45  ;;  %v751_v45 = vld [vmem:[#allocation8 + $0x4d0] sm:$0xff]  ;;  %v3611_v12 = vpack.c.bf16 %v787_v7, %v783_v6  ;;  %v832_v6 = vld [vmem:[#allocation8 + $0x758] sm:$0xff] }
 0x1df   : > { %3586 = vmatprep.subr.bf16.mxu1 %v3585_v14  ;;  %v3613_v14 = vpack.c.bf16 %v796_v10, %v792_v9  ;;  %v836_v7 = vld [vmem:[#allocation8 + $0x778] sm:$0xff] }
 0x1e1   : > { %1100 = vmatmul.mubr.f32.gmra.mrb[2].mxu1 %v4969_v49  ;;  %v3595_v49 = vpack.c.bf16 %v755_v37, %v751_v45  ;;  %v811_v45 = vld [vmem:[#allocation8 + $0x6b0] sm:$0xff]  ;;  %v816_v37 = vld [vmem:[#allocation8 + $0x6d8] sm:$0xff] }
 0x1e2   : > { %3588 = vmatpush1.bf16.msra.mxu1 %v3587_v23  ;;  %1170 = vmatprep.mubr.f32.mxu1 %v4972_v53  ;;  %v772_v53 = vld [vmem:[#allocation8 + $0x578] sm:$0xff]  ;;  %v3615_v23 = vpack.c.bf16 %v795_v19, %v791_v17  ;;  %v3633_v17 = vpack.c.bf16 %v836_v7, %v832_v6  ;;  %v831_v19 = vld [vmem:[#allocation8 + $0x750] sm:$0xff] }
 0x1e3   : > { %3590 = vmatprep.subr.bf16.mxu1 %v3589_v26  ;;  %v3601_v51 = vpack.c.bf16 %v772_v53, %v768_v48  ;;  %v3617_v26 = vpack.c.bf16 %v804_v21, %v800_v20  ;;  %v815_v53 = vld [vmem:[#allocation8 + $0x6d0] sm:$0xff]  ;;  %v840_v21 = vld [vmem:[#allocation8 + $0x798] sm:$0xff] }
 0x1e4   : > { %v835_v20 = vld [vmem:[#allocation8 + $0x770] sm:$0xff]  ;;  %v1210_v6 = vld [vmem:[#allocation10 + $0x98] sm:$0xff] }
 0x1e5   : > { %v1214_v7 = vld [vmem:[#allocation10 + $0xb8] sm:$0xff] }
 0x1e6   : > { %3592 = vmatpush1.bf16.msra.mxu1 %v3591_v35  ;;  %v3621_v35 = vpack.c.bf16 %v812_v30, %v808_v29  ;;  %v3635_v30 = vpack.c.bf16 %v835_v20, %v831_v19  ;;  %v1218_v19 = vld [vmem:[#allocation10 + $0xd8] sm:$0xff] }
 0x1e7   : > { %3594 = vmatprep.subr.bf16.mxu1 %v3593_v36  ;;  %v807_v36 = vld [vmem:[#allocation8 + $0x690] sm:$0xff]  ;;  %v1222_v20 = vld [vmem:[#allocation10 + $0xf8] sm:$0xff] }
 0x1e8   : > { %v3623_v46 = vpack.c.bf16 %v811_v45, %v807_v36  ;;  %v839_v45 = vld [vmem:[#allocation8 + $0x790] sm:$0xff] }
 0x1ea   : > { %3596 = vmatpush1.bf16.msra.mxu1 %v3595_v49 }
 0x1eb   : > { %3598 = vmatprep.subr.bf16.mxu1 %v3597_v44 }
 0x1ee   : > { %3600 = vmatpush1.bf16.msra.mxu1 %v3599_v50  ;;  %v819_v50 = vld [vmem:[#allocation8 + $0x6f0] sm:$0xff] }
 0x1ef   : > { %3602 = vmatprep.subr.bf16.mxu1 %v3601_v51  ;;  %v824_v51 = vld [vmem:[#allocation8 + $0x718] sm:$0xff] }
 0x1f0   : > { %v3629_v1 = vpack.c.bf16 %v828_v52, %v824_v51  ;;  %v851_v51 = vld [vmem:[#allocation8 + $0x7f0] sm:$0xff] }
 0x1f2   : > { %3604 = vmatpush1.bf16.msra.mxu1 %v3603_v57 }
 0x1f3   : > { %3606 = vmatprep.subr.bf16.mxu1 %v3605_v58  ;;  %v3627_v58 = vpack.c.bf16 %v819_v50, %v815_v53  ;;  %v847_v50 = vld [vmem:[#allocation8 + $0x7d0] sm:$0xff] }
 0x1f6   : > { %3608 = vmatpush1.bf16.msra.mxu1 %v3607_v4  ;;  %v827_v4 = vld [vmem:[#allocation8 + $0x730] sm:$0xff] }
 0x1f7   : > { %3610 = vmatprep.subr.bf16.mxu1 %v3609_v5 }
 0x1fa   : > { %3612 = vmatpush1.bf16.msra.mxu1 %v3611_v12 }
 0x1fb   : > { %3614 = vmatprep.subr.bf16.mxu1 %v3613_v14  ;;  %v3631_v14 = vpack.c.bf16 %v827_v4, %v823_v2  ;;  %v1206_v2 = vld [vmem:[#allocation10 + $0x78] sm:$0xff] }
 0x1fe   : > { %3616 = vmatpush1.bf16.msra.mxu1 %v3615_v23  ;;  %v844_v23 = vld [vmem:[#allocation8 + $0x7b8] sm:$0xff] }
 0x1ff   : > { %3618 = vmatprep.subr.bf16.mxu1 %v3617_v26  ;;  %v3637_v36 = vpack.c.bf16 %v844_v23, %v840_v21 }
 0x24e   : > { %v1018_v31 = vpop.f32.mrb[0].mxu0 }
 0x24f   : > { %v4093_v34 = vadd.f32 %v1018_v31, %v5041_v22  ;;  %v5046_v40 = vpop.f32.mrb[1].mxu0  ;;  %v3619_v31 = vpack.c.bf16 %v803_v28, %v799_v27 }
 0x251   : > { %v1183_v38 = vmul.f32 0.088388346, %v4093_v34  ;;  %v5056_v34 = vld [vmem:[%s5401_s1] sm:$0xf]  ;;  %3620 = vmatpush1.bf16.msra.mxu1 %v3619_v31  ;;  %s4464_s1 = scalar_lea.vmem %s5264_s19, 1024 }
 0x252   : > { %v5049_v42 = vpop.f32.mrb[2].mxu0  ;;  %v1260_v49 = vrot.slane %v5056_v34, %v5031_v11  ;;  %v1264_v47 = vrot.slane %v5056_v34, %v5059_v39  ;;  %3622 = vmatprep.subr.bf16.mxu1 %v3621_v35  ;;  %p4465_p2 = scmp.ne.s32.totalorder %s5264_s19, %s4464_s1 }
 0x253   : > { %v5051_v43 = vpop.f32.mrb[3].mxu0  ;;  %3309 = vmatprep.mubr.f32.mxu0 %v1183_v38  ;;  %v820_v38 = vld [vmem:[#allocation8 + $0x6f8] sm:$0xff] }
 0x254   : > { %v3625_v48 = vpack.c.bf16 %v820_v38, %v816_v37  ;;  %v843_v37 = vld [vmem:[#allocation8 + $0x7b0] sm:$0xff]  ;;  %p4466_p11 = pnand %p4465_p2, %p5407_p0 }
 0x255   : > { %3624 = vmatpush1.bf16.msra.mxu1 %v3623_v46  ;;  %v862_v46 = vrot.slane %v5036_v13, %v5059_v39  ;;  %v3639_v53 = vpack.c.bf16 %v843_v37, %v839_v45 }
 0x256   : > { %3626 = vmatprep.subr.bf16.mxu1 %v3625_v48  ;;  %p4467_p13 = pneg %p4466_p11 }
 0x257   : > { %v4094_v52 = vadd.f32 %v5046_v40, %v862_v46  ;;  %v1205_v40 = vld [vmem:[#allocation10 + $0x70] sm:$0xff] }
 0x259   : > { %3628 = vmatpush1.bf16.msra.mxu1 %v3627_v58  ;;  %v1197_v58 = vld [vmem:[#allocation10 + $0x30] sm:$0xff]  ;;  %v1184_v4 = vmul.f32 0.088388346, %v4094_v52 }
 0x25a   : > { %3630 = vmatprep.subr.bf16.mxu1 %v3629_v1  ;;  %v1202_v1 = vld [vmem:[#allocation10 + $0x58] sm:$0xff] }
 0x25d   : > { %3632 = vmatpush1.bf16.msra.mxu1 %v3631_v14  ;;  %v1209_v14 = vld [vmem:[#allocation10 + $0x90] sm:$0xff] }
 0x25e   : > { %3634 = vmatprep.subr.bf16.mxu1 %v3633_v17  ;;  %v1213_v17 = vld [vmem:[#allocation10 + $0xb0] sm:$0xff] }
 0x261   : > { %3636 = vmatpush1.bf16.msra.mxu1 %v3635_v30  ;;  %v4096_v30 = vadd.f32 %v5051_v43, %v862_v46  ;;  %v1234_v43 = vld [vmem:[#allocation10 + $0x158] sm:$0xff] }
 0x262   : > { %3638 = vmatprep.subr.bf16.mxu1 %v3637_v36  ;;  %v1238_v46 = vld [vmem:[#allocation10 + $0x178] sm:$0xff] }
 0x265   : > { %3640 = vmatpush1.bf16.msra.mxu1 %v3639_v53  ;;  %v1229_v53 = vld [vmem:[#allocation10 + $0x130] sm:$0xff] }
 0x26e   : > { %v1343_v41 = vpop.f32.mrb[4].mxu0 }
 0x26f   : > { %v1345_v44 = vpop.f32.mrb[5].mxu0  ;;  %v1344_v55 = vadd.f32 %v1343_v41, %v1260_v49  ;;  %v848_v41 = vld [vmem:[#allocation8 + $0x7d8] sm:$0xff] }
 0x270   : > { %v1346_v59 = vadd.f32 %v1345_v44, %v1264_v47  ;;  %v852_v44 = vld [vmem:[#allocation8 + $0x7f8] sm:$0xff] }
 0x272   : > { %v1349_v54 = vpop.f32.mrb[6].mxu0 }
 0x273   : > { %v1350_v56 = vadd.f32 %v1349_v54, %v1260_v49  ;;  %v1351_v57 = vpop.f32.mrb[7].mxu0  ;;  %v1194_v54 = vld [vmem:[#allocation10 + $0x18] sm:$0xff] }
 0x274   : > { %v1352_v60 = vadd.f32 %v1351_v57, %v1264_v47  ;;  %v1193_v57 = vld [vmem:[#allocation10 + $0x10] sm:$0xff] }
 0x275   : > { %v3773_v5 = vpack.c.bf16 %v1350_v56, %v1344_v55  ;;  %v1198_v55 = vld [vmem:[#allocation10 + $0x38] sm:$0xff]  ;;  %v3643_v56 = vpack.c.bf16 %v851_v51, %v847_v50  ;;  %v1188_v50 = vmul.f32 0.088388346, %v4096_v30 }
 0x276   : > { %v3789_v9 = vpack.c.bf16 %v1352_v60, %v1346_v59  ;;  %v1355_v10 = vpop.f32.mrb[8].mxu0  ;;  %v3677_v60 = vpack.c.bf16 %v1198_v55, %v1194_v54  ;;  %v3697_v54 = vpack.c.bf16 %v1238_v46, %v1234_v43  ;;  %v1233_v55 = vld [vmem:[#allocation10 + $0x150] sm:$0xff]  ;;  %v1486_v43 = vld [vmem:[#allocation11 + $0xf8] sm:$0xff] }
 0x277   : > { %v1357_v12 = vpop.f32.mrb[9].mxu0  ;;  %3774 = vmatprep.subr.bf16.mxu0 %v3773_v5  ;;  %v1356_v27 = vadd.f32 %v1355_v10, %v1260_v49  ;;  %v5074_v10 = vld [vmem:[%s5402_s20] sm:$0xf]  ;;  %s4470_s20 = scalar_lea.vmem %s4469_s25, 2048 }
 0x278   : > { %3776 = vmatpush3.bf16.xpose.msra.mxu0 %v3773_v5  ;;  %v1358_v31 = vadd.f32 %v1357_v12, %v1264_v47  ;;  %v3679_v5 = vpack.c.bf16 %v1197_v58, %v1193_v57  ;;  %v5079_v21 = vrot.slane %v5074_v10, %v5031_v11  ;;  %v5084_v23 = vrot.slane %v5074_v10, %v5059_v39  ;;  %v1242_v57 = vld [vmem:[#allocation10 + $0x198] sm:$0xff]  ;;  %p4472_p9 = scmp.lt.s32.totalorder %s4470_s20, %s4464_s1 }
 0x279   : > { %v1246_v58 = vld [vmem:[#allocation10 + $0x1b8] sm:$0xff] }
 0x27a   : > { %v1361_v26 = vpop.f32.mrb[10].mxu0  ;;  %p4473_p12 = por %p4472_p9, %p4471_p7 }
 0x27b   : > { %v1362_v28 = vadd.f32 %v1361_v26, %v1260_v49  ;;  %v1363_v29 = vpop.f32.mrb[11].mxu0  ;;  %v3641_v49 = vpack.c.bf16 %v852_v44, %v848_v41  ;;  %v3687_v26 = vpack.c.bf16 %v1213_v17, %v1209_v14 }
 0x27c   : > { %v1364_v35 = vadd.f32 %v1363_v29, %v1264_v47  ;;  %v4095_v47 = vadd.f32 %v5049_v42, %v5041_v22  ;;  %v3681_v22 = vpack.c.bf16 %v1206_v2, %v1202_v1  ;;  %v1201_v42 = vld [vmem:[#allocation10 + $0x50] sm:$0xff]  ;;  %p4474_p8 = pnand %p4473_p12, %p4467_p13 }
 0x27d   : > { %v3777_v38 = vpack.c.bf16 %v1362_v28, %v1356_v27  ;;  %3642 = vmatprep.subr.bf16.mxu1 %v3641_v49  ;;  %v3683_v12 = vpack.c.bf16 %v1205_v40, %v1201_v42  ;;  %v3689_v27 = vpack.c.bf16 %v1222_v20, %v1218_v19  ;;  %v1217_v28 = vld [vmem:[#allocation10 + $0xd0] sm:$0xff] }
 0x27e   : > { %v3793_v48 = vpack.c.bf16 %v1364_v35, %v1358_v31  ;;  %v1187_v59 = vmul.f32 0.088388346, %v4095_v47  ;;  %3644 = vmatpush1.bf16.msra.mxu1 %v3643_v56  ;;  %v1221_v29 = vld [vmem:[#allocation10 + $0xf0] sm:$0xff]  ;;  %v1226_v31 = vld [vmem:[#allocation10 + $0x118] sm:$0xff] }
 0x27f   : > { %3778 = vmatprep.subr.bf16.mxu0 %v3777_v38  ;;  %3678 = vmatprep.subr.bf16.mxu1 %v3677_v60  ;;  %v1230_v35 = vld [vmem:[#allocation10 + $0x138] sm:$0xff]  ;;  %v3691_v37 = vpack.c.bf16 %v1221_v29, %v1217_v28  ;;  %v1237_v56 = vld [vmem:[#allocation10 + $0x170] sm:$0xff]  ;;  %v3701_v60 = vpack.c.bf16 %v1246_v58, %v1242_v57 }
 0x280   : > { %3780 = vmatpush3.bf16.xpose.msra.mxu0 %v3777_v38  ;;  %v3693_v44 = vpack.c.bf16 %v1230_v35, %v1226_v31  ;;  %v1241_v1 = vld [vmem:[#allocation10 + $0x190] sm:$0xff]  ;;  %v1470_v28 = vld [vmem:[#allocation11 + $0x78] sm:$0xff] }
 0x281   : > { %3790 = vmatprep.subr.bf16.mxu0 %v3789_v9  ;;  %1171 = vmatmul.mubr.f32.vlgmr.msra.gmra.mrb[0].mxu1 %v4977_v16  ;;  %v1245_v2 = vld [vmem:[#allocation10 + $0x1b0] sm:$0xff] }
 0x282   : > { %3680 = vmatpush1.bf16.msra.mxu1 %v3679_v5  ;;  %1176 = vmatprep.mubr.f32.mxu1 %v4980_v18  ;;  %v1254_v5 = vld [vmem:[#allocation10 + $0x1f8] sm:$0xff]  ;;  %v1249_v40 = vld [vmem:[#allocation10 + $0x1d0] sm:$0xff] }
 0x283   : > { %3682 = vmatprep.subr.bf16.mxu1 %v3681_v22  ;;  %v3703_v22 = vpack.c.bf16 %v1245_v2, %v1241_v1  ;;  %v1502_v1 = vld [vmem:[#allocation11 + $0x178] sm:$0xff] }
 0x285   : > { %1177 = vmatmul.mubr.f32.gmra.mrb[2].mxu1 %v4985_v24 }
 0x286   : > { %3684 = vmatpush1.bf16.msra.mxu1 %v3683_v12  ;;  %1430 = vmatprep.mubr.f32.mxu1 %v4555_v32  ;;  %v1462_v12 = vld [vmem:[#allocation11 + $0x38] sm:$0xff] }
 0x287   : > { %3310 = vmatmul.mubr.f32.vlgmr.msra.gmra.mrb[20].mxu0 %v1187_v59  ;;  %v3699_v59 = vpack.c.bf16 %v1237_v56, %v1233_v55  ;;  %v1490_v55 = vld [vmem:[#allocation11 + $0x118] sm:$0xff] }
 0x288   : > { %3792 = vmatpush3.bf16.xpose.msra.mxu0 %v3789_v9  ;;  %3331 = vmatprep.mubr.f32.mxu0 %v1184_v4  ;;  %v3685_v9 = vpack.c.bf16 %v1214_v7, %v1210_v6  ;;  %v1250_v4 = vld [vmem:[#allocation10 + $0x1d8] sm:$0xff]  ;;  %v1253_v6 = vld [vmem:[#allocation10 + $0x1f0] sm:$0xff] }
 0x289   : > { %3794 = vmatprep.subr.bf16.mxu0 %v3793_v48  ;;  %v3705_v42 = vpack.c.bf16 %v1254_v5, %v1250_v4  ;;  %v1458_v7 = vld [vmem:[#allocation11 + $0x18] sm:$0xff]  ;;  %v3707_v17 = vpack.c.bf16 %v1253_v6, %v1249_v40  ;;  %v1497_v5 = vld [vmem:[#allocation11 + $0x150] sm:$0xff] }
 0x28a   : > { %3686 = vmatprep.subr.bf16.mxu1 %v3685_v9  ;;  %v3741_v20 = vpack.c.bf16 %v1462_v12, %v1458_v7  ;;  %v1494_v56 = vld [vmem:[#allocation11 + $0x138] sm:$0xff]  ;;  %v1505_v7 = vld [vmem:[#allocation11 + $0x190] sm:$0xff] }
 0x28b   : > { %3688 = vmatpush1.bf16.msra.mxu1 %v3687_v26  ;;  %v1461_v26 = vld [vmem:[#allocation11 + $0x30] sm:$0xff]  ;;  %v3757_v58 = vpack.c.bf16 %v1494_v56, %v1490_v55 }
 0x28c   : > { %3690 = vmatprep.subr.bf16.mxu1 %v3689_v27  ;;  %v1466_v27 = vld [vmem:[#allocation11 + $0x58] sm:$0xff]  ;;  %v1509_v12 = vld [vmem:[#allocation11 + $0x1b0] sm:$0xff] }
 0x28e   : > { %v1607_v16 = vpop.f32.mrb[12].mxu0 }
 0x28f   : > { %v1609_v18 = vpop.f32.mrb[13].mxu0  ;;  %v1608_v24 = vadd.f32 %v1607_v16, %v5079_v21  ;;  %3692 = vmatpush1.bf16.msra.mxu1 %v3691_v37  ;;  %v1457_v16 = vld [vmem:[#allocation11 + $0x10] sm:$0xff] }
 0x290   : > { %3796 = vmatpush3.bf16.xpose.msra.mxu0 %v3793_v48  ;;  %v1610_v36 = vadd.f32 %v1609_v18, %v5084_v23  ;;  %v1225_v48 = vld [vmem:[#allocation10 + $0x110] sm:$0xff]  ;;  %3694 = vmatprep.subr.bf16.mxu1 %v3693_v44  ;;  %v3743_v35 = vpack.c.bf16 %v1461_v26, %v1457_v16  ;;  %v1478_v44 = vld [vmem:[#allocation11 + $0xb8] sm:$0xff] }
 0x291   : > { %v3695_v52 = vpack.c.bf16 %v1229_v53, %v1225_v48  ;;  %v1469_v37 = vld [vmem:[#allocation11 + $0x70] sm:$0xff] }
 0x292   : > { %v1613_v45 = vpop.f32.mrb[14].mxu0 }
 0x293   : > { %v1614_v38 = vadd.f32 %v1613_v45, %v5079_v21  ;;  %v1615_v41 = vpop.f32.mrb[15].mxu0  ;;  %3696 = vmatpush1.bf16.msra.mxu1 %v3695_v52  ;;  %v1465_v45 = vld [vmem:[#allocation11 + $0x50] sm:$0xff] }
 0x294   : > { %v1616_v49 = vadd.f32 %v1615_v41, %v5084_v23  ;;  %3698 = vmatprep.subr.bf16.mxu1 %v3697_v54  ;;  %v1474_v41 = vld [vmem:[#allocation11 + $0x98] sm:$0xff]  ;;  %v3747_v53 = vpack.c.bf16 %v1469_v37, %v1465_v45  ;;  %v1481_v54 = vld [vmem:[#allocation11 + $0xd0] sm:$0xff] }
 0x295   : > { %v5092_v51 = vpack.c.bf16 %v1614_v38, %v1608_v24 }
 0x296   : > { %v5094_v47 = vpack.c.bf16 %v1616_v49, %v1610_v36  ;;  %v1619_v9 = vpop.f32.mrb[16].mxu0  ;;  %v3745_v36 = vpack.c.bf16 %v1470_v28, %v1466_v27  ;;  %v1473_v49 = vld [vmem:[#allocation11 + $0x90] sm:$0xff] }
 0x297   : > { %3332 = vmatmul.mubr.f32.vlgmr.msra.gmra.mrb[22].mxu0 %v1188_v50  ;;  %3700 = vmatpush1.bf16.msra.mxu1 %v3699_v59  ;;  %v1621_v14 = vpop.f32.mrb[17].mxu0  ;;  %v1620_v18 = vadd.f32 %v1619_v9, %v5079_v21  ;;  %v1482_v50 = vld [vmem:[#allocation11 + $0xd8] sm:$0xff]  ;;  %v1489_v59 = vld [vmem:[#allocation11 + $0x110] sm:$0xff] }
 0x298   : > { %3702 = vmatprep.subr.bf16.mxu1 %v3701_v60  ;;  %v1622_v19 = vadd.f32 %v1621_v14, %v5084_v23  ;;  %v3753_v52 = vpack.c.bf16 %v1486_v43, %v1482_v50  ;;  %v1498_v60 = vld [vmem:[#allocation11 + $0x158] sm:$0xff] }
 0x299   : > { %v3761_v4 = vpack.c.bf16 %v1502_v1, %v1498_v60  ;;  %v1514_v9 = vld [vmem:[#allocation11 + $0x1d8] sm:$0xff] }
 0x29a   : > { %v1625_v29 = vpop.f32.mrb[18].mxu0  ;;  %v1518_v14 = vld [vmem:[#allocation11 + $0x1f8] sm:$0xff] }
 0x29b   : > { %3704 = vmatpush1.bf16.msra.mxu1 %v3703_v22  ;;  %v1626_v30 = vadd.f32 %v1625_v29, %v5079_v21  ;;  %v1627_v31 = vpop.f32.mrb[19].mxu0  ;;  %v3749_v21 = vpack.c.bf16 %v1478_v44, %v1474_v41  ;;  %v1506_v22 = vld [vmem:[#allocation11 + $0x198] sm:$0xff] }
 0x29c   : > { %3706 = vmatprep.subr.bf16.mxu1 %v3705_v42  ;;  %v1628_v24 = vadd.f32 %v1627_v31, %v5084_v23  ;;  %v1477_v23 = vld [vmem:[#allocation11 + $0xb0] sm:$0xff]  ;;  %v1510_v42 = vld [vmem:[#allocation11 + $0x1b8] sm:$0xff] }
 0x29d   : > { %v5100_v38 = vpack.c.bf16 %v1626_v30, %v1620_v18  ;;  %v3751_v46 = vpack.c.bf16 %v1477_v23, %v1473_v49  ;;  %v3765_v6 = vpack.c.bf16 %v1510_v42, %v1506_v22  ;;  %v5164_v22 = vsub.s32 2, %v5028_v3 }
 0x29e   : > { %v5102_v48 = vpack.c.bf16 %v1628_v24, %v1622_v19  ;;  %v1513_v19 = vld [vmem:[#allocation11 + $0x1d0] sm:$0xff]  ;;  %v5167_v42 = vsub.s32 3, %v5028_v3 }
 0x29f   : > { %3708 = vmatpush1.bf16.msra.mxu1 %v3707_v17  ;;  %v3769_v17 = vpack.c.bf16 %v1518_v14, %v1514_v9  ;;  %v1532_v9 = vrot.slane %v5074_v10, %v5164_v22 }
 0x2a0   : > { %3742 = vmatprep.subr.bf16.mxu1 %v3741_v20  ;;  %v1517_v20 = vld [vmem:[#allocation11 + $0x1f0] sm:$0xff] }
 0x2a1   : > { %v3771_v16 = vpack.c.bf16 %v1517_v20, %v1513_v19 }
 0x2a2   : > { %1431 = vmatmul.mubr.f32.vlgmr.msra.gmra.mrb[4].mxu1 %v4990_v8  ;;  %v1485_v8 = vld [vmem:[#allocation11 + $0xf0] sm:$0xff] }
 0x2a3   : > { %3744 = vmatpush1.bf16.msra.mxu1 %v3743_v35  ;;  %1436 = vmatprep.mubr.f32.mxu1 %v4555_v32  ;;  %v3755_v57 = vpack.c.bf16 %v1485_v8, %v1481_v54 }
 0x2a4   : > { %3746 = vmatprep.subr.bf16.mxu1 %v3745_v36 }
 0x2a6   : > { %1437 = vmatmul.mubr.f32.gmra.mrb[6].mxu1 %v4995_v15  ;;  %v1493_v15 = vld [vmem:[#allocation11 + $0x130] sm:$0xff] }
 0x2a7   : > { %3748 = vmatpush1.bf16.msra.mxu1 %v3747_v53  ;;  %1442 = vmatprep.mubr.f32.mxu1 %v4555_v32  ;;  %v3759_v2 = vpack.c.bf16 %v1493_v15, %v1489_v59 }
 0x2a8   : > { %3750 = vmatprep.subr.bf16.mxu1 %v3749_v21 }
 0x2aa   : > { %1443 = vmatmul.mubr.f32.gmra.mrb[8].mxu1 %v5000_v25  ;;  %v1501_v25 = vld [vmem:[#allocation11 + $0x170] sm:$0xff] }
 0x2ab   : > { %3752 = vmatpush1.bf16.msra.mxu1 %v3751_v46  ;;  %1448 = vmatprep.mubr.f32.mxu1 %v4555_v32  ;;  %v3763_v40 = vpack.c.bf16 %v1501_v25, %v1497_v5 }
 0x2ac   : > { %3754 = vmatprep.subr.bf16.mxu1 %v3753_v52 }
 0x2ae   : > { %1449 = vmatmul.mubr.f32.gmra.mrb[10].mxu1 %v5005_v33  ;;  %v3767_v33 = vpack.c.bf16 %v1509_v12, %v1505_v7  ;;  %v1268_v7 = vrot.slane %v5056_v34, %v5164_v22  ;;  %v1272_v12 = vrot.slane %v5056_v34, %v5167_v42 }
 0x2af   : > { %3756 = vmatpush1.bf16.msra.mxu1 %v3755_v57  ;;  %1694 = vmatprep.mubr.f32.mxu1 %v4555_v32 }
 0x2b0   : > { %3758 = vmatprep.subr.bf16.mxu1 %v3757_v58 }
 0x2b3   : > { %3760 = vmatpush1.bf16.msra.mxu1 %v3759_v2 }
 0x2b4   : > { %3762 = vmatprep.subr.bf16.mxu1 %v3761_v4 }
 0x2b7   : > { %3764 = vmatpush1.bf16.msra.mxu1 %v3763_v40 }
 0x2b8   : > { %3766 = vmatprep.subr.bf16.mxu1 %v3765_v6 }
 0x2bb   : > { %3768 = vmatpush1.bf16.msra.mxu1 %v3767_v33  ;;  %v1536_v33 = vrot.slane %v5074_v10, %v5167_v42 }
 0x2bc   : > { %3770 = vmatprep.subr.bf16.mxu1 %v3769_v17 }
 0x2bf   : > { %3772 = vmatpush1.bf16.msra.mxu1 %v3771_v16 }
 0x2c0   : > { %3782 = vmatprep.subr.bf16.mxu1 %v5092_v51 }
 0x2c2   : > { %1695 = vmatmul.mubr.f32.vlgmr.msra.gmra.mrb[12].mxu1 %v5010_v61  ;;  %v5129_v61 = vld [vmem:[%s580_s18] ss:$0 sm:$0xff] }
 0x2c3   : > { %3784 = vmatpush3.bf16.msra.mxu1 %v5092_v51  ;;  %1700 = vmatprep.mubr.f32.mxu1 %v4555_v32 }
 0x2c4   : > { %3786 = vmatprep.subr.bf16.mxu1 %v5100_v38 }
 0x2c6   : > { %1701 = vmatmul.mubr.f32.gmra.mrb[14].mxu1 %v5015_v62 }
 0x2c7   : > { %3788 = vmatpush3.bf16.msra.mxu1 %v5100_v38  ;;  %1706 = vmatprep.mubr.f32.mxu1 %v4555_v32 }
 0x2c8   : > { %3798 = vmatprep.subr.bf16.mxu1 %v5094_v47 }
 0x2ca   : > { %1707 = vmatmul.mubr.f32.gmra.mrb[16].mxu1 %v5020_v63 }
 0x2cb   : > { %1712 = vmatprep.mubr.f32.mxu1 %v4555_v32 }
 0x2ce   : > { %1713 = vmatmul.mubr.f32.gmra.mrb[18].mxu1 %v5025_v0 }
 0x354   : > { %v5139_v35 = vpop.f32.mrb[0].mxu1 }
 0x355   : > { %v5141_v24 = vpop.f32.mrb[1].mxu1 }
 0x358   : > { %v5143_v36 = vpop.f32.mrb[2].mxu1 }
 0x359   : > { %v5145_v45 = vpop.f32.mrb[3].mxu1 }
 0x35a   : > { %v3311_v62 = vpop.f32.mrb[20].mxu0 }
 0x35b   : > { %v1792_v51 = vpop.f32.mrb[21].mxu0  ;;  %v1798_v18 = vadd.f32 %v3311_v62, %v5129_v61 }
 0x35c   : > { %v1793_v26 = vadd.f32 %v5129_v61, %v1792_v51 }
 0x35d   : > { %v1805_v32 = vsel %vm1801_vm0, %v1798_v18, -inf }
 0x35e   : > { %v1802_v63 = vsel %vm1801_vm0, %v1793_v26, -inf }
 0x35f   : > { %1803 = vmax.xlane.f32.xlu0 %v1802_v63 }
 0x363   : > { %1806 = vmax.xlane.f32.xlu0 %v1805_v32 }
 0x36a   : > { %v3333_v0 = vpop.f32.mrb[22].mxu0 }
 0x36b   : > { %v1971_v27 = vpop.f32.mrb[23].mxu0  ;;  %v1977_v29 = vadd.f32 %v3333_v0, %v5129_v61 }
 0x36c   : > { %v1972_v28 = vadd.f32 %v5129_v61, %v1971_v27 }
 0x36d   : > { %v1983_v31 = vsel %vm1801_vm0, %v1977_v29, -inf }
 0x36e   : > { %v1980_v30 = vsel %vm1801_vm0, %v1972_v28, -inf }
 0x36f   : > { %1981 = vmax.xlane.f32.xlu1 %v1980_v30 }
 0x373   : > { %1984 = vmax.xlane.f32.xlu1 %v1983_v31 }
 0x375   : > { %v1432_v60 = vpop.f32.mrb[4].mxu1 }
 0x376   : > { %v1434_v1 = vpop.f32.mrb[5].mxu1  ;;  %v1433_v19 = vadd.f32 %v1432_v60, %v1268_v7 }
 0x377   : > { %v1435_v20 = vadd.f32 %v1434_v1, %v1272_v12 }
 0x379   : > { %v1438_v2 = vpop.f32.mrb[6].mxu1 }
 0x37a   : > { %v1440_v4 = vpop.f32.mrb[7].mxu1  ;;  %v1439_v3 = vadd.f32 %v1438_v2, %v1268_v7 }
 0x37b   : > { %v1441_v16 = vadd.f32 %v1440_v4, %v1272_v12 }
 0x37c   : > { %v3805_v0 = vpack.c.bf16 %v1439_v3, %v1433_v19 }
 0x37d   : > { %v1444_v5 = vpop.f32.mrb[8].mxu1  ;;  %v5177_v34 = vpack.c.bf16 %v1441_v16, %v1435_v20 }
 0x37e   : > { %v1446_v25 = vpop.f32.mrb[9].mxu1  ;;  %v1445_v51 = vadd.f32 %v1444_v5, %v1268_v7 }
 0x381   : > { %v1450_v40 = vpop.f32.mrb[10].mxu1 }
 0x382   : > { %v1452_v6 = vpop.f32.mrb[11].mxu1 }
 0x383   : > { %v1453_v63 = vadd.f32 %v1452_v6, %v1272_v12 }
 0x395   : > { %v1696_v14 = vpop.f32.mrb[12].mxu1 }
 0x396   : > { %v1698_v17 = vpop.f32.mrb[13].mxu1  ;;  %v1697_v27 = vadd.f32 %v1696_v14, %v1532_v9 }
 0x399   : > { %v1702_v62 = vpop.f32.mrb[14].mxu1 }
 0x39a   : > { %v1704_v32 = vpop.f32.mrb[15].mxu1  ;;  %v1703_v10 = vadd.f32 %v1702_v62, %v1532_v9 }
 0x3ec   : > { %v1804_v37 = vpop.xlane.xlu0 %1803 }
 0x3ed   : > { %v1808_v38 = vsub.f32 %v1793_v26, %v1804_v37  ;;  %v1447_v26 = vadd.f32 %v1446_v25, %v1272_v12  ;;  %v1705_v37 = vadd.f32 %v1704_v32, %v1536_v33 }
 0x3ef   : > { %v1810_v41 = vmul.f32 1.442695, %v1808_v38  ;;  %v5179_v31 = vpack.c.bf16 %v1453_v63, %v1447_v26 }
 0x3f0   : > { %v1807_v44 = vpop.xlane.xlu0 %1806 }
 0x3f1   : > { %4229 = vpow2.f32 %v1810_v41  ;;  %v1809_v53 = vsub.f32 %v1798_v18, %v1807_v44  ;;  %v1451_v18 = vadd.f32 %v1450_v40, %v1268_v7  ;;  %v3813_v44 = vpack.c.bf16 %v1703_v10, %v1697_v27 }
 0x3f3   : > { %v1812_v21 = vmul.f32 1.442695, %v1809_v53  ;;  %v3809_v30 = vpack.c.bf16 %v1451_v18, %v1445_v51  ;;  %3814 = vmatprep.subr.bf16.mxu0 %v3813_v44 }
 0x3f4   : > { %3816 = vmatpush3.bf16.msra.mxu0 %v3813_v44 }
 0x3f5   : > { %4231 = vpow2.f32 %v1812_v21 }
 0x3fb   : > { %v5147_v49 = vpop.eup %4229 }
 0x3fc   : > { %v1982_v23 = vpop.xlane.xlu1 %1981  ;;  %v1814_v50 = vsel %vm1801_vm0, %v5147_v49, 0.0 }
 0x3fd   : > { %v1986_v43 = vsub.f32 %v1972_v28, %v1982_v23  ;;  %1815 = vadd.xlane.f32.xlu0 %v1814_v50  ;;  %v1699_v28 = vadd.f32 %v1698_v17, %v1536_v33 }
 0x3ff   : > { %v5151_v46 = vpop.eup %4231  ;;  %v1988_v52 = vmul.f32 1.442695, %v1986_v43  ;;  %v3829_v53 = vpack.c.bf16 %v1705_v37, %v1699_v28  ;;  %v4261_v28 = vld [vmem:[%s5400_s12] sm:$0xf] }
 0x400   : > { %v1985_v54 = vpop.xlane.xlu1 %1984  ;;  %v1817_v8 = vsel %vm1801_vm0, %v5151_v46, 0.0 }
 0x401   : > { %4233 = vpow2.f32 %v1988_v52  ;;  %v1987_v55 = vsub.f32 %v1977_v29, %v1985_v54  ;;  %1818 = vadd.xlane.f32.xlu1 %v1817_v8  ;;  %v1708_v29 = vpop.f32.mrb[16].mxu1 }
 0x402   : > { %v1709_v38 = vadd.f32 %v1708_v29, %v1532_v9  ;;  %v1710_v41 = vpop.f32.mrb[17].mxu1  ;;  %v870_v29 = vrot.slane %v4261_v28, %v5167_v42  ;;  %v2497_v28 = vld [vmem:[#allocation13 + $0x1d0] sm:$0xff] }
 0x403   : > { %v1990_v56 = vmul.f32 1.442695, %v1987_v55  ;;  %v1714_v21 = vpop.f32.mrb[18].mxu1  ;;  %v1711_v43 = vadd.f32 %v1710_v41, %v1536_v33 }
 0x404   : > { %v1715_v23 = vadd.f32 %v1714_v21, %v1532_v9  ;;  %v1716_v52 = vpop.f32.mrb[19].mxu1  ;;  %v4098_v10 = vadd.f32 %v5141_v24, %v870_v29  ;;  %v2446_v21 = vld [vmem:[#allocation13 + $0x38] sm:$0xff]  ;;  %v4100_v24 = vadd.f32 %v5145_v45, %v870_v29  ;;  %v2457_v45 = vld [vmem:[#allocation13 + $0x90] sm:$0xff] }
 0x405   : > { %4235 = vpow2.f32 %v1990_v56  ;;  %v1717_v54 = vadd.f32 %v1716_v52, %v1536_v33  ;;  %v2450_v52 = vld [vmem:[#allocation13 + $0x58] sm:$0xff]  ;;  %v2501_v29 = vld [vmem:[#allocation13 + $0x1f0] sm:$0xff] }
 0x406   : > { %v3817_v50 = vpack.c.bf16 %v1715_v23, %v1709_v38  ;;  %v1186_v44 = vmul.f32 0.088388346, %v4098_v10  ;;  %v2510_v10 = vld [vmem:[#allocation13 + $0x238] sm:$0xff] }
 0x407   : > { %v3833_v8 = vpack.c.bf16 %v1717_v54, %v1711_v43  ;;  %v2445_v43 = vld [vmem:[#allocation13 + $0x30] sm:$0xff]  ;;  %v2454_v54 = vld [vmem:[#allocation13 + $0x78] sm:$0xff] }
 0x408   : > { %3818 = vmatprep.subr.bf16.mxu0 %v3817_v50 }
 0x409   : > { %3820 = vmatpush3.bf16.msra.mxu0 %v3817_v50  ;;  %v2441_v50 = vld [vmem:[#allocation13 + $0x10] sm:$0xff] }
 0x40a   : > { %3822 = vmatprep.subr.bf16.mxu0 %v5177_v34 }
 0x40b   : > { %v5155_v57 = vpop.eup %4233 }
 0x40c   : > { %v1992_v58 = vsel %vm1801_vm0, %v5155_v57, 0.0 }
 0x40d   : > { %1993 = vadd.xlane.f32.xlu0 %v1992_v58 }
 0x40f   : > { %v5159_v59 = vpop.eup %4235 }
 0x410   : > { %v1995_v15 = vsel %vm1801_vm0, %v5159_v59, 0.0 }
 0x411   : > { %1996 = vadd.xlane.f32.xlu1 %v1995_v15 }
 0x48a   : > { %v1816_v55 = vpop.xlane.xlu0 %1815 }
 0x48b   : > { %4237 = vrcp.f32 %v1816_v55  ;;  %v1190_v55 = vmul.f32 0.088388346, %v4100_v24 }
 0x48e   : > { %v1819_v56 = vpop.xlane.xlu1 %1818 }
 0x48f   : > { %4239 = vrcp.f32 %v1819_v56  ;;  %v3969_v56 = vpack.c.bf16 %v2454_v54, %v2450_v52  ;;  %v2522_v52 = vld [vmem:[#allocation13 + $0x298] sm:$0xff] }
 0x490   : > { %v2526_v54 = vld [vmem:[#allocation13 + $0x2b8] sm:$0xff] }
 0x495   : > { %v4238_v58 = vpop.eup %4237 }
 0x496   : > { %v1821_v15 = vmul.f32 %v4238_v58, %v5147_v49  ;;  %v866_v49 = vrot.slane %v5036_v13, %v5164_v22  ;;  %v2449_v58 = vld [vmem:[#allocation13 + $0x50] sm:$0xff] }
 0x498   : > { %3320 = vmatprep.mubr.msk.f32.mxu1 %vm1801_vm0, %v1821_v15  ;;  %v2458_v15 = vld [vmem:[#allocation13 + $0x98] sm:$0xff] }
 0x499   : > { %v4240_v60 = vpop.eup %4239 }
 0x49a   : > { %v1823_v1 = vmul.f32 %v4240_v60, %v5151_v46  ;;  %v1994_v2 = vpop.xlane.xlu0 %1993  ;;  %v4097_v46 = vadd.f32 %v5139_v35, %v866_v49  ;;  %v2462_v60 = vld [vmem:[#allocation13 + $0xb8] sm:$0xff] }
 0x49b   : > { %4241 = vrcp.f32 %v1994_v2  ;;  %v2461_v2 = vld [vmem:[#allocation13 + $0xb0] sm:$0xff] }
 0x49c   : > { %3321 = vmatmul.mubr.msk.f32.vlgmr.msra.gmra.mrb[20].mxu1 %vm1801_vm0, %v1823_v1  ;;  %v1185_v6 = vmul.f32 0.088388346, %v4097_v46  ;;  %v2465_v46 = vld [vmem:[#allocation13 + $0xd0] sm:$0xff] }
 0x49d   : > { %3800 = vmatpush3.bf16.msra.mxu1 %v5094_v47 }
 0x49e   : > { %3802 = vmatprep.subr.bf16.mxu1 %v5102_v48  ;;  %v1997_v4 = vpop.xlane.xlu1 %1996 }
 0x49f   : > { %4243 = vrcp.f32 %v1997_v4  ;;  %v2466_v4 = vld [vmem:[#allocation13 + $0xd8] sm:$0xff] }
 0x4a1   : > { %3804 = vmatpush3.bf16.msra.mxu1 %v5102_v48  ;;  %v4099_v48 = vadd.f32 %v5143_v36, %v866_v49  ;;  %v2470_v49 = vld [vmem:[#allocation13 + $0xf8] sm:$0xff] }
 0x4a2   : > { %3806 = vmatprep.subr.bf16.mxu1 %v3805_v0 }
 0x4a3   : > { %v1189_v13 = vmul.f32 0.088388346, %v4099_v48 }
 0x4a5   : > { %v4242_v5 = vpop.eup %4241 }
 0x4a6   : > { %v1999_v25 = vmul.f32 %v4242_v5, %v5155_v57  ;;  %v3975_v5 = vpack.c.bf16 %v2461_v2, %v2457_v45  ;;  %v2533_v45 = vld [vmem:[#allocation13 + $0x2f0] sm:$0xff]  ;;  %v2538_v2 = vld [vmem:[#allocation13 + $0x318] sm:$0xff] }
 0x4a8   : > { %3342 = vmatprep.mubr.msk.f32.mxu1 %vm1801_vm0, %v1999_v25  ;;  %v3977_v25 = vpack.c.bf16 %v2470_v49, %v2466_v4  ;;  %v2542_v4 = vld [vmem:[#allocation13 + $0x338] sm:$0xff] }
 0x4a9   : > { %v4244_v40 = vpop.eup %4243 }
 0x4aa   : > { %v2001_v47 = vmul.f32 %v4244_v40, %v5159_v59  ;;  %v2469_v40 = vld [vmem:[#allocation13 + $0xf0] sm:$0xff] }
 0x4ab   : > { %v3979_v48 = vpack.c.bf16 %v2469_v40, %v2465_v46  ;;  %v2541_v46 = vld [vmem:[#allocation13 + $0x330] sm:$0xff]  ;;  %v2546_v40 = vld [vmem:[#allocation13 + $0x358] sm:$0xff] }
 0x4ac   : > { %3343 = vmatmul.mubr.msk.f32.vlgmr.msra.gmra.mrb[22].mxu1 %vm1801_vm0, %v2001_v47  ;;  %v2474_v47 = vld [vmem:[#allocation13 + $0x118] sm:$0xff] }
 0x4ad   : > { %3808 = vmatpush3.bf16.xpose.msra.mxu1 %v3805_v0  ;;  %3353 = vmatprep.mubr.f32.mxu1 %v1185_v6  ;;  %v2478_v6 = vld [vmem:[#allocation13 + $0x138] sm:$0xff] }
 0x4ae   : > { %3810 = vmatprep.subr.bf16.mxu1 %v3809_v30 }
 0x4b5   : > { %3812 = vmatpush3.bf16.xpose.msra.mxu1 %v3809_v30 }
 0x4b6   : > { %3830 = vmatprep.subr.bf16.mxu1 %v3829_v53 }
 0x4bc   : > { %3354 = vmatmul.mubr.f32.vlgmr.msra.gmra.mrb[24].mxu1 %v1189_v13  ;;  %v3981_v13 = vpack.c.bf16 %v2478_v6, %v2474_v47  ;;  %v2550_v47 = vld [vmem:[#allocation13 + $0x378] sm:$0xff] }
 0x4bd   : > { %3832 = vmatpush3.bf16.msra.mxu1 %v3829_v53  ;;  %v2442_v53 = vld [vmem:[#allocation13 + $0x18] sm:$0xff] }
 0x4be   : > { %3834 = vmatprep.subr.bf16.mxu1 %v3833_v8  ;;  %v3965_v23 = vpack.c.bf16 %v2446_v21, %v2442_v53  ;;  %v2514_v53 = vld [vmem:[#allocation13 + $0x258] sm:$0xff] }
 0x4bf   : > { %v2518_v21 = vld [vmem:[#allocation13 + $0x278] sm:$0xff] }
 0x4c0   : > { %v4001_v24 = vpack.c.bf16 %v2518_v21, %v2514_v53 }
 0x4c1   : > { %3836 = vmatpush3.bf16.msra.mxu1 %v3833_v8  ;;  %v3967_v8 = vpack.c.bf16 %v2445_v43, %v2441_v50  ;;  %v2513_v50 = vld [vmem:[#allocation13 + $0x250] sm:$0xff] }
 0x4c2   : > { %v2517_v43 = vld [vmem:[#allocation13 + $0x270] sm:$0xff] }
 0x56f   : > { %v5197_v35 = vpop.f32.mrb[20].mxu1 }
 0x570   : > { %v5199_v57 = vpop.f32.mrb[21].mxu1 }
 0x57f   : > { %v5201_v59 = vpop.f32.mrb[22].mxu1 }
 0x580   : > { %v5203_v7 = vpop.f32.mrb[23].mxu1 }
 0x58f   : > { %v3355_v12 = vpop.f32.mrb[24].mxu1 }
 0x590   : > { %v2155_v9 = vadd.f32 %v3355_v12, %v5129_v61  ;;  %v2149_v14 = vpop.f32.mrb[25].mxu1  ;;  %v2473_v12 = vld [vmem:[#allocation13 + $0x110] sm:$0xff] }
 0x591   : > { %v2150_v36 = vadd.f32 %v5129_v61, %v2149_v14  ;;  %v2482_v14 = vld [vmem:[#allocation13 + $0x158] sm:$0xff] }
 0x592   : > { %v2161_v33 = vsel %vm1801_vm0, %v2155_v9, -inf }
 0x593   : > { %2162 = vmax.xlane.f32.xlu1 %v2161_v33  ;;  %v2158_v17 = vsel %vm1801_vm0, %v2150_v36, -inf }
 0x594   : > { %2159 = vmax.xlane.f32.xlu0 %v2158_v17 }
 0x620   : > { %v2163_v19 = vpop.xlane.xlu1 %2162 }
 0x621   : > { %v2165_v20 = vsub.f32 %v2155_v9, %v2163_v19  ;;  %v2160_v3 = vpop.xlane.xlu0 %2159  ;;  %v2477_v9 = vld [vmem:[#allocation13 + $0x130] sm:$0xff] }
 0x622   : > { %v2164_v16 = vsub.f32 %v2150_v36, %v2160_v3  ;;  %v2486_v36 = vld [vmem:[#allocation13 + $0x178] sm:$0xff]  ;;  %v3983_v33 = vpack.c.bf16 %v2477_v9, %v2473_v12  ;;  %v2481_v19 = vld [vmem:[#allocation13 + $0x150] sm:$0xff] }
 0x623   : > { %v2168_v62 = vmul.f32 1.442695, %v2165_v20  ;;  %v3985_v17 = vpack.c.bf16 %v2486_v36, %v2482_v14  ;;  %v2485_v20 = vld [vmem:[#allocation13 + $0x170] sm:$0xff]  ;;  %v2490_v3 = vld [vmem:[#allocation13 + $0x198] sm:$0xff] }
 0x624   : > { %v2166_v51 = vmul.f32 1.442695, %v2164_v16  ;;  %v2494_v16 = vld [vmem:[#allocation13 + $0x1b8] sm:$0xff]  ;;  %v2549_v12 = vld [vmem:[#allocation13 + $0x370] sm:$0xff] }
 0x625   : > { %4245 = vpow2.f32 %v2168_v62  ;;  %v3987_v62 = vpack.c.bf16 %v2485_v20, %v2481_v19  ;;  %v2554_v9 = vld [vmem:[#allocation13 + $0x398] sm:$0xff]  ;;  %v2557_v19 = vld [vmem:[#allocation13 + $0x3b0] sm:$0xff] }
 0x626   : > { %4247 = vpow2.f32 %v2166_v51  ;;  %v3989_v51 = vpack.c.bf16 %v2494_v16, %v2490_v3  ;;  %v2558_v14 = vld [vmem:[#allocation13 + $0x3b8] sm:$0xff] }
 0x627   : > { %v2562_v20 = vld [vmem:[#allocation13 + $0x3d8] sm:$0xff] }
 0x628   : > { %v2566_v3 = vld [vmem:[#allocation13 + $0x3f8] sm:$0xff] }
 0x62f   : > { %v4246_v26 = vpop.eup %4245 }
 0x630   : > { %v4248_v18 = vpop.eup %4247  ;;  %v2173_v63 = vsel %vm1801_vm0, %v4246_v26, 0.0 }
 0x631   : > { %2174 = vadd.xlane.f32.xlu1 %v2173_v63  ;;  %v2170_v32 = vsel %vm1801_vm0, %v4248_v18, 0.0  ;;  %v2498_v63 = vld [vmem:[#allocation13 + $0x1d8] sm:$0xff] }
 0x632   : > { %2171 = vadd.xlane.f32.xlu0 %v2170_v32  ;;  %v2502_v32 = vld [vmem:[#allocation13 + $0x1f8] sm:$0xff] }
 0x6be   : > { %v2175_v0 = vpop.xlane.xlu1 %2174 }
 0x6bf   : > { %4249 = vrcp.f32 %v2175_v0  ;;  %v2172_v27 = vpop.xlane.xlu0 %2171 }
 0x6c0   : > { %4251 = vrcp.f32 %v2172_v27  ;;  %v3993_v27 = vpack.c.bf16 %v2502_v32, %v2498_v63 }
 0x6c9   : > { %v4250_v30 = vpop.eup %4249 }
 0x6ca   : > { %v4252_v37 = vpop.eup %4251  ;;  %v2179_v41 = vmul.f32 %v4250_v30, %v4246_v26  ;;  %v2489_v26 = vld [vmem:[#allocation13 + $0x190] sm:$0xff]  ;;  %v2506_v30 = vld [vmem:[#allocation13 + $0x218] sm:$0xff] }
 0x6cb   : > { %v2177_v38 = vmul.f32 %v4252_v37, %v4248_v18  ;;  %v2493_v18 = vld [vmem:[#allocation13 + $0x1b0] sm:$0xff]  ;;  %v3995_v37 = vpack.c.bf16 %v2501_v29, %v2497_v28 }
 0x6cc   : > { %v3991_v0 = vpack.c.bf16 %v2493_v18, %v2489_v26  ;;  %v2565_v26 = vld [vmem:[#allocation13 + $0x3f0] sm:$0xff] }
 0x6cd   : > { %3364 = vmatprep.mubr.msk.f32.mxu0 %vm1801_vm0, %v2177_v38  ;;  %v3997_v38 = vpack.c.bf16 %v2510_v10, %v2506_v30 }
 0x6ce   : > { %3365 = vmatmul.mubr.msk.f32.vlgmr.msra.gmra.mrb[24].mxu0 %vm1801_vm0, %v2179_v41  ;;  %v2505_v41 = vld [vmem:[#allocation13 + $0x210] sm:$0xff] }
 0x6cf   : > { %3824 = vmatpush3.bf16.xpose.msra.mxu0 %v5177_v34  ;;  %3375 = vmatprep.mubr.f32.mxu0 %v1186_v44  ;;  %v2453_v34 = vld [vmem:[#allocation13 + $0x70] sm:$0xff] }
 0x6d0   : > { %3826 = vmatprep.subr.bf16.mxu0 %v5179_v31  ;;  %v3971_v1 = vpack.c.bf16 %v2453_v34, %v2449_v58  ;;  %v2509_v44 = vld [vmem:[#allocation13 + $0x230] sm:$0xff]  ;;  %v2530_v34 = vld [vmem:[#allocation13 + $0x2d8] sm:$0xff] }
 0x6d1   : > { %v2525_v58 = vld [vmem:[#allocation13 + $0x2b0] sm:$0xff] }
 0x6d7   : > { %3828 = vmatpush3.bf16.xpose.msra.mxu0 %v5179_v31  ;;  %v3973_v31 = vpack.c.bf16 %v2462_v60, %v2458_v15  ;;  %v2534_v15 = vld [vmem:[#allocation13 + $0x2f8] sm:$0xff] }
 0x6d8   : > { %3966 = vmatprep.subr.bf16.mxu0 %v3965_v23  ;;  %v3999_v23 = vpack.c.bf16 %v2509_v44, %v2505_v41 }
 0x6de   : > { %3376 = vmatmul.mubr.f32.vlgmr.msra.gmra.mrb[26].mxu0 %v1190_v55  ;;  %v4005_v55 = vpack.c.bf16 %v2526_v54, %v2522_v52  ;;  %v2444_v52 = vld [vmem:[#allocation13 + $0x28] sm:$0xff] }
 0x6df   : > { %3968 = vmatpush1.bf16.msra.mxu0 %v3967_v8  ;;  %2935 = vmatprep.mubr.f32.mxu0 %v5203_v7  ;;  %v4003_v8 = vpack.c.bf16 %v2517_v43, %v2513_v50  ;;  %v2440_v43 = vld [vmem:[#allocation13 + $0x8] sm:$0xff] }
 0x6e0   : > { %3970 = vmatprep.subr.bf16.mxu0 %v3969_v56  ;;  %v2521_v56 = vld [vmem:[#allocation13 + $0x290] sm:$0xff]  ;;  %v3837_v54 = vpack.c.bf16 %v2444_v52, %v2440_v43 }
 0x6e1   : > { %v4007_v60 = vpack.c.bf16 %v2525_v58, %v2521_v56  ;;  %v2569_v58 = vld [vmem:[#allocation13 + $0x410] sm:$0xff] }
 0x6e2   : > { %3838 = vmatprep.subr.bf16.mxu1 %v3837_v54  ;;  %v2633_v54 = vld [vmem:[#allocation13 + $0x610] sm:$0xff] }
 0x6e3   : > { %3972 = vmatpush1.bf16.msra.mxu0 %v3971_v1  ;;  %v4009_v1 = vpack.c.bf16 %v2534_v15, %v2530_v34  ;;  %v2573_v34 = vld [vmem:[#allocation13 + $0x430] sm:$0xff] }
 0x6e4   : > { %3974 = vmatprep.subr.bf16.mxu0 %v3973_v31  ;;  %v2529_v31 = vld [vmem:[#allocation13 + $0x2d0] sm:$0xff]  ;;  %v4031_v15 = vpack.c.bf16 %v2573_v34, %v2569_v58 }
 0x6e5   : > { %v4011_v49 = vpack.c.bf16 %v2533_v45, %v2529_v31  ;;  %v2577_v45 = vld [vmem:[#allocation13 + $0x450] sm:$0xff] }
 0x6e7   : > { %3976 = vmatpush1.bf16.msra.mxu0 %v3975_v5  ;;  %v4013_v5 = vpack.c.bf16 %v2542_v4, %v2538_v2  ;;  %v2581_v2 = vld [vmem:[#allocation13 + $0x470] sm:$0xff] }
 0x6e8   : > { %3978 = vmatprep.subr.bf16.mxu0 %v3977_v25  ;;  %v2537_v25 = vld [vmem:[#allocation13 + $0x310] sm:$0xff]  ;;  %v4035_v4 = vpack.c.bf16 %v2581_v2, %v2577_v45 }
 0x6e9   : > { %v4015_v6 = vpack.c.bf16 %v2541_v46, %v2537_v25  ;;  %v2585_v46 = vld [vmem:[#allocation13 + $0x490] sm:$0xff] }
 0x6eb   : > { %3980 = vmatpush1.bf16.msra.mxu0 %v3979_v48  ;;  %v4017_v48 = vpack.c.bf16 %v2550_v47, %v2546_v40  ;;  %v2589_v40 = vld [vmem:[#allocation13 + $0x4b0] sm:$0xff]  ;;  %v2594_v47 = vld [vmem:[#allocation13 + $0x4d8] sm:$0xff] }
 0x6ec   : > { %3982 = vmatprep.subr.bf16.mxu0 %v3981_v13  ;;  %v2545_v13 = vld [vmem:[#allocation13 + $0x350] sm:$0xff] }
 0x6ed   : > { %v4019_v36 = vpack.c.bf16 %v2549_v12, %v2545_v13  ;;  %v2593_v12 = vld [vmem:[#allocation13 + $0x4d0] sm:$0xff] }
 0x6ef   : > { %3984 = vmatpush1.bf16.msra.mxu0 %v3983_v33  ;;  %v4021_v33 = vpack.c.bf16 %v2558_v14, %v2554_v9  ;;  %v2597_v9 = vld [vmem:[#allocation13 + $0x4f0] sm:$0xff]  ;;  %v2602_v14 = vld [vmem:[#allocation13 + $0x518] sm:$0xff] }
 0x6f0   : > { %3986 = vmatprep.subr.bf16.mxu0 %v3985_v17  ;;  %v2553_v17 = vld [vmem:[#allocation13 + $0x390] sm:$0xff] }
 0x6f1   : > { %v4023_v16 = vpack.c.bf16 %v2557_v19, %v2553_v17  ;;  %v2601_v19 = vld [vmem:[#allocation13 + $0x510] sm:$0xff] }
 0x6f3   : > { %3988 = vmatpush1.bf16.msra.mxu0 %v3987_v62  ;;  %v4025_v62 = vpack.c.bf16 %v2566_v3, %v2562_v20  ;;  %v2605_v20 = vld [vmem:[#allocation13 + $0x530] sm:$0xff]  ;;  %v2610_v3 = vld [vmem:[#allocation13 + $0x558] sm:$0xff] }
 0x6f4   : > { %3990 = vmatprep.subr.bf16.mxu0 %v3989_v51  ;;  %v2561_v51 = vld [vmem:[#allocation13 + $0x3d0] sm:$0xff] }
 0x6f5   : > { %v4027_v18 = vpack.c.bf16 %v2565_v26, %v2561_v51  ;;  %v2609_v26 = vld [vmem:[#allocation13 + $0x550] sm:$0xff] }
 0x6f7   : > { %3992 = vmatpush1.bf16.msra.mxu0 %v3991_v0 }
 0x6f8   : > { %3994 = vmatprep.subr.bf16.mxu0 %v3993_v27 }
 0x6fb   : > { %3996 = vmatpush1.bf16.msra.mxu0 %v3995_v37 }
 0x6fc   : > { %3998 = vmatprep.subr.bf16.mxu0 %v3997_v38 }
 0x6ff   : > { %4000 = vmatpush1.bf16.msra.mxu0 %v3999_v23 }
 0x700   : > { %4002 = vmatprep.subr.bf16.mxu0 %v4001_v24 }
 0x703   : > { %4004 = vmatpush1.bf16.msra.mxu0 %v4003_v8  ;;  %v2570_v8 = vld [vmem:[#allocation13 + $0x418] sm:$0xff] }
 0x704   : > { %4006 = vmatprep.subr.bf16.mxu0 %v4005_v55  ;;  %v2574_v55 = vld [vmem:[#allocation13 + $0x438] sm:$0xff] }
 0x705   : > { %v4029_v56 = vpack.c.bf16 %v2574_v55, %v2570_v8  ;;  %v2637_v8 = vld [vmem:[#allocation13 + $0x630] sm:$0xff]  ;;  %v2642_v55 = vld [vmem:[#allocation13 + $0x658] sm:$0xff] }
 0x706   : > { %v4063_v58 = vpack.c.bf16 %v2637_v8, %v2633_v54  ;;  %v2447_v54 = vld [vmem:[#allocation13 + $0x40] sm:$0xff] }
 0x707   : > { %4008 = vmatpush1.bf16.msra.mxu0 %v4007_v60  ;;  %v2578_v60 = vld [vmem:[#allocation13 + $0x458] sm:$0xff]  ;;  %v2451_v8 = vld [vmem:[#allocation13 + $0x60] sm:$0xff] }
 0x708   : > { %4010 = vmatprep.subr.bf16.mxu0 %v4009_v1  ;;  %v2582_v1 = vld [vmem:[#allocation13 + $0x478] sm:$0xff] }
 0x709   : > { %v4033_v31 = vpack.c.bf16 %v2582_v1, %v2578_v60  ;;  %v2645_v60 = vld [vmem:[#allocation13 + $0x670] sm:$0xff]  ;;  %v2650_v1 = vld [vmem:[#allocation13 + $0x698] sm:$0xff] }
 0x70b   : > { %4012 = vmatpush1.bf16.msra.mxu0 %v4011_v49  ;;  %v2586_v49 = vld [vmem:[#allocation13 + $0x498] sm:$0xff] }
 0x70c   : > { %4014 = vmatprep.subr.bf16.mxu0 %v4013_v5  ;;  %v2590_v5 = vld [vmem:[#allocation13 + $0x4b8] sm:$0xff] }
 0x70d   : > { %v4037_v25 = vpack.c.bf16 %v2590_v5, %v2586_v49  ;;  %v2653_v49 = vld [vmem:[#allocation13 + $0x6b0] sm:$0xff]  ;;  %v2658_v5 = vld [vmem:[#allocation13 + $0x6d8] sm:$0xff] }
 0x70f   : > { %4016 = vmatpush1.bf16.msra.mxu0 %v4015_v6  ;;  %v4039_v6 = vpack.c.bf16 %v2589_v40, %v2585_v46 }
 0x710   : > { %4018 = vmatprep.subr.bf16.mxu0 %v4017_v48  ;;  %v2598_v48 = vld [vmem:[#allocation13 + $0x4f8] sm:$0xff] }
 0x711   : > { %v4041_v13 = vpack.c.bf16 %v2598_v48, %v2594_v47  ;;  %v2657_v47 = vld [vmem:[#allocation13 + $0x6d0] sm:$0xff]  ;;  %v2666_v48 = vld [vmem:[#allocation13 + $0x718] sm:$0xff] }
 0x713   : > { %4020 = vmatpush1.bf16.msra.mxu0 %v4019_v36  ;;  %v2606_v36 = vld [vmem:[#allocation13 + $0x538] sm:$0xff] }
 0x714   : > { %4022 = vmatprep.subr.bf16.mxu0 %v4021_v33  ;;  %v4043_v33 = vpack.c.bf16 %v2597_v9, %v2593_v12  ;;  %v4045_v17 = vpack.c.bf16 %v2606_v36, %v2602_v14 }
 0x717   : > { %4024 = vmatpush1.bf16.msra.mxu0 %v4023_v16  ;;  %v2614_v16 = vld [vmem:[#allocation13 + $0x578] sm:$0xff] }
 0x718   : > { %4026 = vmatprep.subr.bf16.mxu0 %v4025_v62  ;;  %v4047_v62 = vpack.c.bf16 %v2605_v20, %v2601_v19  ;;  %v4049_v51 = vpack.c.bf16 %v2614_v16, %v2610_v3  ;;  %v2674_v19 = vld [vmem:[#allocation13 + $0x758] sm:$0xff] }
 0x719   : > { %v2678_v20 = vld [vmem:[#allocation13 + $0x778] sm:$0xff] }
 0x71a   : > { %v4081_v16 = vpack.c.bf16 %v2678_v20, %v2674_v19  ;;  %v2487_v20 = vld [vmem:[#allocation13 + $0x180] sm:$0xff] }
 0x71b   : > { %4028 = vmatpush1.bf16.msra.mxu0 %v4027_v18  ;;  %v2613_v18 = vld [vmem:[#allocation13 + $0x570] sm:$0xff] }
 0x71c   : > { %4030 = vmatprep.subr.bf16.mxu0 %v4029_v56  ;;  %v2646_v56 = vld [vmem:[#allocation13 + $0x678] sm:$0xff] }
 0x71d   : > { %v4065_v34 = vpack.c.bf16 %v2646_v56, %v2642_v55  ;;  %v2456_v56 = vld [vmem:[#allocation13 + $0x88] sm:$0xff] }
 0x71e   : > { %2936 = vmatmul.mubr.f32.vlgmr.msra.gmra.mrb[28].mxu0 %v5199_v57 }
 0x71f   : > { %2941 = vmatprep.mubr.f32.mxu0 %v5201_v59  ;;  %4032 = vmatpush1.bf16.msra.mxu0 %v4031_v15  ;;  %v2641_v15 = vld [vmem:[#allocation13 + $0x650] sm:$0xff] }
 0x720   : > { %4034 = vmatprep.subr.bf16.mxu0 %v4033_v31  ;;  %v2654_v31 = vld [vmem:[#allocation13 + $0x6b8] sm:$0xff]  ;;  %v4067_v45 = vpack.c.bf16 %v2645_v60, %v2641_v15  ;;  %v2455_v60 = vld [vmem:[#allocation13 + $0x80] sm:$0xff] }
 0x721   : > { %v4069_v2 = vpack.c.bf16 %v2654_v31, %v2650_v1  ;;  %v2464_v1 = vld [vmem:[#allocation13 + $0xc8] sm:$0xff] }
 0x722   : > { %2942 = vmatmul.mubr.f32.gmra.mrb[30].mxu0 %v5197_v35  ;;  %v2468_v31 = vld [vmem:[#allocation13 + $0xe8] sm:$0xff] }
 0x723   : > { %4036 = vmatpush1.bf16.msra.mxu0 %v4035_v4  ;;  %v2649_v4 = vld [vmem:[#allocation13 + $0x690] sm:$0xff] }
 0x724   : > { %4038 = vmatprep.subr.bf16.mxu0 %v4037_v25  ;;  %v2662_v25 = vld [vmem:[#allocation13 + $0x6f8] sm:$0xff]  ;;  %v4071_v46 = vpack.c.bf16 %v2653_v49, %v2649_v4  ;;  %v2463_v4 = vld [vmem:[#allocation13 + $0xc0] sm:$0xff] }
 0x725   : > { %v4073_v40 = vpack.c.bf16 %v2662_v25, %v2658_v5  ;;  %v2467_v49 = vld [vmem:[#allocation13 + $0xe0] sm:$0xff]  ;;  %v2472_v5 = vld [vmem:[#allocation13 + $0x108] sm:$0xff] }
 0x726   : > { %v2476_v25 = vld [vmem:[#allocation13 + $0x128] sm:$0xff] }
 0x727   : > { %4040 = vmatpush1.bf16.msra.mxu0 %v4039_v6  ;;  %v2661_v6 = vld [vmem:[#allocation13 + $0x6f0] sm:$0xff] }
 0x728   : > { %4042 = vmatprep.subr.bf16.mxu0 %v4041_v13  ;;  %v2670_v13 = vld [vmem:[#allocation13 + $0x738] sm:$0xff]  ;;  %v4075_v14 = vpack.c.bf16 %v2661_v6, %v2657_v47  ;;  %v2475_v47 = vld [vmem:[#allocation13 + $0x120] sm:$0xff]  ;;  %v2480_v6 = vld [vmem:[#allocation13 + $0x148] sm:$0xff] }
 0x729   : > { %v4077_v36 = vpack.c.bf16 %v2670_v13, %v2666_v48  ;;  %v2484_v48 = vld [vmem:[#allocation13 + $0x168] sm:$0xff] }
 0x72b   : > { %4044 = vmatpush1.bf16.msra.mxu0 %v4043_v33  ;;  %v2665_v33 = vld [vmem:[#allocation13 + $0x710] sm:$0xff] }
 0x72c   : > { %4046 = vmatprep.subr.bf16.mxu0 %v4045_v17  ;;  %v2669_v17 = vld [vmem:[#allocation13 + $0x730] sm:$0xff] }
 0x72d   : > { %v4079_v3 = vpack.c.bf16 %v2669_v17, %v2665_v33  ;;  %v2492_v33 = vld [vmem:[#allocation13 + $0x1a8] sm:$0xff] }
 0x72f   : > { %4048 = vmatpush1.bf16.msra.mxu0 %v4047_v62  ;;  %v2673_v62 = vld [vmem:[#allocation13 + $0x750] sm:$0xff] }
 0x730   : > { %4050 = vmatprep.subr.bf16.mxu0 %v4049_v51  ;;  %v2677_v51 = vld [vmem:[#allocation13 + $0x770] sm:$0xff] }
 0x7a1   : > { %v5226_v63 = vpop.f32.mrb[24].mxu0 }
 0x7a2   : > { %v5228_v32 = vpop.f32.mrb[25].mxu0 }
 0x7b1   : > { %v3377_v0 = vpop.f32.mrb[26].mxu0 }
 0x7b2   : > { %v2333_v27 = vadd.f32 %v3377_v0, %v5129_v61  ;;  %v2327_v28 = vpop.f32.mrb[27].mxu0  ;;  %v2618_v0 = vld [vmem:[#allocation13 + $0x598] sm:$0xff] }
 0x7b3   : > { %v2328_v29 = vadd.f32 %v5129_v61, %v2327_v28  ;;  %v4051_v28 = vpack.c.bf16 %v2613_v18, %v2609_v26  ;;  %v2682_v26 = vld [vmem:[#allocation13 + $0x798] sm:$0xff] }
 0x7b4   : > { %v2339_v30 = vsel %vm1801_vm0, %v2333_v27, -inf  ;;  %v2686_v18 = vld [vmem:[#allocation13 + $0x7b8] sm:$0xff] }
 0x7b5   : > { %2340 = vmax.xlane.f32.xlu1 %v2339_v30  ;;  %v2336_v10 = vsel %vm1801_vm0, %v2328_v29, -inf  ;;  %v2617_v30 = vld [vmem:[#allocation13 + $0x590] sm:$0xff]  ;;  %4052 = vmatpush1.bf16.msra.mxu0 %v4051_v28  ;;  %v2443_v28 = vld [vmem:[#allocation13 + $0x20] sm:$0xff] }
 0x7b6   : > { %2337 = vmax.xlane.f32.xlu0 %v2336_v10  ;;  %v2621_v10 = vld [vmem:[#allocation13 + $0x5b0] sm:$0xff] }
 0x842   : > { %v2341_v37 = vpop.xlane.xlu1 %2340 }
 0x843   : > { %v2343_v38 = vsub.f32 %v2333_v27, %v2341_v37  ;;  %v2338_v41 = vpop.xlane.xlu0 %2337  ;;  %v2622_v27 = vld [vmem:[#allocation13 + $0x5b8] sm:$0xff] }
 0x844   : > { %v2342_v44 = vsub.f32 %v2328_v29, %v2338_v41  ;;  %v4053_v29 = vpack.c.bf16 %v2622_v27, %v2618_v0  ;;  %v2626_v37 = vld [vmem:[#allocation13 + $0x5d8] sm:$0xff]  ;;  %v4055_v41 = vpack.c.bf16 %v2621_v10, %v2617_v30  ;;  %v4083_v0 = vpack.c.bf16 %v2677_v51, %v2673_v62  ;;  %v2439_v27 = vld [vmem:[#allocation13] sm:$0xff]  ;;  %v2500_v62 = vld [vmem:[#allocation13 + $0x1e8] sm:$0xff] }
 0x845   : > { %v2346_v53 = vmul.f32 1.442695, %v2343_v38  ;;  %v2630_v38 = vld [vmem:[#allocation13 + $0x5f8] sm:$0xff]  ;;  %v4085_v30 = vpack.c.bf16 %v2686_v18, %v2682_v26  ;;  %v2495_v18 = vld [vmem:[#allocation13 + $0x1c0] sm:$0xff] }
 0x846   : > { %v2344_v21 = vmul.f32 1.442695, %v2342_v44  ;;  %4054 = vmatprep.subr.bf16.mxu0 %v4053_v29  ;;  %v4057_v44 = vpack.c.bf16 %v2630_v38, %v2626_v37  ;;  %v2448_v29 = vld [vmem:[#allocation13 + $0x48] sm:$0xff]  ;;  %v2681_v38 = vld [vmem:[#allocation13 + $0x790] sm:$0xff] }
 0x847   : > { %4253 = vpow2.f32 %v2346_v53  ;;  %v2625_v53 = vld [vmem:[#allocation13 + $0x5d0] sm:$0xff]  ;;  %4056 = vmatpush1.bf16.msra.mxu0 %v4055_v41  ;;  %v2452_v37 = vld [vmem:[#allocation13 + $0x68] sm:$0xff] }
 0x848   : > { %4255 = vpow2.f32 %v2344_v21  ;;  %v2629_v21 = vld [vmem:[#allocation13 + $0x5f0] sm:$0xff]  ;;  %4058 = vmatprep.subr.bf16.mxu0 %v4057_v44 }
 0x849   : > { %v4059_v43 = vpack.c.bf16 %v2629_v21, %v2625_v53  ;;  %v2685_v41 = vld [vmem:[#allocation13 + $0x7b0] sm:$0xff]  ;;  %v2690_v53 = vld [vmem:[#allocation13 + $0x7d8] sm:$0xff] }
 0x84a   : > { %v2694_v21 = vld [vmem:[#allocation13 + $0x7f8] sm:$0xff]  ;;  %v4087_v55 = vpack.c.bf16 %v2685_v41, %v2681_v38  ;;  %v2512_v38 = vld [vmem:[#allocation13 + $0x248] sm:$0xff] }
 0x84b   : > { %4060 = vmatpush1.bf16.msra.mxu0 %v4059_v43  ;;  %v2516_v41 = vld [vmem:[#allocation13 + $0x268] sm:$0xff] }
 0x851   : > { %v5234_v23 = vpop.eup %4253 }
 0x852   : > { %v5236_v24 = vpop.eup %4255  ;;  %v2351_v61 = vsel %vm1801_vm0, %v5234_v23, 0.0 }
 0x853   : > { %2352 = vadd.xlane.f32.xlu1 %v2351_v61  ;;  %v2348_v50 = vsel %vm1801_vm0, %v5236_v24, 0.0  ;;  %v2634_v61 = vld [vmem:[#allocation13 + $0x618] sm:$0xff] }
 0x854   : > { %2349 = vadd.xlane.f32.xlu0 %v2348_v50  ;;  %v2638_v50 = vld [vmem:[#allocation13 + $0x638] sm:$0xff] }
 0x855   : > { %v4061_v52 = vpack.c.bf16 %v2638_v50, %v2634_v61  ;;  %v3839_v50 = vpack.c.bf16 %v2443_v28, %v2439_v27  ;;  %v2504_v27 = vld [vmem:[#allocation13 + $0x208] sm:$0xff] }
 0x856   : > { %v2508_v28 = vld [vmem:[#allocation13 + $0x228] sm:$0xff] }
 0x857   : > { %4062 = vmatprep.subr.bf16.mxu0 %v4061_v52  ;;  %v3841_v52 = vpack.c.bf16 %v2452_v37, %v2448_v29  ;;  %v2507_v37 = vld [vmem:[#allocation13 + $0x220] sm:$0xff] }
 0x858   : > { %4064 = vmatpush1.bf16.msra.mxu0 %v4063_v58  ;;  %v2460_v58 = vld [vmem:[#allocation13 + $0xa8] sm:$0xff] }
 0x859   : > { %4066 = vmatprep.subr.bf16.mxu0 %v4065_v34  ;;  %v4089_v34 = vpack.c.bf16 %v2694_v21, %v2690_v53  ;;  %v3845_v15 = vpack.c.bf16 %v2460_v58, %v2456_v56  ;;  %v3873_v53 = vpack.c.bf16 %v2516_v41, %v2512_v38  ;;  %v2511_v21 = vld [vmem:[#allocation13 + $0x240] sm:$0xff]  ;;  %v2528_v56 = vld [vmem:[#allocation13 + $0x2c8] sm:$0xff] }
 0x85a   : > { %v2532_v58 = vld [vmem:[#allocation13 + $0x2e8] sm:$0xff] }
 0x85b   : > { %v2588_v38 = vld [vmem:[#allocation13 + $0x4a8] sm:$0xff] }
 0x85c   : > { %4068 = vmatpush1.bf16.msra.mxu0 %v4067_v45 }
 0x85d   : > { %4070 = vmatprep.subr.bf16.mxu0 %v4069_v2  ;;  %v3849_v2 = vpack.c.bf16 %v2468_v31, %v2464_v1  ;;  %v2540_v1 = vld [vmem:[#allocation13 + $0x328] sm:$0xff] }
 0x860   : > { %4072 = vmatpush1.bf16.msra.mxu0 %v4071_v46  ;;  %v3851_v46 = vpack.c.bf16 %v2467_v49, %v2463_v4  ;;  %v2539_v4 = vld [vmem:[#allocation13 + $0x320] sm:$0xff]  ;;  %v2544_v49 = vld [vmem:[#allocation13 + $0x348] sm:$0xff] }
 0x861   : > { %4074 = vmatprep.subr.bf16.mxu0 %v4073_v40  ;;  %v2471_v40 = vld [vmem:[#allocation13 + $0x100] sm:$0xff] }
 0x862   : > { %v3855_v13 = vpack.c.bf16 %v2475_v47, %v2471_v40  ;;  %v2547_v40 = vld [vmem:[#allocation13 + $0x360] sm:$0xff]  ;;  %v2552_v47 = vld [vmem:[#allocation13 + $0x388] sm:$0xff] }
 0x864   : > { %4076 = vmatpush1.bf16.msra.mxu0 %v4075_v14  ;;  %v2483_v14 = vld [vmem:[#allocation13 + $0x160] sm:$0xff] }
 0x865   : > { %4078 = vmatprep.subr.bf16.mxu0 %v4077_v36  ;;  %v2488_v36 = vld [vmem:[#allocation13 + $0x188] sm:$0xff] }
 0x866   : > { %v3861_v19 = vpack.c.bf16 %v2492_v33, %v2488_v36  ;;  %v2564_v36 = vld [vmem:[#allocation13 + $0x3e8] sm:$0xff] }
 0x868   : > { %4080 = vmatpush1.bf16.msra.mxu0 %v4079_v3  ;;  %v2491_v3 = vld [vmem:[#allocation13 + $0x1a0] sm:$0xff] }
 0x869   : > { %4082 = vmatprep.subr.bf16.mxu0 %v4081_v16  ;;  %v2496_v16 = vld [vmem:[#allocation13 + $0x1c8] sm:$0xff]  ;;  %v3863_v51 = vpack.c.bf16 %v2491_v3, %v2487_v20  ;;  %v2563_v20 = vld [vmem:[#allocation13 + $0x3e0] sm:$0xff] }
 0x86a   : > { %v3865_v26 = vpack.c.bf16 %v2500_v62, %v2496_v16  ;;  %v2568_v3 = vld [vmem:[#allocation13 + $0x408] sm:$0xff] }
 0x86b   : > { %v2572_v16 = vld [vmem:[#allocation13 + $0x428] sm:$0xff] }
 0x86c   : > { %4084 = vmatpush1.bf16.msra.mxu0 %v4083_v0  ;;  %v2499_v0 = vld [vmem:[#allocation13 + $0x1e0] sm:$0xff] }
 0x86d   : > { %4086 = vmatprep.subr.bf16.mxu0 %v4085_v30  ;;  %v3867_v29 = vpack.c.bf16 %v2499_v0, %v2495_v18  ;;  %v3869_v30 = vpack.c.bf16 %v2508_v28, %v2504_v27  ;;  %v2571_v18 = vld [vmem:[#allocation13 + $0x420] sm:$0xff]  ;;  %v2576_v0 = vld [vmem:[#allocation13 + $0x448] sm:$0xff] }
 0x86e   : > { %v2580_v27 = vld [vmem:[#allocation13 + $0x468] sm:$0xff] }
 0x870   : > { %4088 = vmatpush1.bf16.msra.mxu0 %v4087_v55  ;;  %v2523_v55 = vld [vmem:[#allocation13 + $0x2a0] sm:$0xff] }
 0x871   : > { %4090 = vmatprep.subr.bf16.mxu0 %v4089_v34 }
 0x8e0   : > { %v2353_v12 = vpop.xlane.xlu1 %2352 }
 0x8e1   : > { %4257 = vrcp.f32 %v2353_v12  ;;  %v2350_v9 = vpop.xlane.xlu0 %2349  ;;  %v3857_v12 = vpack.c.bf16 %v2484_v48, %v2480_v6  ;;  %v2556_v6 = vld [vmem:[#allocation13 + $0x3a8] sm:$0xff] }
 0x8e2   : > { %4259 = vrcp.f32 %v2350_v9  ;;  %v2479_v9 = vld [vmem:[#allocation13 + $0x140] sm:$0xff] }
 0x8e3   : > { %v3859_v17 = vpack.c.bf16 %v2483_v14, %v2479_v9  ;;  %v2555_v9 = vld [vmem:[#allocation13 + $0x3a0] sm:$0xff]  ;;  %v2560_v14 = vld [vmem:[#allocation13 + $0x3c8] sm:$0xff] }
 0x8eb   : > { %v4258_v10 = vpop.eup %4257 }
 0x8ec   : > { %v4260_v44 = vpop.eup %4259  ;;  %v2357_v43 = vmul.f32 %v4258_v10, %v5234_v23  ;;  %v2459_v23 = vld [vmem:[#allocation13 + $0xa0] sm:$0xff] }
 0x8ed   : > { %v2355_v61 = vmul.f32 %v4260_v44, %v5236_v24  ;;  %v3843_v24 = vpack.c.bf16 %v2451_v8, %v2447_v54  ;;  %v3847_v45 = vpack.c.bf16 %v2459_v23, %v2455_v60  ;;  %v2503_v10 = vld [vmem:[#allocation13 + $0x200] sm:$0xff]  ;;  %v2536_v23 = vld [vmem:[#allocation13 + $0x308] sm:$0xff] }
 0x8ee   : > { %v3871_v44 = vpack.c.bf16 %v2507_v37, %v2503_v10  ;;  %v2519_v8 = vld [vmem:[#allocation13 + $0x280] sm:$0xff]  ;;  %v2584_v37 = vld [vmem:[#allocation13 + $0x488] sm:$0xff] }
 0x8ef   : > { %3386 = vmatprep.mubr.msk.f32.mxu1 %vm1801_vm0, %v2355_v61  ;;  %v2515_v61 = vld [vmem:[#allocation13 + $0x260] sm:$0xff]  ;;  %v3879_v34 = vpack.c.bf16 %v2523_v55, %v2519_v8  ;;  %v2600_v55 = vld [vmem:[#allocation13 + $0x508] sm:$0xff] }
 0x8f0   : > { %3387 = vmatmul.mubr.msk.f32.vlgmr.msra.gmra.mrb[26].mxu1 %vm1801_vm0, %v2357_v43  ;;  %v2524_v43 = vld [vmem:[#allocation13 + $0x2a8] sm:$0xff]  ;;  %v2531_v60 = vld [vmem:[#allocation13 + $0x2e0] sm:$0xff] }
 0x8f1   : > { %3840 = vmatpush1.bf16.msra.mxu1 %v3839_v50  ;;  %2781 = vmatprep.mubr.f32.mxu1 %v5203_v7  ;;  %v3853_v7 = vpack.c.bf16 %v2476_v25, %v2472_v5  ;;  %v2520_v50 = vld [vmem:[#allocation13 + $0x288] sm:$0xff]  ;;  %v2579_v10 = vld [vmem:[#allocation13 + $0x460] sm:$0xff] }
 0x8f2   : > { %3842 = vmatprep.subr.bf16.mxu1 %v3841_v52  ;;  %v3875_v52 = vpack.c.bf16 %v2515_v61, %v2511_v21  ;;  %v3877_v54 = vpack.c.bf16 %v2524_v43, %v2520_v50  ;;  %v2548_v5 = vld [vmem:[#allocation13 + $0x368] sm:$0xff]  ;;  %v2587_v21 = vld [vmem:[#allocation13 + $0x4a0] sm:$0xff] }
 0x8f3   : > { %v2592_v61 = vld [vmem:[#allocation13 + $0x4c8] sm:$0xff]  ;;  %v2595_v8 = vld [vmem:[#allocation13 + $0x4e0] sm:$0xff] }
 0x8f4   : > { %v2596_v50 = vld [vmem:[#allocation13 + $0x4e8] sm:$0xff] }
 0x8f5   : > { %3844 = vmatpush1.bf16.msra.mxu1 %v3843_v24  ;;  %v3881_v24 = vpack.c.bf16 %v2532_v58, %v2528_v56  ;;  %v2599_v58 = vld [vmem:[#allocation13 + $0x500] sm:$0xff] }
 0x8f6   : > { %3846 = vmatprep.subr.bf16.mxu1 %v3845_v15  ;;  %v2527_v15 = vld [vmem:[#allocation13 + $0x2c0] sm:$0xff] }
 0x8f7   : > { %v3883_v31 = vpack.c.bf16 %v2531_v60, %v2527_v15  ;;  %v2612_v15 = vld [vmem:[#allocation13 + $0x568] sm:$0xff] }
 0x8f9   : > { %3848 = vmatpush1.bf16.msra.mxu1 %v3847_v45  ;;  %v3885_v45 = vpack.c.bf16 %v2540_v1, %v2536_v23  ;;  %v2607_v23 = vld [vmem:[#allocation13 + $0x540] sm:$0xff] }
 0x8fa   : > { %3850 = vmatprep.subr.bf16.mxu1 %v3849_v2  ;;  %v2535_v2 = vld [vmem:[#allocation13 + $0x300] sm:$0xff] }
 0x8fb   : > { %v3887_v25 = vpack.c.bf16 %v2539_v4, %v2535_v2  ;;  %v2611_v1 = vld [vmem:[#allocation13 + $0x560] sm:$0xff]  ;;  %v2689_v4 = vld [vmem:[#allocation13 + $0x7d0] sm:$0xff] }
 0x8fc   : > { %v3923_v2 = vpack.c.bf16 %v2611_v1, %v2607_v23  ;;  %v2683_v23 = vld [vmem:[#allocation13 + $0x7a0] sm:$0xff]  ;;  %v2688_v1 = vld [vmem:[#allocation13 + $0x7c8] sm:$0xff] }
 0x8fd   : > { %3852 = vmatpush1.bf16.msra.mxu1 %v3851_v46  ;;  %v3889_v46 = vpack.c.bf16 %v2548_v5, %v2544_v49  ;;  %v2615_v5 = vld [vmem:[#allocation13 + $0x580] sm:$0xff] }
 0x8fe   : > { %3854 = vmatprep.subr.bf16.mxu1 %v3853_v7  ;;  %v2543_v7 = vld [vmem:[#allocation13 + $0x340] sm:$0xff] }
 0x8ff   : > { %v3891_v48 = vpack.c.bf16 %v2547_v40, %v2543_v7  ;;  %v2624_v7 = vld [vmem:[#allocation13 + $0x5c8] sm:$0xff] }
 0x900   : > { %v2628_v40 = vld [vmem:[#allocation13 + $0x5e8] sm:$0xff] }
 0x901   : > { %3856 = vmatpush1.bf16.msra.mxu1 %v3855_v13  ;;  %v3893_v13 = vpack.c.bf16 %v2556_v6, %v2552_v47 }
 0x902   : > { %3858 = vmatprep.subr.bf16.mxu1 %v3857_v12  ;;  %v2551_v12 = vld [vmem:[#allocation13 + $0x380] sm:$0xff] }
 0x903   : > { %v3895_v33 = vpack.c.bf16 %v2555_v9, %v2551_v12  ;;  %v2627_v12 = vld [vmem:[#allocation13 + $0x5e0] sm:$0xff]  ;;  %v2632_v9 = vld [vmem:[#allocation13 + $0x608] sm:$0xff] }
 0x905   : > { %3860 = vmatpush1.bf16.msra.mxu1 %v3859_v17  ;;  %v3897_v17 = vpack.c.bf16 %v2564_v36, %v2560_v14  ;;  %v2636_v14 = vld [vmem:[#allocation13 + $0x628] sm:$0xff] }
 0x906   : > { %3862 = vmatprep.subr.bf16.mxu1 %v3861_v19  ;;  %v2559_v19 = vld [vmem:[#allocation13 + $0x3c0] sm:$0xff] }
 0x907   : > { %v3899_v62 = vpack.c.bf16 %v2563_v20, %v2559_v19  ;;  %v2635_v19 = vld [vmem:[#allocation13 + $0x620] sm:$0xff]  ;;  %v2640_v20 = vld [vmem:[#allocation13 + $0x648] sm:$0xff] }
 0x909   : > { %3864 = vmatpush1.bf16.msra.mxu1 %v3863_v51  ;;  %v3901_v51 = vpack.c.bf16 %v2572_v16, %v2568_v3  ;;  %v2644_v3 = vld [vmem:[#allocation13 + $0x668] sm:$0xff] }
 0x90a   : > { %3866 = vmatprep.subr.bf16.mxu1 %v3865_v26  ;;  %v2567_v26 = vld [vmem:[#allocation13 + $0x400] sm:$0xff] }
 0x90b   : > { %v3903_v28 = vpack.c.bf16 %v2571_v18, %v2567_v26  ;;  %v2643_v26 = vld [vmem:[#allocation13 + $0x660] sm:$0xff]  ;;  %v2648_v18 = vld [vmem:[#allocation13 + $0x688] sm:$0xff] }
 0x90d   : > { %3868 = vmatpush1.bf16.msra.mxu1 %v3867_v29  ;;  %v3905_v29 = vpack.c.bf16 %v2580_v27, %v2576_v0  ;;  %v2652_v0 = vld [vmem:[#allocation13 + $0x6a8] sm:$0xff] }
 0x90e   : > { %3870 = vmatprep.subr.bf16.mxu1 %v3869_v30  ;;  %v2575_v30 = vld [vmem:[#allocation13 + $0x440] sm:$0xff] }
 0x90f   : > { %v3907_v41 = vpack.c.bf16 %v2579_v10, %v2575_v30  ;;  %v2651_v30 = vld [vmem:[#allocation13 + $0x6a0] sm:$0xff]  ;;  %v2656_v10 = vld [vmem:[#allocation13 + $0x6c8] sm:$0xff] }
 0x911   : > { %3872 = vmatpush1.bf16.msra.mxu1 %v3871_v44  ;;  %v3909_v44 = vpack.c.bf16 %v2588_v38, %v2584_v37  ;;  %v2660_v37 = vld [vmem:[#allocation13 + $0x6e8] sm:$0xff] }
 0x912   : > { %3874 = vmatprep.subr.bf16.mxu1 %v3873_v53  ;;  %v2583_v53 = vld [vmem:[#allocation13 + $0x480] sm:$0xff] }
 0x913   : > { %v3911_v43 = vpack.c.bf16 %v2587_v21, %v2583_v53  ;;  %v2659_v53 = vld [vmem:[#allocation13 + $0x6e0] sm:$0xff]  ;;  %v2664_v21 = vld [vmem:[#allocation13 + $0x708] sm:$0xff] }
 0x915   : > { %3876 = vmatpush1.bf16.msra.mxu1 %v3875_v52  ;;  %v3913_v52 = vpack.c.bf16 %v2596_v50, %v2592_v61  ;;  %v2668_v61 = vld [vmem:[#allocation13 + $0x728] sm:$0xff] }
 0x916   : > { %3878 = vmatprep.subr.bf16.mxu1 %v3877_v54  ;;  %v2591_v54 = vld [vmem:[#allocation13 + $0x4c0] sm:$0xff] }
 0x919   : > { %3880 = vmatpush1.bf16.msra.mxu1 %v3879_v34  ;;  %v2603_v34 = vld [vmem:[#allocation13 + $0x520] sm:$0xff] }
 0x91a   : > { %3882 = vmatprep.subr.bf16.mxu1 %v3881_v24  ;;  %v2608_v24 = vld [vmem:[#allocation13 + $0x548] sm:$0xff]  ;;  %v3919_v60 = vpack.c.bf16 %v2603_v34, %v2599_v58  ;;  %v2675_v58 = vld [vmem:[#allocation13 + $0x760] sm:$0xff] }
 0x91b   : > { %v2680_v34 = vld [vmem:[#allocation13 + $0x788] sm:$0xff] }
 0x91d   : > { %3884 = vmatpush1.bf16.msra.mxu1 %v3883_v31  ;;  %v2616_v31 = vld [vmem:[#allocation13 + $0x588] sm:$0xff] }
 0x91e   : > { %3886 = vmatprep.subr.bf16.mxu1 %v3885_v45  ;;  %v2620_v45 = vld [vmem:[#allocation13 + $0x5a8] sm:$0xff] }
 0x91f   : > { %v3925_v49 = vpack.c.bf16 %v2620_v45, %v2616_v31  ;;  %v2692_v31 = vld [vmem:[#allocation13 + $0x7e8] sm:$0xff] }
 0x921   : > { %3888 = vmatpush1.bf16.msra.mxu1 %v3887_v25  ;;  %v2619_v25 = vld [vmem:[#allocation13 + $0x5a0] sm:$0xff] }
 0x922   : > { %3890 = vmatprep.subr.bf16.mxu1 %v3889_v46  ;;  %v2693_v46 = vld [vmem:[#allocation13 + $0x7f0] sm:$0xff]  ;;  %v3927_v6 = vpack.c.bf16 %v2619_v25, %v2615_v5 }
 0x923   : > { %v4091_v47 = vpack.c.bf16 %v2693_v46, %v2689_v4  ;;  %v2687_v4 = vld [vmem:[#allocation13 + $0x7c0] sm:$0xff] }
 0x925   : > { %3892 = vmatpush1.bf16.msra.mxu1 %v3891_v48  ;;  %4092 = vmatpush1.bf16.msra.mxu0 %v4091_v47  ;;  %v3929_v48 = vpack.c.bf16 %v2628_v40, %v2624_v7  ;;  %v2695_v7 = vld [vmem:[%s5404_s29] sm:$0xf] }
 0x926   : > { %3894 = vmatprep.subr.bf16.mxu1 %v3893_v13  ;;  %v2623_v13 = vld [vmem:[#allocation13 + $0x5c0] sm:$0xff]  ;;  %v2700_v40 = vrot.slane %v2695_v7, %v5031_v11  ;;  %v2708_v47 = vrot.slane %v2695_v7, %v5164_v22 }
 0x927   : > { %v3931_v36 = vpack.c.bf16 %v2627_v12, %v2623_v13 }
 0x929   : > { %3896 = vmatpush1.bf16.msra.mxu1 %v3895_v33  ;;  %v3933_v33 = vpack.c.bf16 %v2636_v14, %v2632_v9 }
 0x92a   : > { %3898 = vmatprep.subr.bf16.mxu1 %v3897_v17  ;;  %v2631_v17 = vld [vmem:[#allocation13 + $0x600] sm:$0xff] }
 0x92b   : > { %v3935_v16 = vpack.c.bf16 %v2635_v19, %v2631_v17 }
 0x92d   : > { %3900 = vmatpush1.bf16.msra.mxu1 %v3899_v62  ;;  %v3937_v62 = vpack.c.bf16 %v2644_v3, %v2640_v20 }
 0x92e   : > { %3902 = vmatprep.subr.bf16.mxu1 %v3901_v51  ;;  %v2639_v51 = vld [vmem:[#allocation13 + $0x640] sm:$0xff] }
 0x92f   : > { %v3939_v27 = vpack.c.bf16 %v2643_v26, %v2639_v51 }
 0x930   : > { %2782 = vmatmul.mubr.f32.vlgmr.msra.gmra.mrb[28].mxu1 %v5199_v57  ;;  %v2604_v57 = vld [vmem:[#allocation13 + $0x528] sm:$0xff] }
 0x931   : > { %2787 = vmatprep.mubr.f32.mxu1 %v5201_v59  ;;  %3904 = vmatpush1.bf16.msra.mxu1 %v3903_v28  ;;  %v3915_v59 = vpack.c.bf16 %v2595_v8, %v2591_v54  ;;  %v3917_v56 = vpack.c.bf16 %v2604_v57, %v2600_v55  ;;  %v3941_v28 = vpack.c.bf16 %v2652_v0, %v2648_v18  ;;  %v2667_v54 = vld [vmem:[#allocation13 + $0x720] sm:$0xff]  ;;  %v2672_v8 = vld [vmem:[#allocation13 + $0x748] sm:$0xff] }
 0x932   : > { %3906 = vmatprep.subr.bf16.mxu1 %v3905_v29  ;;  %v2647_v29 = vld [vmem:[#allocation13 + $0x680] sm:$0xff]  ;;  %v2676_v55 = vld [vmem:[#allocation13 + $0x768] sm:$0xff] }
 0x933   : > { %v3943_v38 = vpack.c.bf16 %v2651_v30, %v2647_v29 }
 0x934   : > { %2788 = vmatmul.mubr.f32.gmra.mrb[30].mxu1 %v5197_v35  ;;  %v3921_v35 = vpack.c.bf16 %v2612_v15, %v2608_v24  ;;  %v2684_v24 = vld [vmem:[#allocation13 + $0x7a8] sm:$0xff] }
 0x935   : > { %3908 = vmatpush1.bf16.msra.mxu1 %v3907_v41  ;;  %v3945_v41 = vpack.c.bf16 %v2660_v37, %v2656_v10 }
 0x936   : > { %3910 = vmatprep.subr.bf16.mxu1 %v3909_v44  ;;  %v2655_v44 = vld [vmem:[#allocation13 + $0x6c0] sm:$0xff] }
 0x937   : > { %v3947_v50 = vpack.c.bf16 %v2659_v53, %v2655_v44 }
 0x939   : > { %3912 = vmatpush1.bf16.msra.mxu1 %v3911_v43  ;;  %v3949_v43 = vpack.c.bf16 %v2668_v61, %v2664_v21 }
 0x93a   : > { %3914 = vmatprep.subr.bf16.mxu1 %v3913_v52  ;;  %v2663_v52 = vld [vmem:[#allocation13 + $0x700] sm:$0xff] }
 0x93b   : > { %v3951_v57 = vpack.c.bf16 %v2667_v54, %v2663_v52 }
 0x93d   : > { %3916 = vmatpush1.bf16.msra.mxu1 %v3915_v59  ;;  %v3953_v59 = vpack.c.bf16 %v2676_v55, %v2672_v8 }
 0x93e   : > { %3918 = vmatprep.subr.bf16.mxu1 %v3917_v56  ;;  %v2671_v56 = vld [vmem:[#allocation13 + $0x740] sm:$0xff] }
 0x93f   : > { %v3955_v15 = vpack.c.bf16 %v2675_v58, %v2671_v56 }
 0x941   : > { %3920 = vmatpush1.bf16.msra.mxu1 %v3919_v60  ;;  %v3957_v60 = vpack.c.bf16 %v2684_v24, %v2680_v34 }
 0x942   : > { %3922 = vmatprep.subr.bf16.mxu1 %v3921_v35  ;;  %v2679_v35 = vld [vmem:[#allocation13 + $0x780] sm:$0xff] }
 0x943   : > { %v3959_v45 = vpack.c.bf16 %v2683_v23, %v2679_v35 }
 0x945   : > { %3924 = vmatpush1.bf16.msra.mxu1 %v3923_v2  ;;  %v3961_v2 = vpack.c.bf16 %v2692_v31, %v2688_v1 }
 0x946   : > { %3926 = vmatprep.subr.bf16.mxu1 %v3925_v49  ;;  %v2691_v49 = vld [vmem:[#allocation13 + $0x7e0] sm:$0xff] }
 0x947   : > { %v3963_v5 = vpack.c.bf16 %v2691_v49, %v2687_v4 }
 0x949   : > { %3928 = vmatpush1.bf16.msra.mxu1 %v3927_v6  ;;  %v2704_v6 = vrot.slane %v2695_v7, %v5059_v39 }
 0x94a   : > { %3930 = vmatprep.subr.bf16.mxu1 %v3929_v48  ;;  %v2712_v48 = vrot.slane %v2695_v7, %v5167_v42 }
 0x94d   : > { %3932 = vmatpush1.bf16.msra.mxu1 %v3931_v36 }
 0x94e   : > { %3934 = vmatprep.subr.bf16.mxu1 %v3933_v33 }
 0x951   : > { %3936 = vmatpush1.bf16.msra.mxu1 %v3935_v16 }
 0x952   : > { %3938 = vmatprep.subr.bf16.mxu1 %v3937_v62 }
 0x955   : > { %3940 = vmatpush1.bf16.msra.mxu1 %v3939_v27 }
 0x956   : > { %3942 = vmatprep.subr.bf16.mxu1 %v3941_v28 }
 0x959   : > { %3944 = vmatpush1.bf16.msra.mxu1 %v3943_v38 }
 0x95a   : > { %3946 = vmatprep.subr.bf16.mxu1 %v3945_v41 }
 0x95d   : > { %3948 = vmatpush1.bf16.msra.mxu1 %v3947_v50 }
 0x95e   : > { %3950 = vmatprep.subr.bf16.mxu1 %v3949_v43 }
 0x961   : > { %3952 = vmatpush1.bf16.msra.mxu1 %v3951_v57 }
 0x962   : > { %3954 = vmatprep.subr.bf16.mxu1 %v3953_v59 }
 0x965   : > { %3956 = vmatpush1.bf16.msra.mxu1 %v3955_v15 }
 0x966   : > { %3958 = vmatprep.subr.bf16.mxu1 %v3957_v60 }
 0x969   : > { %3960 = vmatpush1.bf16.msra.mxu1 %v3959_v45 }
 0x96a   : > { %3962 = vmatprep.subr.bf16.mxu1 %v3961_v2 }
 0x96d   : > { %3964 = vmatpush1.bf16.msra.mxu1 %v3963_v5 }
 0x9c3   : > { %v3388_v25 = vpop.f32.mrb[26].mxu1 }
 0x9c4   : > { %v2430_v46 = vpop.f32.mrb[27].mxu1 }
 0x9c5   : > { %2858 = vmatprep.mubr.f32.mxu1 %v2430_v46  ;;  %3012 = vmatprep.mubr.f32.mxu0 %v2430_v46 }
 0x9c6   : > { %2859 = vmatmul.mubr.f32.vlgmr.msra.gmra.mrb[28].mxu1 %v5228_v32  ;;  %3013 = vmatmul.mubr.f32.vlgmr.msra.gmra.mrb[28].mxu0 %v5228_v32 }
 0x9c7   : > { %2864 = vmatprep.mubr.f32.mxu1 %v3388_v25  ;;  %3018 = vmatprep.mubr.f32.mxu0 %v3388_v25 }
 0x9ca   : > { %2865 = vmatmul.mubr.f32.gmra.mrb[30].mxu1 %v5226_v63  ;;  %3019 = vmatmul.mubr.f32.gmra.mrb[30].mxu0 %v5226_v63 }
 0xa99   : > { %v2860_v32 = vpop.f32.mrb[28].mxu1  ;;  %v3014_v13 = vpop.f32.mrb[28].mxu0 }
 0xa9a   : > { %v4101_v12 = vadd.f32 %v2860_v32, %v2700_v40  ;;  %v4105_v63 = vadd.f32 %v3014_v13, %v2708_v47  ;;  %v2862_v9 = vpop.f32.mrb[29].mxu1  ;;  %v3016_v14 = vpop.f32.mrb[29].mxu0 }
 0xa9b   : > { %v4102_v36 = vadd.f32 %v2862_v9, %v2704_v6  ;;  %v4106_v33 = vadd.f32 %v3016_v14, %v2712_v48 }
 0xa9c   : > { %3025 = vst [vmem:[%s577_s17] sm:$0xff] %v4101_v12  ;;  %3027 = vst [vmem:[%s577_s17 + $0x10] sm:$0xff] %v4105_v63 }
 0xa9d   : > { %3026 = vst [vmem:[%s577_s17 + $0x8] sm:$0xff] %v4102_v36  ;;  %3028 = vst [vmem:[%s577_s17 + $0x18] sm:$0xff] %v4106_v33  ;;  %v2866_v11 = vpop.f32.mrb[30].mxu1  ;;  %v3020_v39 = vpop.f32.mrb[30].mxu0 }
 0xa9e   : > { %v4103_v22 = vadd.f32 %v2866_v11, %v2700_v40  ;;  %v4107_v42 = vadd.f32 %v3020_v39, %v2708_v47  ;;  %v2868_v17 = vpop.f32.mrb[31].mxu1  ;;  %v3022_v19 = vpop.f32.mrb[31].mxu0 }
 0xa9f   : > { %v4104_v20 = vadd.f32 %v2868_v17, %v2704_v6  ;;  %v4108_v3 = vadd.f32 %v3022_v19, %v2712_v48 }
 0xaa0   : > { %3029 = vst [vmem:[%s577_s17 + $0x20] sm:$0xff] %v4103_v22  ;;  %3031 = vst [vmem:[%s577_s17 + $0x30] sm:$0xff] %v4107_v42 }
 0xaa1   : > { %3030 = vst [vmem:[%s577_s17 + $0x28] sm:$0xff] %v4104_v20  ;;  %3032 = vst [vmem:[%s577_s17 + $0x38] sm:$0xff] %v4108_v3 }
 0xaa2   : > { %4477 = shalt.err (!%p4474_p8)
}
 0xaa3   : > { %s4478_s8 = scalar_lea.hbm %s5269_s4, 1024  ;;  %s4482_s9 = scalar_lea.hbm %s5406_s3, 2048 }
 0xaa4   : > { %p4479_p10 = scmp.ne.s32.totalorder %s5269_s4, %s4478_s8  ;;  %p4483_p6 = scmp.lt.u32.totalorder %s5269_s4, %s5406_s3 }
 0xaa5   : > { %p4484_p3 = scmp.lt.u32.totalorder %s4482_s9, %s4478_s8  ;;  %p4486_p2 = scmp.lt.u32.totalorder %s4478_s8, %s5269_s4 }
 0xaa6   : > { %p4480_p4 = pnand %p4479_p10, %p5407_p0 }
 0xaa7   : > { %p4485_p5 = por %p4484_p3, %p4483_p6 }
 0xaa8   : > { %p4481_p1 = pneg %p4480_p4 }
 0xaa9   : > { %p4487_p11 = por %p4486_p2, %p4485_p5 }
 0xaab   : > { %p4488_p13 = pnand %p4487_p11, %p4481_p1 }
 0xaad   : > { %4491 = shalt.err (!%p4488_p13)
}
 0xaae   : > { %s4557_s5 = smov 512   ;;  %s4558_s13 = smov 32  }
 0xaaf   : > { %4147 = dma.vmem_to_hbm [thread:$0]  (%p5407_p0), %s5264_s19, 1024, %s5269_s4, %s3034_s14, %s4557_s5, %s4557_s5, %s4558_s13  }
 0xab0 PF: > { %s5408_s23 = sld [smem:[#allocation20_spill]]  ;;  %s5409_s29 = sld [smem:[#allocation23_spill]] }
 0xab1   : > { %p5411_p9 = scmp.ge.s32.totalorder %s4542_s24, 2 }
 0xab6   : > { %s3062_s17 = sand.u32 1, %s5408_s23   ;;  %p5410_p7 = scmp.ne.s32.totalorder %s5409_s29, 0 }
 0xab7   : > { %s3063_s16 = scalar_lea.sflag [#allocation4], %s3062_s17 }
 0xab8   : > { %p4173_p12 = pnand %p5411_p9, %p5410_p7 }
 0xaba   : > { %4525 = dma.done.wait (!%p4173_p12), %s3063_s16, 1024  }
 0xabb   : > { %4527 = vsyncadd (!%p4173_p12), %s3063_s16, 4294966272  ;;  %s5412_s24 = sld [smem:[#allocation24_spill]]  ;;  %s5413_s30 = sld [smem:[#allocation21_spill]] }
 0xabc   : > { %s5414_s23 = sld [smem:[#allocation26_spill]]  ;;  %s5415_s21 = smov %s4534_s22 }
 0xac1   : > { %p30_p8 = scmp.ge.s32.totalorder %s5412_s24, 4   ;;  %s5416_s22 = smov %s5413_s30 }
 0xac3   :  { %32 = sbr.rel (!%p30_p8) target bundleno = 19 (0x13), region = 156 }
 0xaca   :  { %3068 = vsyncpa [#allocation3], 1 }
 0xacb   :  { %3070 = vsyncpa [#allocation3 + $0x1], 1 }
 0xacc   :  { %3071 = vsyncpa [#allocation6], 1 }
 0xacd   :  { %3073 = vsyncpa [#allocation6 + $0x1], 1 }
 0xace   :  { %3074 = vsyncpa [#allocation9], 1 }
 0xacf   :  { %3075 = vsyncpa [#allocation12], 1 }
 0xad0   :  { %3076 = vsyncpa [#allocation4], 1 }
 0xad1   :  { %3078 = vsyncpa [#allocation4 + $0x1], 1 }

</bundles_post_ra>
